<compile_context>
chip_gen: v5e
topology: v5e:2x2
jax: 0.10.0
libtpu: 0.0.40
codegen_flags: <defaults>
</compile_context>

<pallas_src>
import math
import numpy as np
import jax
import jax.numpy as jnp
from jax.experimental import pallas as pl
from jax.experimental.pallas import tpu as pltpu

D = 256  # FPN channel dim; matches the module default d=256 and is lane-dense (2*128).


# ----------------------------------------------------------------------------
# glue: bilinear (align_corners=True) interpolation helpers (host side)
# ----------------------------------------------------------------------------
def _interp_matrix(lo, li):
    """M (lo, li) s.t. M @ x == F.interpolate(x, size=lo, mode='linear',
    align_corners=True) along one axis."""
    if li == 1:
        return np.ones((lo, 1), np.float32)
    if lo == 1:
        m = np.zeros((1, li), np.float32)
        m[0, 0] = 1.0
        return m
    idx = np.arange(lo, dtype=np.float64)
    src = idx * (li - 1) / (lo - 1)
    i0 = np.clip(np.floor(src).astype(np.int64), 0, li - 1)
    i1 = np.minimum(i0 + 1, li - 1)
    frac = (src - i0).astype(np.float32)
    m = np.zeros((lo, li), np.float32)
    m[np.arange(lo), i0] += 1.0 - frac
    m[np.arange(lo), i1] += frac
    return m


def _h_taps(hf, hc):
    """Per fine row: (i0, i1, 1-frac, frac) for align_corners=True interpolation.

    Baked into the kernel as Python constants (level shapes are static), so the
    H-axis interp needs no AH operand, no gather, and only 2 VPU FMAs per row."""
    if hc == 1 or hf == 1:
        return [(0, 0, 1.0, 0.0)] * hf
    taps = []
    for o in range(hf):
        src = o * (hc - 1) / (hf - 1)
        i0 = min(int(math.floor(src)), hc - 1)
        i1 = min(i0 + 1, hc - 1)
        frac = float(src - i0)
        taps.append((i0, i1, 1.0 - frac, frac))
    return taps


def _vmem_limit_bytes():
    # Per-part scoped-VMEM cap: ~3/4 of physical VMEM (v5e/v6e: 128 MiB -> 96 MiB,
    # v7x: 64 MiB -> 48 MiB).  Falls back to the compiler default when the part
    # cannot be queried.  At demo size the working set is < 3 MiB either way.
    try:
        cap = int(pltpu.get_tpu_info().vmem_capacity_bytes)
        return max(32 * 1024 * 1024, min(96 * 1024 * 1024, (cap * 3) // 4))
    except Exception:
        return None


# ----------------------------------------------------------------------------
# Pallas kernel: whole FPN top-down pass for one batch element
# ----------------------------------------------------------------------------
def _make_kernel(level_hw):
    """Builds the fused top-down kernel for static level sizes (coarsest first)."""
    (h3, w3), (h2, w2), (h1, w1) = level_hw
    taps1 = _h_taps(h2, h3)   # level-0 -> level-1 H-axis taps
    taps2 = _h_taps(h1, h2)   # level-1 -> level-2 H-axis taps

    def upsample_rows(p_rows, aw, taps):
        """Separable align_corners=True bilinear upsample, W axis first.

        p_rows: list of hc coarse rows, each (wc, D) bf16.
        aw:     (wf, wc) bf16 W-interp matrix (single tile, never broadcast).
        taps:   baked (i0, i1, 1-frac, frac) per fine row.
        Returns list of hf fine rows, each (wf, D) f32.
        """
        # W axis: one small MXU matmul per *coarse* row (f32 accumulation).
        z = [jnp.dot(aw, r, preferred_element_type=jnp.float32) for r in p_rows]
        # H axis: 2-tap VPU FMA per fine row; indices/weights are compile-time
        # constants, all taps independent (no long accumulator chain).
        rows = []
        for i0, i1, a0, a1 in taps:
            r = z[i0] if a0 == 1.0 else a0 * z[i0]
            if a1 != 0.0 and i1 != i0:
                r = r + a1 * z[i1]
            rows.append(r)
        return rows

    def kernel(f3_ref, f2_ref, f1_ref,
               w0_ref, b0_ref, w1_ref, b1_ref, w2_ref, b2_ref,
               aw1_ref, aw2_ref, out_ref):
        aw1 = aw1_ref[...]
        aw2 = aw2_ref[...]

        # level 0 (coarsest): p = conv0(f3)            [bf16 MXU, f32 accumulate]
        p0 = jnp.dot(f3_ref[0], w0_ref[...],
                     preferred_element_type=jnp.float32) + b0_ref[...]
        p0 = p0.astype(jnp.bfloat16)
        p_rows = [p0[h * w3:(h + 1) * w3, :] for h in range(h3)]

        # level 1: p = conv1(f2) + upsample(p)
        up1 = upsample_rows(p_rows, aw1, taps1)         # h2 rows of (w2, D) f32
        y1 = jnp.dot(f2_ref[0], w1_ref[...],
                     preferred_element_type=jnp.float32) + b1_ref[...]
        p_rows = [(y1[o * w2:(o + 1) * w2, :] + up1[o]).astype(jnp.bfloat16)
                  for o in range(h2)]

        # level 2 (finest): out = conv2(f1) + upsample(p), written out per fine row
        up2 = upsample_rows(p_rows, aw2, taps2)         # h1 rows of (w1, D) f32
        y2 = jnp.dot(f1_ref[0], w2_ref[...],
                     preferred_element_type=jnp.float32) + b2_ref[...]
        for o in range(h1):
            out_ref[0, pl.ds(o * w1, w1), :] = (
                y2[o * w1:(o + 1) * w1, :] + up2[o]).astype(out_ref.dtype)

    return kernel


def fpn_topdown(feats_coarse_to_fine, conv_params, aw_params, out_dtype=jnp.bfloat16):
    """Fused FPN top-down pass.

    feats_coarse_to_fine: [f3, f2, f1] NHWC bf16, coarsest first.
    conv_params: [(W [C_i, D] bf16, b [1, D] f32)], coarsest first.
    aw_params: [AW [Wf, Wc] bf16] per upsample step (W-axis interp matrices).
    Returns NHWC [N, H_fine, W_fine, D] in `out_dtype` (default bf16: the kernel
    is HBM-bound and the output is its largest stream; pass jnp.float32 if the
    downstream consumer needs full precision).
    """
    f3, f2, f1 = feats_coarse_to_fine
    (cw0, cb0), (cw1, cb1), (cw2, cb2) = conv_params
    aw1, aw2 = aw_params

    N = f3.shape[0]
    level_hw = [(f.shape[1], f.shape[2]) for f in feats_coarse_to_fine]
    (h3, w3), (h2, w2), (h1, w1) = level_hw
    s3, c3 = h3 * w3, f3.shape[3]
    s2, c2 = h2 * w2, f2.shape[3]
    s1, c1 = h1 * w1, f1.shape[3]

    f3f = f3.reshape(N, s3, c3)
    f2f = f2.reshape(N, s2, c2)
    f1f = f1.reshape(N, s1, c1)

    def per_n(s, c):
        return pl.BlockSpec((1, s, c), lambda n: (n, 0, 0))

    def const_spec(shape, single_buffer):
        idx = lambda n, _nd=len(shape): (0,) * _nd
        if single_buffer:
            # These blocks never change with the grid index, so a single VMEM
            # buffer suffices (double-buffering them is pure VMEM waste, which
            # matters most on v7x's 64 MiB part).
            return pl.BlockSpec(shape, idx, pipeline_mode=pl.Buffered(1))
        return pl.BlockSpec(shape, idx)

    consts = (cw0, cb0, cw1, cb1, cw2, cb2, aw1, aw2)

    # Advisory cost hint so XLA can overlap the backbone around this custom call.
    conv_flops = 2 * (s3 * c3 + s2 * c2 + s1 * c1) * D
    up_flops = 2 * (h3 * w2 * w3 + h2 * w1 * w2) * D + 4 * (s2 + s1) * D
    flops = int(N * (conv_flops + up_flops))
    bytes_accessed = int(
        2 * N * (s3 * c3 + s2 * c2 + s1 * c1)            # bf16 features
        + 2 * (cw0.size + cw1.size + cw2.size)           # bf16 conv weights
        + 4 * (cb0.size + cb1.size + cb2.size)           # f32 biases
        + 2 * (aw1.size + aw2.size)                      # bf16 W-interp matrices
        + np.dtype(out_dtype).itemsize * N * s1 * D)     # output

    # TODO(synk): at production FPN resolutions add a spatial grid axis over the
    # finest level (TILE_H1 fine rows per step, marked "parallel" so v7x's two
    # TensorCores both stay busy and pipelined even at N=1): row-tile f1 and the
    # output via index_map, pass the per-tile H-interp window (start row + a small
    # (TILE_H1, L) tap matrix) through scalar prefetch, and recompute the
    # ~TILE_H1/2+1 / TILE_H1/4+1 needed coarse rows of p per step (coarse convs are
    # cheap).  When sizing TILE_H1 remember f1 (32-wide) / f2 (64-wide) channel
    # dims only fill 32/128 and 64/128 lanes, i.e. 4x / 2x VMEM inflation.
    def call(single_buffer_consts):
        return pl.pallas_call(
            _make_kernel(level_hw),
            out_shape=jax.ShapeDtypeStruct((N, s1, D), out_dtype),
            grid_spec=pltpu.PrefetchScalarGridSpec(
                num_scalar_prefetch=0,
                grid=(N,),
                in_specs=[per_n(s3, c3), per_n(s2, c2), per_n(s1, c1)]
                         + [const_spec(a.shape, single_buffer_consts) for a in consts],
                out_specs=pl.BlockSpec((1, s1, D), lambda n: (n, 0, 0)),
            ),
            compiler_params=pltpu.CompilerParams(
                dimension_semantics=("parallel",),
                vmem_limit_bytes=_vmem_limit_bytes()),
            cost_estimate=pl.CostEstimate(flops=flops, transcendentals=0,
                                          bytes_accessed=bytes_accessed),
        )(f3f, f2f, f1f, *consts)

    try:
        out = call(True)
    except Exception:
        # Fallback if pl.Buffered(1) is not supported by this jax version:
        # identical kernel with default (double-buffered) constant operands.
        out = call(False)
    return out.reshape(N, h1, w1, D)


# ----------------------------------------------------------------------------
# glue: deterministic parameter init + synthetic multi-scale backbone
# ----------------------------------------------------------------------------
def init_params(key, in_ch=4):
    ks = jax.random.split(key, 12)
    # synthetic backbone channel widths (finest -> coarsest): in_ch -> 32 -> 64 -> 128
    chans = [in_ch, 32, 64, 128]
    backbone = []
    for i in range(3):
        w = 0.3 * jax.random.normal(ks[i], (chans[i], chans[i + 1]), jnp.float32)
        b = 0.05 * jax.random.normal(ks[3 + i], (chans[i + 1],), jnp.float32)
        backbone.append((w, b))
    # FPN 1x1 convs, coarsest-first channel list [128, 64, 32] -> D
    fpn_in = [128, 64, 32]
    convs = []
    for i, c in enumerate(fpn_in):
        w = (1.0 / np.sqrt(c)) * jax.random.normal(ks[6 + i], (c, D), jnp.float32)
        b = 0.02 * jax.random.normal(ks[9 + i], (1, D), jnp.float32)
        convs.append((w, b))
    return backbone, convs


def synthetic_backbone(x_nhwc, backbone_params):
    # TODO(synk): model.extract_endpoints is an external torch.hub EfficientNet;
    # replaced here by a deterministic multi-scale pyramid (plain-JAX glue).
    feats = []
    cur = x_nhwc
    for i, (w, b) in enumerate(backbone_params):
        if i > 0:
            n, h, ww, c = cur.shape
            cur = cur.reshape(n, h // 2, 2, ww // 2, 2, c).mean(axis=(2, 4))
        cur = jnp.tanh(jnp.einsum('nhwc,cd->nhwd', cur, w) + b)
        feats.append(cur)
    return feats  # finest -> coarsest (extract_endpoints ordering)


# ----------------------------------------------------------------------------
if __name__ == "__main__":
    key = jax.random.PRNGKey(0)
    kx, kp = jax.random.split(key)
    N, C, H, W = 2, 4, 16, 16
    x_nchw = jax.random.normal(kx, (N, C, H, W), jnp.float32)  # PyTorch-style input
    x_nhwc = jnp.transpose(x_nchw, (0, 2, 3, 1))

    backbone_params, conv_params = init_params(kp, in_ch=C)
    feats = synthetic_backbone(x_nhwc, backbone_params)   # finest -> coarsest (f32)
    feats_c2f = feats[::-1]                               # coarsest first (as in module)

    # bf16 operands for the kernel (f32 accumulation happens on the MXU).
    feats_k = [f.astype(jnp.bfloat16) for f in feats_c2f]
    convs_k = [(w.astype(jnp.bfloat16), b) for (w, b) in conv_params]

    # Separable bilinear (align_corners=True) interpolation operators.
    #   Only the (Wf, Wc) bf16 W-axis matrix is shipped to the kernel; the H-axis
    #   2-tap weights are baked into the kernel as compile-time constants.
    aw_k, interp_ref = [], []
    for prev_f, next_f in zip(feats_c2f[:-1], feats_c2f[1:]):
        hc, wc = prev_f.shape[1], prev_f.shape[2]
        hf, wf = next_f.shape[1], next_f.shape[2]
        ah = _interp_matrix(hf, hc)                          # (hf, hc), reference only
        aw = _interp_matrix(wf, wc)                          # (wf, wc)
        aw_b = jnp.asarray(aw, jnp.bfloat16)
        aw_k.append(aw_b)
        interp_ref.append((jnp.asarray(ah, jnp.float32), aw_b.astype(jnp.float32)))

    out = fpn_topdown(feats_k, convs_k, aw_k)                # NHWC [N, 16, 16, D] bf16
    out = jax.block_until_ready(out)

    # pure-JAX reference for the FPN top-down math (same bf16-rounded operands,
    # same W-first / H-second interpolation order as the kernel).
    def ref():
        (w0, b0), (w1, b1), (w2, b2) = [(w.astype(jnp.float32), b) for (w, b) in convs_k]
        f3, f2, f1 = [f.astype(jnp.float32) for f in feats_k]
        (rah1, raw1), (rah2, raw2) = interp_ref
        hi = 'highest'

        def up(p, ah, aw):
            pb = p.astype(jnp.bfloat16).astype(jnp.float32)       # kernel feeds bf16 p to the MXU
            z = jnp.einsum('ow,nhwd->nhod', aw, pb, precision=hi)  # W interp (f32 accumulate)
            return jnp.einsum('fh,nhod->nfod', ah, z, precision=hi)  # 2-tap H interp (f32)

        p = jnp.einsum('nhwc,cd->nhwd', f3, w0, precision=hi) + b0[0]
        p = jnp.einsum('nhwc,cd->nhwd', f2, w1, precision=hi) + b1[0] + up(p, rah1, raw1)
        p = jnp.einsum('nhwc,cd->nhwd', f1, w2, precision=hi) + b2[0] + up(p, rah2, raw2)
        return p

    np.testing.assert_allclose(np.asarray(out, dtype=np.float32), np.asarray(ref()),
                               rtol=2e-2, atol=2e-2)
    print("KERNEL_OK")
</pallas_src>

<mosaic_0001>
module attributes {stable_mosaic.version = 11 : i64} {
  func.func @kernel(%arg0: i32, %arg1: memref<1x16x128xbf16, #tpu.memory_space<vmem>>, %arg2: memref<1x64x64xbf16, #tpu.memory_space<vmem>>, %arg3: memref<1x256x32xbf16, #tpu.memory_space<vmem>>, %arg4: memref<128x256xbf16, #tpu.memory_space<vmem>>, %arg5: memref<1x256xf32, #tpu.memory_space<vmem>>, %arg6: memref<64x256xbf16, #tpu.memory_space<vmem>>, %arg7: memref<1x256xf32, #tpu.memory_space<vmem>>, %arg8: memref<32x256xbf16, #tpu.memory_space<vmem>>, %arg9: memref<1x256xf32, #tpu.memory_space<vmem>>, %arg10: memref<8x4xbf16, #tpu.memory_space<vmem>>, %arg11: memref<16x8xbf16, #tpu.memory_space<vmem>>, %arg12: memref<1x256x256xbf16, #tpu.memory_space<vmem>>) attributes {dimension_semantics = [#tpu.dimension_semantics<parallel>], iteration_bounds = array<i64: 2>, scalar_prefetch = 0 : i64, scratch_operands = 0 : i64, tpu.core_type = #tpu.core_type<tc>, window_params = [{transform_indices = @transform_0, window_bounds = array<i64: 1, 16, 128>}, {transform_indices = @transform_1, window_bounds = array<i64: 1, 64, 64>}, {transform_indices = @transform_2, window_bounds = array<i64: 1, 256, 32>}, {pipeline_mode = #tpu.pipeline_mode<synchronous>, transform_indices = @transform_3, window_bounds = array<i64: 128, 256>}, {pipeline_mode = #tpu.pipeline_mode<synchronous>, transform_indices = @transform_4, window_bounds = array<i64: 1, 256>}, {pipeline_mode = #tpu.pipeline_mode<synchronous>, transform_indices = @transform_5, window_bounds = array<i64: 64, 256>}, {pipeline_mode = #tpu.pipeline_mode<synchronous>, transform_indices = @transform_6, window_bounds = array<i64: 1, 256>}, {pipeline_mode = #tpu.pipeline_mode<synchronous>, transform_indices = @transform_7, window_bounds = array<i64: 32, 256>}, {pipeline_mode = #tpu.pipeline_mode<synchronous>, transform_indices = @transform_8, window_bounds = array<i64: 1, 256>}, {pipeline_mode = #tpu.pipeline_mode<synchronous>, transform_indices = @transform_9, window_bounds = array<i64: 8, 4>}, {pipeline_mode = #tpu.pipeline_mode<synchronous>, transform_indices = @transform_10, window_bounds = array<i64: 16, 8>}, {transform_indices = @transform_11, window_bounds = array<i64: 1, 256, 256>}]} {
    %c0 = arith.constant 0 : index
    %c0_0 = arith.constant 0 : index
    %0 = vector.load %arg10[%c0, %c0_0] : memref<8x4xbf16, #tpu.memory_space<vmem>>, vector<8x4xbf16>
    %c0_1 = arith.constant 0 : index
    %c0_2 = arith.constant 0 : index
    %1 = vector.load %arg11[%c0_1, %c0_2] : memref<16x8xbf16, #tpu.memory_space<vmem>>, vector<16x8xbf16>
    %c0_3 = arith.constant 0 : index
    %c0_4 = arith.constant 0 : index
    %c0_5 = arith.constant 0 : index
    %2 = vector.load %arg1[%c0_3, %c0_4, %c0_5] : memref<1x16x128xbf16, #tpu.memory_space<vmem>>, vector<1x16x128xbf16>
    %3 = vector.shape_cast %2 : vector<1x16x128xbf16> to vector<16x128xbf16>
    %c0_6 = arith.constant 0 : index
    %c0_7 = arith.constant 0 : index
    %4 = vector.load %arg4[%c0_6, %c0_7] : memref<128x256xbf16, #tpu.memory_space<vmem>>, vector<128x256xbf16>
    %cst = arith.constant dense<0.000000e+00> : vector<16x256xf32>
    %5 = tpu.matmul %3, %4, %cst {dimension_numbers = #tpu.dot_dimension_numbers<[1], [0], [0], [1], [0, 0, 1, 1], [], []>} : vector<16x128xbf16>, vector<128x256xbf16>, vector<16x256xf32> -> vector<16x256xf32>
    %c0_8 = arith.constant 0 : index
    %c0_9 = arith.constant 0 : index
    %6 = vector.load %arg5[%c0_8, %c0_9] : memref<1x256xf32, #tpu.memory_space<vmem>>, vector<1x256xf32>
    %7 = vector.broadcast %6 : vector<1x256xf32> to vector<16x256xf32>
    %8 = arith.addf %5, %7 : vector<16x256xf32>
    %9 = arith.truncf %8 : vector<16x256xf32> to vector<16x256xbf16>
    %10 = vector.extract_strided_slice %9 {offsets = [0, 0], sizes = [4, 256], strides = [1, 1]} : vector<16x256xbf16> to vector<4x256xbf16>
    %11 = vector.extract_strided_slice %9 {offsets = [4, 0], sizes = [4, 256], strides = [1, 1]} : vector<16x256xbf16> to vector<4x256xbf16>
    %12 = vector.extract_strided_slice %9 {offsets = [8, 0], sizes = [4, 256], strides = [1, 1]} : vector<16x256xbf16> to vector<4x256xbf16>
    %13 = vector.extract_strided_slice %9 {offsets = [12, 0], sizes = [4, 256], strides = [1, 1]} : vector<16x256xbf16> to vector<4x256xbf16>
    %cst_10 = arith.constant dense<0.000000e+00> : vector<8x256xf32>
    %14 = tpu.matmul %0, %10, %cst_10 {dimension_numbers = #tpu.dot_dimension_numbers<[1], [0], [0], [1], [0, 0, 1, 1], [], []>} : vector<8x4xbf16>, vector<4x256xbf16>, vector<8x256xf32> -> vector<8x256xf32>
    %cst_11 = arith.constant dense<0.000000e+00> : vector<8x256xf32>
    %15 = tpu.matmul %0, %11, %cst_11 {dimension_numbers = #tpu.dot_dimension_numbers<[1], [0], [0], [1], [0, 0, 1, 1], [], []>} : vector<8x4xbf16>, vector<4x256xbf16>, vector<8x256xf32> -> vector<8x256xf32>
    %cst_12 = arith.constant dense<0.000000e+00> : vector<8x256xf32>
    %16 = tpu.matmul %0, %12, %cst_12 {dimension_numbers = #tpu.dot_dimension_numbers<[1], [0], [0], [1], [0, 0, 1, 1], [], []>} : vector<8x4xbf16>, vector<4x256xbf16>, vector<8x256xf32> -> vector<8x256xf32>
    %cst_13 = arith.constant dense<0.000000e+00> : vector<8x256xf32>
    %17 = tpu.matmul %0, %13, %cst_13 {dimension_numbers = #tpu.dot_dimension_numbers<[1], [0], [0], [1], [0, 0, 1, 1], [], []>} : vector<8x4xbf16>, vector<4x256xbf16>, vector<8x256xf32> -> vector<8x256xf32>
    %cst_14 = arith.constant 0.571428597 : f32
    %18 = vector.broadcast %cst_14 : f32 to vector<8x256xf32>
    %19 = arith.mulf %18, %14 : vector<8x256xf32>
    %cst_15 = arith.constant 0.428571433 : f32
    %20 = vector.broadcast %cst_15 : f32 to vector<8x256xf32>
    %21 = arith.mulf %20, %15 : vector<8x256xf32>
    %22 = arith.addf %19, %21 : vector<8x256xf32>
    %cst_16 = arith.constant 0.142857149 : f32
    %23 = vector.broadcast %cst_16 : f32 to vector<8x256xf32>
    %24 = arith.mulf %23, %14 : vector<8x256xf32>
    %cst_17 = arith.constant 0.857142865 : f32
    %25 = vector.broadcast %cst_17 : f32 to vector<8x256xf32>
    %26 = arith.mulf %25, %15 : vector<8x256xf32>
    %27 = arith.addf %24, %26 : vector<8x256xf32>
    %cst_18 = arith.constant 0.714285731 : f32
    %28 = vector.broadcast %cst_18 : f32 to vector<8x256xf32>
    %29 = arith.mulf %28, %15 : vector<8x256xf32>
    %cst_19 = arith.constant 0.285714298 : f32
    %30 = vector.broadcast %cst_19 : f32 to vector<8x256xf32>
    %31 = arith.mulf %30, %16 : vector<8x256xf32>
    %32 = arith.addf %29, %31 : vector<8x256xf32>
    %cst_20 = arith.constant 0.285714298 : f32
    %33 = vector.broadcast %cst_20 : f32 to vector<8x256xf32>
    %34 = arith.mulf %33, %15 : vector<8x256xf32>
    %cst_21 = arith.constant 0.714285731 : f32
    %35 = vector.broadcast %cst_21 : f32 to vector<8x256xf32>
    %36 = arith.mulf %35, %16 : vector<8x256xf32>
    %37 = arith.addf %34, %36 : vector<8x256xf32>
    %cst_22 = arith.constant 0.857142865 : f32
    %38 = vector.broadcast %cst_22 : f32 to vector<8x256xf32>
    %39 = arith.mulf %38, %16 : vector<8x256xf32>
    %cst_23 = arith.constant 0.142857149 : f32
    %40 = vector.broadcast %cst_23 : f32 to vector<8x256xf32>
    %41 = arith.mulf %40, %17 : vector<8x256xf32>
    %42 = arith.addf %39, %41 : vector<8x256xf32>
    %cst_24 = arith.constant 0.428571433 : f32
    %43 = vector.broadcast %cst_24 : f32 to vector<8x256xf32>
    %44 = arith.mulf %43, %16 : vector<8x256xf32>
    %cst_25 = arith.constant 0.571428597 : f32
    %45 = vector.broadcast %cst_25 : f32 to vector<8x256xf32>
    %46 = arith.mulf %45, %17 : vector<8x256xf32>
    %47 = arith.addf %44, %46 : vector<8x256xf32>
    %c0_26 = arith.constant 0 : index
    %c0_27 = arith.constant 0 : index
    %c0_28 = arith.constant 0 : index
    %48 = vector.load %arg2[%c0_26, %c0_27, %c0_28] : memref<1x64x64xbf16, #tpu.memory_space<vmem>>, vector<1x64x64xbf16>
    %49 = vector.shape_cast %48 : vector<1x64x64xbf16> to vector<64x64xbf16>
    %c0_29 = arith.constant 0 : index
    %c0_30 = arith.constant 0 : index
    %50 = vector.load %arg6[%c0_29, %c0_30] : memref<64x256xbf16, #tpu.memory_space<vmem>>, vector<64x256xbf16>
    %cst_31 = arith.constant dense<0.000000e+00> : vector<64x256xf32>
    %51 = tpu.matmul %49, %50, %cst_31 {dimension_numbers = #tpu.dot_dimension_numbers<[1], [0], [0], [1], [0, 0, 1, 1], [], []>} : vector<64x64xbf16>, vector<64x256xbf16>, vector<64x256xf32> -> vector<64x256xf32>
    %c0_32 = arith.constant 0 : index
    %c0_33 = arith.constant 0 : index
    %52 = vector.load %arg7[%c0_32, %c0_33] : memref<1x256xf32, #tpu.memory_space<vmem>>, vector<1x256xf32>
    %53 = vector.broadcast %52 : vector<1x256xf32> to vector<64x256xf32>
    %54 = arith.addf %51, %53 : vector<64x256xf32>
    %55 = vector.extract_strided_slice %54 {offsets = [0, 0], sizes = [8, 256], strides = [1, 1]} : vector<64x256xf32> to vector<8x256xf32>
    %56 = arith.addf %55, %14 : vector<8x256xf32>
    %57 = arith.truncf %56 : vector<8x256xf32> to vector<8x256xbf16>
    %58 = vector.extract_strided_slice %54 {offsets = [8, 0], sizes = [8, 256], strides = [1, 1]} : vector<64x256xf32> to vector<8x256xf32>
    %59 = arith.addf %58, %22 : vector<8x256xf32>
    %60 = arith.truncf %59 : vector<8x256xf32> to vector<8x256xbf16>
    %61 = vector.extract_strided_slice %54 {offsets = [16, 0], sizes = [8, 256], strides = [1, 1]} : vector<64x256xf32> to vector<8x256xf32>
    %62 = arith.addf %61, %27 : vector<8x256xf32>
    %63 = arith.truncf %62 : vector<8x256xf32> to vector<8x256xbf16>
    %64 = vector.extract_strided_slice %54 {offsets = [24, 0], sizes = [8, 256], strides = [1, 1]} : vector<64x256xf32> to vector<8x256xf32>
    %65 = arith.addf %64, %32 : vector<8x256xf32>
    %66 = arith.truncf %65 : vector<8x256xf32> to vector<8x256xbf16>
    %67 = vector.extract_strided_slice %54 {offsets = [32, 0], sizes = [8, 256], strides = [1, 1]} : vector<64x256xf32> to vector<8x256xf32>
    %68 = arith.addf %67, %37 : vector<8x256xf32>
    %69 = arith.truncf %68 : vector<8x256xf32> to vector<8x256xbf16>
    %70 = vector.extract_strided_slice %54 {offsets = [40, 0], sizes = [8, 256], strides = [1, 1]} : vector<64x256xf32> to vector<8x256xf32>
    %71 = arith.addf %70, %42 : vector<8x256xf32>
    %72 = arith.truncf %71 : vector<8x256xf32> to vector<8x256xbf16>
    %73 = vector.extract_strided_slice %54 {offsets = [48, 0], sizes = [8, 256], strides = [1, 1]} : vector<64x256xf32> to vector<8x256xf32>
    %74 = arith.addf %73, %47 : vector<8x256xf32>
    %75 = arith.truncf %74 : vector<8x256xf32> to vector<8x256xbf16>
    %76 = vector.extract_strided_slice %54 {offsets = [56, 0], sizes = [8, 256], strides = [1, 1]} : vector<64x256xf32> to vector<8x256xf32>
    %77 = arith.addf %76, %17 : vector<8x256xf32>
    %78 = arith.truncf %77 : vector<8x256xf32> to vector<8x256xbf16>
    %cst_34 = arith.constant dense<0.000000e+00> : vector<16x256xf32>
    %79 = tpu.matmul %1, %57, %cst_34 {dimension_numbers = #tpu.dot_dimension_numbers<[1], [0], [0], [1], [0, 0, 1, 1], [], []>} : vector<16x8xbf16>, vector<8x256xbf16>, vector<16x256xf32> -> vector<16x256xf32>
    %cst_35 = arith.constant dense<0.000000e+00> : vector<16x256xf32>
    %80 = tpu.matmul %1, %60, %cst_35 {dimension_numbers = #tpu.dot_dimension_numbers<[1], [0], [0], [1], [0, 0, 1, 1], [], []>} : vector<16x8xbf16>, vector<8x256xbf16>, vector<16x256xf32> -> vector<16x256xf32>
    %cst_36 = arith.constant dense<0.000000e+00> : vector<16x256xf32>
    %81 = tpu.matmul %1, %63, %cst_36 {dimension_numbers = #tpu.dot_dimension_numbers<[1], [0], [0], [1], [0, 0, 1, 1], [], []>} : vector<16x8xbf16>, vector<8x256xbf16>, vector<16x256xf32> -> vector<16x256xf32>
    %cst_37 = arith.constant dense<0.000000e+00> : vector<16x256xf32>
    %82 = tpu.matmul %1, %66, %cst_37 {dimension_numbers = #tpu.dot_dimension_numbers<[1], [0], [0], [1], [0, 0, 1, 1], [], []>} : vector<16x8xbf16>, vector<8x256xbf16>, vector<16x256xf32> -> vector<16x256xf32>
    %cst_38 = arith.constant dense<0.000000e+00> : vector<16x256xf32>
    %83 = tpu.matmul %1, %69, %cst_38 {dimension_numbers = #tpu.dot_dimension_numbers<[1], [0], [0], [1], [0, 0, 1, 1], [], []>} : vector<16x8xbf16>, vector<8x256xbf16>, vector<16x256xf32> -> vector<16x256xf32>
    %cst_39 = arith.constant dense<0.000000e+00> : vector<16x256xf32>
    %84 = tpu.matmul %1, %72, %cst_39 {dimension_numbers = #tpu.dot_dimension_numbers<[1], [0], [0], [1], [0, 0, 1, 1], [], []>} : vector<16x8xbf16>, vector<8x256xbf16>, vector<16x256xf32> -> vector<16x256xf32>
    %cst_40 = arith.constant dense<0.000000e+00> : vector<16x256xf32>
    %85 = tpu.matmul %1, %75, %cst_40 {dimension_numbers = #tpu.dot_dimension_numbers<[1], [0], [0], [1], [0, 0, 1, 1], [], []>} : vector<16x8xbf16>, vector<8x256xbf16>, vector<16x256xf32> -> vector<16x256xf32>
    %cst_41 = arith.constant dense<0.000000e+00> : vector<16x256xf32>
    %86 = tpu.matmul %1, %78, %cst_41 {dimension_numbers = #tpu.dot_dimension_numbers<[1], [0], [0], [1], [0, 0, 1, 1], [], []>} : vector<16x8xbf16>, vector<8x256xbf16>, vector<16x256xf32> -> vector<16x256xf32>
    %cst_42 = arith.constant 0.533333361 : f32
    %87 = vector.broadcast %cst_42 : f32 to vector<16x256xf32>
    %88 = arith.mulf %87, %79 : vector<16x256xf32>
    %cst_43 = arith.constant 0.466666669 : f32
    %89 = vector.broadcast %cst_43 : f32 to vector<16x256xf32>
    %90 = arith.mulf %89, %80 : vector<16x256xf32>
    %91 = arith.addf %88, %90 : vector<16x256xf32>
    %cst_44 = arith.constant 0.0666666701 : f32
    %92 = vector.broadcast %cst_44 : f32 to vector<16x256xf32>
    %93 = arith.mulf %92, %79 : vector<16x256xf32>
    %cst_45 = arith.constant 0.933333337 : f32
    %94 = vector.broadcast %cst_45 : f32 to vector<16x256xf32>
    %95 = arith.mulf %94, %80 : vector<16x256xf32>
    %96 = arith.addf %93, %95 : vector<16x256xf32>
    %cst_46 = arith.constant 6.000000e-01 : f32
    %97 = vector.broadcast %cst_46 : f32 to vector<16x256xf32>
    %98 = arith.mulf %97, %80 : vector<16x256xf32>
    %cst_47 = arith.constant 4.000000e-01 : f32
    %99 = vector.broadcast %cst_47 : f32 to vector<16x256xf32>
    %100 = arith.mulf %99, %81 : vector<16x256xf32>
    %101 = arith.addf %98, %100 : vector<16x256xf32>
    %cst_48 = arith.constant 0.13333334 : f32
    %102 = vector.broadcast %cst_48 : f32 to vector<16x256xf32>
    %103 = arith.mulf %102, %80 : vector<16x256xf32>
    %cst_49 = arith.constant 0.866666674 : f32
    %104 = vector.broadcast %cst_49 : f32 to vector<16x256xf32>
    %105 = arith.mulf %104, %81 : vector<16x256xf32>
    %106 = arith.addf %103, %105 : vector<16x256xf32>
    %cst_50 = arith.constant 0.666666686 : f32
    %107 = vector.broadcast %cst_50 : f32 to vector<16x256xf32>
    %108 = arith.mulf %107, %81 : vector<16x256xf32>
    %cst_51 = arith.constant 0.333333343 : f32
    %109 = vector.broadcast %cst_51 : f32 to vector<16x256xf32>
    %110 = arith.mulf %109, %82 : vector<16x256xf32>
    %111 = arith.addf %108, %110 : vector<16x256xf32>
    %cst_52 = arith.constant 2.000000e-01 : f32
    %112 = vector.broadcast %cst_52 : f32 to vector<16x256xf32>
    %113 = arith.mulf %112, %81 : vector<16x256xf32>
    %cst_53 = arith.constant 8.000000e-01 : f32
    %114 = vector.broadcast %cst_53 : f32 to vector<16x256xf32>
    %115 = arith.mulf %114, %82 : vector<16x256xf32>
    %116 = arith.addf %113, %115 : vector<16x256xf32>
    %cst_54 = arith.constant 0.733333349 : f32
    %117 = vector.broadcast %cst_54 : f32 to vector<16x256xf32>
    %118 = arith.mulf %117, %82 : vector<16x256xf32>
    %cst_55 = arith.constant 0.266666681 : f32
    %119 = vector.broadcast %cst_55 : f32 to vector<16x256xf32>
    %120 = arith.mulf %119, %83 : vector<16x256xf32>
    %121 = arith.addf %118, %120 : vector<16x256xf32>
    %cst_56 = arith.constant 0.266666681 : f32
    %122 = vector.broadcast %cst_56 : f32 to vector<16x256xf32>
    %123 = arith.mulf %122, %82 : vector<16x256xf32>
    %cst_57 = arith.constant 0.733333349 : f32
    %124 = vector.broadcast %cst_57 : f32 to vector<16x256xf32>
    %125 = arith.mulf %124, %83 : vector<16x256xf32>
    %126 = arith.addf %123, %125 : vector<16x256xf32>
    %cst_58 = arith.constant 8.000000e-01 : f32
    %127 = vector.broadcast %cst_58 : f32 to vector<16x256xf32>
    %128 = arith.mulf %127, %83 : vector<16x256xf32>
    %cst_59 = arith.constant 2.000000e-01 : f32
    %129 = vector.broadcast %cst_59 : f32 to vector<16x256xf32>
    %130 = arith.mulf %129, %84 : vector<16x256xf32>
    %131 = arith.addf %128, %130 : vector<16x256xf32>
    %cst_60 = arith.constant 0.333333343 : f32
    %132 = vector.broadcast %cst_60 : f32 to vector<16x256xf32>
    %133 = arith.mulf %132, %83 : vector<16x256xf32>
    %cst_61 = arith.constant 0.666666686 : f32
    %134 = vector.broadcast %cst_61 : f32 to vector<16x256xf32>
    %135 = arith.mulf %134, %84 : vector<16x256xf32>
    %136 = arith.addf %133, %135 : vector<16x256xf32>
    %cst_62 = arith.constant 0.866666674 : f32
    %137 = vector.broadcast %cst_62 : f32 to vector<16x256xf32>
    %138 = arith.mulf %137, %84 : vector<16x256xf32>
    %cst_63 = arith.constant 0.13333334 : f32
    %139 = vector.broadcast %cst_63 : f32 to vector<16x256xf32>
    %140 = arith.mulf %139, %85 : vector<16x256xf32>
    %141 = arith.addf %138, %140 : vector<16x256xf32>
    %cst_64 = arith.constant 4.000000e-01 : f32
    %142 = vector.broadcast %cst_64 : f32 to vector<16x256xf32>
    %143 = arith.mulf %142, %84 : vector<16x256xf32>
    %cst_65 = arith.constant 6.000000e-01 : f32
    %144 = vector.broadcast %cst_65 : f32 to vector<16x256xf32>
    %145 = arith.mulf %144, %85 : vector<16x256xf32>
    %146 = arith.addf %143, %145 : vector<16x256xf32>
    %cst_66 = arith.constant 0.933333337 : f32
    %147 = vector.broadcast %cst_66 : f32 to vector<16x256xf32>
    %148 = arith.mulf %147, %85 : vector<16x256xf32>
    %cst_67 = arith.constant 0.0666666701 : f32
    %149 = vector.broadcast %cst_67 : f32 to vector<16x256xf32>
    %150 = arith.mulf %149, %86 : vector<16x256xf32>
    %151 = arith.addf %148, %150 : vector<16x256xf32>
    %cst_68 = arith.constant 0.466666669 : f32
    %152 = vector.broadcast %cst_68 : f32 to vector<16x256xf32>
    %153 = arith.mulf %152, %85 : vector<16x256xf32>
    %cst_69 = arith.constant 0.533333361 : f32
    %154 = vector.broadcast %cst_69 : f32 to vector<16x256xf32>
    %155 = arith.mulf %154, %86 : vector<16x256xf32>
    %156 = arith.addf %153, %155 : vector<16x256xf32>
    %c0_70 = arith.constant 0 : index
    %c0_71 = arith.constant 0 : index
    %c0_72 = arith.constant 0 : index
    %157 = vector.load %arg3[%c0_70, %c0_71, %c0_72] : memref<1x256x32xbf16, #tpu.memory_space<vmem>>, vector<1x256x32xbf16>
    %158 = vector.shape_cast %157 : vector<1x256x32xbf16> to vector<256x32xbf16>
    %c0_73 = arith.constant 0 : index
    %c0_74 = arith.constant 0 : index
    %159 = vector.load %arg8[%c0_73, %c0_74] : memref<32x256xbf16, #tpu.memory_space<vmem>>, vector<32x256xbf16>
    %cst_75 = arith.constant dense<0.000000e+00> : vector<256x256xf32>
    %160 = tpu.matmul %158, %159, %cst_75 {dimension_numbers = #tpu.dot_dimension_numbers<[1], [0], [0], [1], [0, 0, 1, 1], [], []>} : vector<256x32xbf16>, vector<32x256xbf16>, vector<256x256xf32> -> vector<256x256xf32>
    %c0_76 = arith.constant 0 : index
    %c0_77 = arith.constant 0 : index
    %161 = vector.load %arg9[%c0_76, %c0_77] : memref<1x256xf32, #tpu.memory_space<vmem>>, vector<1x256xf32>
    %162 = vector.broadcast %161 : vector<1x256xf32> to vector<256x256xf32>
    %163 = arith.addf %160, %162 : vector<256x256xf32>
    %164 = vector.extract_strided_slice %163 {offsets = [0, 0], sizes = [16, 256], strides = [1, 1]} : vector<256x256xf32> to vector<16x256xf32>
    %165 = arith.addf %164, %79 : vector<16x256xf32>
    %166 = arith.truncf %165 : vector<16x256xf32> to vector<16x256xbf16>
    %c0_78 = arith.constant 0 : index
    %c0_79 = arith.constant 0 : index
    %c0_80 = arith.constant 0 : index
    %167 = vector.load %arg12[%c0_78, %c0_79, %c0_80] : memref<1x256x256xbf16, #tpu.memory_space<vmem>>, vector<1x16x256xbf16>
    %168 = vector.shape_cast %167 : vector<1x16x256xbf16> to vector<16x256xbf16>
    %169 = vector.shape_cast %166 : vector<16x256xbf16> to vector<1x16x256xbf16>
    tpu.vector_store %arg12[%c0_78, %c0_79, %c0_80], %169 {strides = array<i32>} : memref<1x256x256xbf16, #tpu.memory_space<vmem>>, vector<1x16x256xbf16>,
    %170 = vector.extract_strided_slice %163 {offsets = [16, 0], sizes = [16, 256], strides = [1, 1]} : vector<256x256xf32> to vector<16x256xf32>
    %171 = arith.addf %170, %91 : vector<16x256xf32>
    %172 = arith.truncf %171 : vector<16x256xf32> to vector<16x256xbf16>
    %c0_81 = arith.constant 0 : index
    %c16 = arith.constant 16 : index
    %c0_82 = arith.constant 0 : index
    %173 = vector.load %arg12[%c0_81, %c16, %c0_82] : memref<1x256x256xbf16, #tpu.memory_space<vmem>>, vector<1x16x256xbf16>
    %174 = vector.shape_cast %173 : vector<1x16x256xbf16> to vector<16x256xbf16>
    %175 = vector.shape_cast %172 : vector<16x256xbf16> to vector<1x16x256xbf16>
    tpu.vector_store %arg12[%c0_81, %c16, %c0_82], %175 {strides = array<i32>} : memref<1x256x256xbf16, #tpu.memory_space<vmem>>, vector<1x16x256xbf16>,
    %176 = vector.extract_strided_slice %163 {offsets = [32, 0], sizes = [16, 256], strides = [1, 1]} : vector<256x256xf32> to vector<16x256xf32>
    %177 = arith.addf %176, %96 : vector<16x256xf32>
    %178 = arith.truncf %177 : vector<16x256xf32> to vector<16x256xbf16>
    %c0_83 = arith.constant 0 : index
    %c32 = arith.constant 32 : index
    %c0_84 = arith.constant 0 : index
    %179 = vector.load %arg12[%c0_83, %c32, %c0_84] : memref<1x256x256xbf16, #tpu.memory_space<vmem>>, vector<1x16x256xbf16>
    %180 = vector.shape_cast %179 : vector<1x16x256xbf16> to vector<16x256xbf16>
    %181 = vector.shape_cast %178 : vector<16x256xbf16> to vector<1x16x256xbf16>
    tpu.vector_store %arg12[%c0_83, %c32, %c0_84], %181 {strides = array<i32>} : memref<1x256x256xbf16, #tpu.memory_space<vmem>>, vector<1x16x256xbf16>,
    %182 = vector.extract_strided_slice %163 {offsets = [48, 0], sizes = [16, 256], strides = [1, 1]} : vector<256x256xf32> to vector<16x256xf32>
    %183 = arith.addf %182, %101 : vector<16x256xf32>
    %184 = arith.truncf %183 : vector<16x256xf32> to vector<16x256xbf16>
    %c0_85 = arith.constant 0 : index
    %c48 = arith.constant 48 : index
    %c0_86 = arith.constant 0 : index
    %185 = vector.load %arg12[%c0_85, %c48, %c0_86] : memref<1x256x256xbf16, #tpu.memory_space<vmem>>, vector<1x16x256xbf16>
    %186 = vector.shape_cast %185 : vector<1x16x256xbf16> to vector<16x256xbf16>
    %187 = vector.shape_cast %184 : vector<16x256xbf16> to vector<1x16x256xbf16>
    tpu.vector_store %arg12[%c0_85, %c48, %c0_86], %187 {strides = array<i32>} : memref<1x256x256xbf16, #tpu.memory_space<vmem>>, vector<1x16x256xbf16>,
    %188 = vector.extract_strided_slice %163 {offsets = [64, 0], sizes = [16, 256], strides = [1, 1]} : vector<256x256xf32> to vector<16x256xf32>
    %189 = arith.addf %188, %106 : vector<16x256xf32>
    %190 = arith.truncf %189 : vector<16x256xf32> to vector<16x256xbf16>
    %c0_87 = arith.constant 0 : index
    %c64 = arith.constant 64 : index
    %c0_88 = arith.constant 0 : index
    %191 = vector.load %arg12[%c0_87, %c64, %c0_88] : memref<1x256x256xbf16, #tpu.memory_space<vmem>>, vector<1x16x256xbf16>
    %192 = vector.shape_cast %191 : vector<1x16x256xbf16> to vector<16x256xbf16>
    %193 = vector.shape_cast %190 : vector<16x256xbf16> to vector<1x16x256xbf16>
    tpu.vector_store %arg12[%c0_87, %c64, %c0_88], %193 {strides = array<i32>} : memref<1x256x256xbf16, #tpu.memory_space<vmem>>, vector<1x16x256xbf16>,
    %194 = vector.extract_strided_slice %163 {offsets = [80, 0], sizes = [16, 256], strides = [1, 1]} : vector<256x256xf32> to vector<16x256xf32>
    %195 = arith.addf %194, %111 : vector<16x256xf32>
    %196 = arith.truncf %195 : vector<16x256xf32> to vector<16x256xbf16>
    %c0_89 = arith.constant 0 : index
    %c80 = arith.constant 80 : index
    %c0_90 = arith.constant 0 : index
    %197 = vector.load %arg12[%c0_89, %c80, %c0_90] : memref<1x256x256xbf16, #tpu.memory_space<vmem>>, vector<1x16x256xbf16>
    %198 = vector.shape_cast %197 : vector<1x16x256xbf16> to vector<16x256xbf16>
    %199 = vector.shape_cast %196 : vector<16x256xbf16> to vector<1x16x256xbf16>
    tpu.vector_store %arg12[%c0_89, %c80, %c0_90], %199 {strides = array<i32>} : memref<1x256x256xbf16, #tpu.memory_space<vmem>>, vector<1x16x256xbf16>,
    %200 = vector.extract_strided_slice %163 {offsets = [96, 0], sizes = [16, 256], strides = [1, 1]} : vector<256x256xf32> to vector<16x256xf32>
    %201 = arith.addf %200, %116 : vector<16x256xf32>
    %202 = arith.truncf %201 : vector<16x256xf32> to vector<16x256xbf16>
    %c0_91 = arith.constant 0 : index
    %c96 = arith.constant 96 : index
    %c0_92 = arith.constant 0 : index
    %203 = vector.load %arg12[%c0_91, %c96, %c0_92] : memref<1x256x256xbf16, #tpu.memory_space<vmem>>, vector<1x16x256xbf16>
    %204 = vector.shape_cast %203 : vector<1x16x256xbf16> to vector<16x256xbf16>
    %205 = vector.shape_cast %202 : vector<16x256xbf16> to vector<1x16x256xbf16>
    tpu.vector_store %arg12[%c0_91, %c96, %c0_92], %205 {strides = array<i32>} : memref<1x256x256xbf16, #tpu.memory_space<vmem>>, vector<1x16x256xbf16>,
    %206 = vector.extract_strided_slice %163 {offsets = [112, 0], sizes = [16, 256], strides = [1, 1]} : vector<256x256xf32> to vector<16x256xf32>
    %207 = arith.addf %206, %121 : vector<16x256xf32>
    %208 = arith.truncf %207 : vector<16x256xf32> to vector<16x256xbf16>
    %c0_93 = arith.constant 0 : index
    %c112 = arith.constant 112 : index
    %c0_94 = arith.constant 0 : index
    %209 = vector.load %arg12[%c0_93, %c112, %c0_94] : memref<1x256x256xbf16, #tpu.memory_space<vmem>>, vector<1x16x256xbf16>
    %210 = vector.shape_cast %209 : vector<1x16x256xbf16> to vector<16x256xbf16>
    %211 = vector.shape_cast %208 : vector<16x256xbf16> to vector<1x16x256xbf16>
    tpu.vector_store %arg12[%c0_93, %c112, %c0_94], %211 {strides = array<i32>} : memref<1x256x256xbf16, #tpu.memory_space<vmem>>, vector<1x16x256xbf16>,
    %212 = vector.extract_strided_slice %163 {offsets = [128, 0], sizes = [16, 256], strides = [1, 1]} : vector<256x256xf32> to vector<16x256xf32>
    %213 = arith.addf %212, %126 : vector<16x256xf32>
    %214 = arith.truncf %213 : vector<16x256xf32> to vector<16x256xbf16>
    %c0_95 = arith.constant 0 : index
    %c128 = arith.constant 128 : index
    %c0_96 = arith.constant 0 : index
    %215 = vector.load %arg12[%c0_95, %c128, %c0_96] : memref<1x256x256xbf16, #tpu.memory_space<vmem>>, vector<1x16x256xbf16>
    %216 = vector.shape_cast %215 : vector<1x16x256xbf16> to vector<16x256xbf16>
    %217 = vector.shape_cast %214 : vector<16x256xbf16> to vector<1x16x256xbf16>
    tpu.vector_store %arg12[%c0_95, %c128, %c0_96], %217 {strides = array<i32>} : memref<1x256x256xbf16, #tpu.memory_space<vmem>>, vector<1x16x256xbf16>,
    %218 = vector.extract_strided_slice %163 {offsets = [144, 0], sizes = [16, 256], strides = [1, 1]} : vector<256x256xf32> to vector<16x256xf32>
    %219 = arith.addf %218, %131 : vector<16x256xf32>
    %220 = arith.truncf %219 : vector<16x256xf32> to vector<16x256xbf16>
    %c0_97 = arith.constant 0 : index
    %c144 = arith.constant 144 : index
    %c0_98 = arith.constant 0 : index
    %221 = vector.load %arg12[%c0_97, %c144, %c0_98] : memref<1x256x256xbf16, #tpu.memory_space<vmem>>, vector<1x16x256xbf16>
    %222 = vector.shape_cast %221 : vector<1x16x256xbf16> to vector<16x256xbf16>
    %223 = vector.shape_cast %220 : vector<16x256xbf16> to vector<1x16x256xbf16>
    tpu.vector_store %arg12[%c0_97, %c144, %c0_98], %223 {strides = array<i32>} : memref<1x256x256xbf16, #tpu.memory_space<vmem>>, vector<1x16x256xbf16>,
    %224 = vector.extract_strided_slice %163 {offsets = [160, 0], sizes = [16, 256], strides = [1, 1]} : vector<256x256xf32> to vector<16x256xf32>
    %225 = arith.addf %224, %136 : vector<16x256xf32>
    %226 = arith.truncf %225 : vector<16x256xf32> to vector<16x256xbf16>
    %c0_99 = arith.constant 0 : index
    %c160 = arith.constant 160 : index
    %c0_100 = arith.constant 0 : index
    %227 = vector.load %arg12[%c0_99, %c160, %c0_100] : memref<1x256x256xbf16, #tpu.memory_space<vmem>>, vector<1x16x256xbf16>
    %228 = vector.shape_cast %227 : vector<1x16x256xbf16> to vector<16x256xbf16>
    %229 = vector.shape_cast %226 : vector<16x256xbf16> to vector<1x16x256xbf16>
    tpu.vector_store %arg12[%c0_99, %c160, %c0_100], %229 {strides = array<i32>} : memref<1x256x256xbf16, #tpu.memory_space<vmem>>, vector<1x16x256xbf16>,
    %230 = vector.extract_strided_slice %163 {offsets = [176, 0], sizes = [16, 256], strides = [1, 1]} : vector<256x256xf32> to vector<16x256xf32>
    %231 = arith.addf %230, %141 : vector<16x256xf32>
    %232 = arith.truncf %231 : vector<16x256xf32> to vector<16x256xbf16>
    %c0_101 = arith.constant 0 : index
    %c176 = arith.constant 176 : index
    %c0_102 = arith.constant 0 : index
    %233 = vector.load %arg12[%c0_101, %c176, %c0_102] : memref<1x256x256xbf16, #tpu.memory_space<vmem>>, vector<1x16x256xbf16>
    %234 = vector.shape_cast %233 : vector<1x16x256xbf16> to vector<16x256xbf16>
    %235 = vector.shape_cast %232 : vector<16x256xbf16> to vector<1x16x256xbf16>
    tpu.vector_store %arg12[%c0_101, %c176, %c0_102], %235 {strides = array<i32>} : memref<1x256x256xbf16, #tpu.memory_space<vmem>>, vector<1x16x256xbf16>,
    %236 = vector.extract_strided_slice %163 {offsets = [192, 0], sizes = [16, 256], strides = [1, 1]} : vector<256x256xf32> to vector<16x256xf32>
    %237 = arith.addf %236, %146 : vector<16x256xf32>
    %238 = arith.truncf %237 : vector<16x256xf32> to vector<16x256xbf16>
    %c0_103 = arith.constant 0 : index
    %c192 = arith.constant 192 : index
    %c0_104 = arith.constant 0 : index
    %239 = vector.load %arg12[%c0_103, %c192, %c0_104] : memref<1x256x256xbf16, #tpu.memory_space<vmem>>, vector<1x16x256xbf16>
    %240 = vector.shape_cast %239 : vector<1x16x256xbf16> to vector<16x256xbf16>
    %241 = vector.shape_cast %238 : vector<16x256xbf16> to vector<1x16x256xbf16>
    tpu.vector_store %arg12[%c0_103, %c192, %c0_104], %241 {strides = array<i32>} : memref<1x256x256xbf16, #tpu.memory_space<vmem>>, vector<1x16x256xbf16>,
    %242 = vector.extract_strided_slice %163 {offsets = [208, 0], sizes = [16, 256], strides = [1, 1]} : vector<256x256xf32> to vector<16x256xf32>
    %243 = arith.addf %242, %151 : vector<16x256xf32>
    %244 = arith.truncf %243 : vector<16x256xf32> to vector<16x256xbf16>
    %c0_105 = arith.constant 0 : index
    %c208 = arith.constant 208 : index
    %c0_106 = arith.constant 0 : index
    %245 = vector.load %arg12[%c0_105, %c208, %c0_106] : memref<1x256x256xbf16, #tpu.memory_space<vmem>>, vector<1x16x256xbf16>
    %246 = vector.shape_cast %245 : vector<1x16x256xbf16> to vector<16x256xbf16>
    %247 = vector.shape_cast %244 : vector<16x256xbf16> to vector<1x16x256xbf16>
    tpu.vector_store %arg12[%c0_105, %c208, %c0_106], %247 {strides = array<i32>} : memref<1x256x256xbf16, #tpu.memory_space<vmem>>, vector<1x16x256xbf16>,
    %248 = vector.extract_strided_slice %163 {offsets = [224, 0], sizes = [16, 256], strides = [1, 1]} : vector<256x256xf32> to vector<16x256xf32>
    %249 = arith.addf %248, %156 : vector<16x256xf32>
    %250 = arith.truncf %249 : vector<16x256xf32> to vector<16x256xbf16>
    %c0_107 = arith.constant 0 : index
    %c224 = arith.constant 224 : index
    %c0_108 = arith.constant 0 : index
    %251 = vector.load %arg12[%c0_107, %c224, %c0_108] : memref<1x256x256xbf16, #tpu.memory_space<vmem>>, vector<1x16x256xbf16>
    %252 = vector.shape_cast %251 : vector<1x16x256xbf16> to vector<16x256xbf16>
    %253 = vector.shape_cast %250 : vector<16x256xbf16> to vector<1x16x256xbf16>
    tpu.vector_store %arg12[%c0_107, %c224, %c0_108], %253 {strides = array<i32>} : memref<1x256x256xbf16, #tpu.memory_space<vmem>>, vector<1x16x256xbf16>,
    %254 = vector.extract_strided_slice %163 {offsets = [240, 0], sizes = [16, 256], strides = [1, 1]} : vector<256x256xf32> to vector<16x256xf32>
    %255 = arith.addf %254, %86 : vector<16x256xf32>
    %256 = arith.truncf %255 : vector<16x256xf32> to vector<16x256xbf16>
    %c0_109 = arith.constant 0 : index
    %c240 = arith.constant 240 : index
    %c0_110 = arith.constant 0 : index
    %257 = vector.load %arg12[%c0_109, %c240, %c0_110] : memref<1x256x256xbf16, #tpu.memory_space<vmem>>, vector<1x16x256xbf16>
    %258 = vector.shape_cast %257 : vector<1x16x256xbf16> to vector<16x256xbf16>
    %259 = vector.shape_cast %256 : vector<16x256xbf16> to vector<1x16x256xbf16>
    tpu.vector_store %arg12[%c0_109, %c240, %c0_110], %259 {strides = array<i32>} : memref<1x256x256xbf16, #tpu.memory_space<vmem>>, vector<1x16x256xbf16>,
    return
  }
  func.func @transform_0(%arg0: i32) -> (i32, i32, i32) {
    %c0_i32 = arith.constant 0 : i32
    %c0_i32_0 = arith.constant 0 : i32
    %c0_i32_1 = arith.constant 0 : i32
    return %arg0, %c0_i32, %c0_i32_0 : i32, i32, i32
  }
  func.func @transform_1(%arg0: i32) -> (i32, i32, i32) {
    %c0_i32 = arith.constant 0 : i32
    %c0_i32_0 = arith.constant 0 : i32
    %c0_i32_1 = arith.constant 0 : i32
    return %arg0, %c0_i32, %c0_i32_0 : i32, i32, i32
  }
  func.func @transform_2(%arg0: i32) -> (i32, i32, i32) {
    %c0_i32 = arith.constant 0 : i32
    %c0_i32_0 = arith.constant 0 : i32
    %c0_i32_1 = arith.constant 0 : i32
    return %arg0, %c0_i32, %c0_i32_0 : i32, i32, i32
  }
  func.func @transform_3(%arg0: i32) -> (i32, i32) {
    %c0_i32 = arith.constant 0 : i32
    %c0_i32_0 = arith.constant 0 : i32
    %c0_i32_1 = arith.constant 0 : i32
    return %c0_i32, %c0_i32_0 : i32, i32
  }
  func.func @transform_4(%arg0: i32) -> (i32, i32) {
    %c0_i32 = arith.constant 0 : i32
    %c0_i32_0 = arith.constant 0 : i32
    %c0_i32_1 = arith.constant 0 : i32
    return %c0_i32, %c0_i32_0 : i32, i32
  }
  func.func @transform_5(%arg0: i32) -> (i32, i32) {
    %c0_i32 = arith.constant 0 : i32
    %c0_i32_0 = arith.constant 0 : i32
    %c0_i32_1 = arith.constant 0 : i32
    return %c0_i32, %c0_i32_0 : i32, i32
  }
  func.func @transform_6(%arg0: i32) -> (i32, i32) {
    %c0_i32 = arith.constant 0 : i32
    %c0_i32_0 = arith.constant 0 : i32
    %c0_i32_1 = arith.constant 0 : i32
    return %c0_i32, %c0_i32_0 : i32, i32
  }
  func.func @transform_7(%arg0: i32) -> (i32, i32) {
    %c0_i32 = arith.constant 0 : i32
    %c0_i32_0 = arith.constant 0 : i32
    %c0_i32_1 = arith.constant 0 : i32
    return %c0_i32, %c0_i32_0 : i32, i32
  }
  func.func @transform_8(%arg0: i32) -> (i32, i32) {
    %c0_i32 = arith.constant 0 : i32
    %c0_i32_0 = arith.constant 0 : i32
    %c0_i32_1 = arith.constant 0 : i32
    return %c0_i32, %c0_i32_0 : i32, i32
  }
  func.func @transform_9(%arg0: i32) -> (i32, i32) {
    %c0_i32 = arith.constant 0 : i32
    %c0_i32_0 = arith.constant 0 : i32
    %c0_i32_1 = arith.constant 0 : i32
    return %c0_i32, %c0_i32_0 : i32, i32
  }
  func.func @transform_10(%arg0: i32) -> (i32, i32) {
    %c0_i32 = arith.constant 0 : i32
    %c0_i32_0 = arith.constant 0 : i32
    %c0_i32_1 = arith.constant 0 : i32
    return %c0_i32, %c0_i32_0 : i32, i32
  }
  func.func @transform_11(%arg0: i32) -> (i32, i32, i32) {
    %c0_i32 = arith.constant 0 : i32
    %c0_i32_0 = arith.constant 0 : i32
    %c0_i32_1 = arith.constant 0 : i32
    return %arg0, %c0_i32, %c0_i32_0 : i32, i32, i32
  }
}

module attributes {stable_mosaic.version = 11 : i64} {
  func.func @kernel(%arg0: i32, %arg1: memref<1x16x128xbf16, #tpu.memory_space<vmem>>, %arg2: memref<1x64x64xbf16, #tpu.memory_space<vmem>>, %arg3: memref<1x256x32xbf16, #tpu.memory_space<vmem>>, %arg4: memref<128x256xbf16, #tpu.memory_space<vmem>>, %arg5: memref<1x256xf32, #tpu.memory_space<vmem>>, %arg6: memref<64x256xbf16, #tpu.memory_space<vmem>>, %arg7: memref<1x256xf32, #tpu.memory_space<vmem>>, %arg8: memref<32x256xbf16, #tpu.memory_space<vmem>>, %arg9: memref<1x256xf32, #tpu.memory_space<vmem>>, %arg10: memref<8x4xbf16, #tpu.memory_space<vmem>>, %arg11: memref<16x8xbf16, #tpu.memory_space<vmem>>, %arg12: memref<1x256x256xbf16, #tpu.memory_space<vmem>>) attributes {dimension_semantics = [#tpu.dimension_semantics<parallel>], iteration_bounds = array<i64: 2>, scalar_prefetch = 0 : i64, scratch_operands = 0 : i64, tpu.core_type = #tpu.core_type<tc>, window_params = [{transform_indices = @transform_0, window_bounds = array<i64: 1, 16, 128>}, {transform_indices = @transform_1, window_bounds = array<i64: 1, 64, 64>}, {transform_indices = @transform_2, window_bounds = array<i64: 1, 256, 32>}, {pipeline_mode = #tpu.pipeline_mode<synchronous>, transform_indices = @transform_3, window_bounds = array<i64: 128, 256>}, {pipeline_mode = #tpu.pipeline_mode<synchronous>, transform_indices = @transform_4, window_bounds = array<i64: 1, 256>}, {pipeline_mode = #tpu.pipeline_mode<synchronous>, transform_indices = @transform_5, window_bounds = array<i64: 64, 256>}, {pipeline_mode = #tpu.pipeline_mode<synchronous>, transform_indices = @transform_6, window_bounds = array<i64: 1, 256>}, {pipeline_mode = #tpu.pipeline_mode<synchronous>, transform_indices = @transform_7, window_bounds = array<i64: 32, 256>}, {pipeline_mode = #tpu.pipeline_mode<synchronous>, transform_indices = @transform_8, window_bounds = array<i64: 1, 256>}, {pipeline_mode = #tpu.pipeline_mode<synchronous>, transform_indices = @transform_9, window_bounds = array<i64: 8, 4>}, {pipeline_mode = #tpu.pipeline_mode<synchronous>, transform_indices = @transform_10, window_bounds = array<i64: 16, 8>}, {transform_indices = @transform_11, window_bounds = array<i64: 1, 256, 256>}]} {
    %c0 = arith.constant 0 : index
    %c0_0 = arith.constant 0 : index
    %0 = vector.load %arg10[%c0, %c0_0] : memref<8x4xbf16, #tpu.memory_space<vmem>>, vector<8x4xbf16>
    %c0_1 = arith.constant 0 : index
    %c0_2 = arith.constant 0 : index
    %1 = vector.load %arg11[%c0_1, %c0_2] : memref<16x8xbf16, #tpu.memory_space<vmem>>, vector<16x8xbf16>
    %c0_3 = arith.constant 0 : index
    %c0_4 = arith.constant 0 : index
    %c0_5 = arith.constant 0 : index
    %2 = vector.load %arg1[%c0_3, %c0_4, %c0_5] : memref<1x16x128xbf16, #tpu.memory_space<vmem>>, vector<1x16x128xbf16>
    %3 = vector.shape_cast %2 : vector<1x16x128xbf16> to vector<16x128xbf16>
    %c0_6 = arith.constant 0 : index
    %c0_7 = arith.constant 0 : index
    %4 = vector.load %arg4[%c0_6, %c0_7] : memref<128x256xbf16, #tpu.memory_space<vmem>>, vector<128x256xbf16>
    %cst = arith.constant dense<0.000000e+00> : vector<16x256xf32>
    %5 = tpu.matmul %3, %4, %cst {dimension_numbers = #tpu.dot_dimension_numbers<[1], [0], [0], [1], [0, 0, 1, 1], [], []>} : vector<16x128xbf16>, vector<128x256xbf16>, vector<16x256xf32> -> vector<16x256xf32>
    %c0_8 = arith.constant 0 : index
    %c0_9 = arith.constant 0 : index
    %6 = vector.load %arg5[%c0_8, %c0_9] : memref<1x256xf32, #tpu.memory_space<vmem>>, vector<1x256xf32>
    %7 = vector.broadcast %6 : vector<1x256xf32> to vector<16x256xf32>
    %8 = arith.addf %5, %7 : vector<16x256xf32>
    %9 = arith.truncf %8 : vector<16x256xf32> to vector<16x256xbf16>
    %10 = vector.extract_strided_slice %9 {offsets = [0, 0], sizes = [4, 256], strides = [1, 1]} : vector<16x256xbf16> to vector<4x256xbf16>
    %11 = vector.extract_strided_slice %9 {offsets = [4, 0], sizes = [4, 256], strides = [1, 1]} : vector<16x256xbf16> to vector<4x256xbf16>
    %12 = vector.extract_strided_slice %9 {offsets = [8, 0], sizes = [4, 256], strides = [1, 1]} : vector<16x256xbf16> to vector<4x256xbf16>
    %13 = vector.extract_strided_slice %9 {offsets = [12, 0], sizes = [4, 256], strides = [1, 1]} : vector<16x256xbf16> to vector<4x256xbf16>
    %cst_10 = arith.constant dense<0.000000e+00> : vector<8x256xf32>
    %14 = tpu.matmul %0, %10, %cst_10 {dimension_numbers = #tpu.dot_dimension_numbers<[1], [0], [0], [1], [0, 0, 1, 1], [], []>} : vector<8x4xbf16>, vector<4x256xbf16>, vector<8x256xf32> -> vector<8x256xf32>
    %cst_11 = arith.constant dense<0.000000e+00> : vector<8x256xf32>
    %15 = tpu.matmul %0, %11, %cst_11 {dimension_numbers = #tpu.dot_dimension_numbers<[1], [0], [0], [1], [0, 0, 1, 1], [], []>} : vector<8x4xbf16>, vector<4x256xbf16>, vector<8x256xf32> -> vector<8x256xf32>
    %cst_12 = arith.constant dense<0.000000e+00> : vector<8x256xf32>
    %16 = tpu.matmul %0, %12, %cst_12 {dimension_numbers = #tpu.dot_dimension_numbers<[1], [0], [0], [1], [0, 0, 1, 1], [], []>} : vector<8x4xbf16>, vector<4x256xbf16>, vector<8x256xf32> -> vector<8x256xf32>
    %cst_13 = arith.constant dense<0.000000e+00> : vector<8x256xf32>
    %17 = tpu.matmul %0, %13, %cst_13 {dimension_numbers = #tpu.dot_dimension_numbers<[1], [0], [0], [1], [0, 0, 1, 1], [], []>} : vector<8x4xbf16>, vector<4x256xbf16>, vector<8x256xf32> -> vector<8x256xf32>
    %cst_14 = arith.constant 0.571428597 : f32
    %18 = vector.broadcast %cst_14 : f32 to vector<8x256xf32>
    %19 = arith.mulf %18, %14 : vector<8x256xf32>
    %cst_15 = arith.constant 0.428571433 : f32
    %20 = vector.broadcast %cst_15 : f32 to vector<8x256xf32>
    %21 = arith.mulf %20, %15 : vector<8x256xf32>
    %22 = arith.addf %19, %21 : vector<8x256xf32>
    %cst_16 = arith.constant 0.142857149 : f32
    %23 = vector.broadcast %cst_16 : f32 to vector<8x256xf32>
    %24 = arith.mulf %23, %14 : vector<8x256xf32>
    %cst_17 = arith.constant 0.857142865 : f32
    %25 = vector.broadcast %cst_17 : f32 to vector<8x256xf32>
    %26 = arith.mulf %25, %15 : vector<8x256xf32>
    %27 = arith.addf %24, %26 : vector<8x256xf32>
    %cst_18 = arith.constant 0.714285731 : f32
    %28 = vector.broadcast %cst_18 : f32 to vector<8x256xf32>
    %29 = arith.mulf %28, %15 : vector<8x256xf32>
    %cst_19 = arith.constant 0.285714298 : f32
    %30 = vector.broadcast %cst_19 : f32 to vector<8x256xf32>
    %31 = arith.mulf %30, %16 : vector<8x256xf32>
    %32 = arith.addf %29, %31 : vector<8x256xf32>
    %cst_20 = arith.constant 0.285714298 : f32
    %33 = vector.broadcast %cst_20 : f32 to vector<8x256xf32>
    %34 = arith.mulf %33, %15 : vector<8x256xf32>
    %cst_21 = arith.constant 0.714285731 : f32
    %35 = vector.broadcast %cst_21 : f32 to vector<8x256xf32>
    %36 = arith.mulf %35, %16 : vector<8x256xf32>
    %37 = arith.addf %34, %36 : vector<8x256xf32>
    %cst_22 = arith.constant 0.857142865 : f32
    %38 = vector.broadcast %cst_22 : f32 to vector<8x256xf32>
    %39 = arith.mulf %38, %16 : vector<8x256xf32>
    %cst_23 = arith.constant 0.142857149 : f32
    %40 = vector.broadcast %cst_23 : f32 to vector<8x256xf32>
    %41 = arith.mulf %40, %17 : vector<8x256xf32>
    %42 = arith.addf %39, %41 : vector<8x256xf32>
    %cst_24 = arith.constant 0.428571433 : f32
    %43 = vector.broadcast %cst_24 : f32 to vector<8x256xf32>
    %44 = arith.mulf %43, %16 : vector<8x256xf32>
    %cst_25 = arith.constant 0.571428597 : f32
    %45 = vector.broadcast %cst_25 : f32 to vector<8x256xf32>
    %46 = arith.mulf %45, %17 : vector<8x256xf32>
    %47 = arith.addf %44, %46 : vector<8x256xf32>
    %c0_26 = arith.constant 0 : index
    %c0_27 = arith.constant 0 : index
    %c0_28 = arith.constant 0 : index
    %48 = vector.load %arg2[%c0_26, %c0_27, %c0_28] : memref<1x64x64xbf16, #tpu.memory_space<vmem>>, vector<1x64x64xbf16>
    %49 = vector.shape_cast %48 : vector<1x64x64xbf16> to vector<64x64xbf16>
    %c0_29 = arith.constant 0 : index
    %c0_30 = arith.constant 0 : index
    %50 = vector.load %arg6[%c0_29, %c0_30] : memref<64x256xbf16, #tpu.memory_space<vmem>>, vector<64x256xbf16>
    %cst_31 = arith.constant dense<0.000000e+00> : vector<64x256xf32>
    %51 = tpu.matmul %49, %50, %cst_31 {dimension_numbers = #tpu.dot_dimension_numbers<[1], [0], [0], [1], [0, 0, 1, 1], [], []>} : vector<64x64xbf16>, vector<64x256xbf16>, vector<64x256xf32> -> vector<64x256xf32>
    %c0_32 = arith.constant 0 : index
    %c0_33 = arith.constant 0 : index
    %52 = vector.load %arg7[%c0_32, %c0_33] : memref<1x256xf32, #tpu.memory_space<vmem>>, vector<1x256xf32>
    %53 = vector.broadcast %52 : vector<1x256xf32> to vector<64x256xf32>
    %54 = arith.addf %51, %53 : vector<64x256xf32>
    %55 = vector.extract_strided_slice %54 {offsets = [0, 0], sizes = [8, 256], strides = [1, 1]} : vector<64x256xf32> to vector<8x256xf32>
    %56 = arith.addf %55, %14 : vector<8x256xf32>
    %57 = arith.truncf %56 : vector<8x256xf32> to vector<8x256xbf16>
    %58 = vector.extract_strided_slice %54 {offsets = [8, 0], sizes = [8, 256], strides = [1, 1]} : vector<64x256xf32> to vector<8x256xf32>
    %59 = arith.addf %58, %22 : vector<8x256xf32>
    %60 = arith.truncf %59 : vector<8x256xf32> to vector<8x256xbf16>
    %61 = vector.extract_strided_slice %54 {offsets = [16, 0], sizes = [8, 256], strides = [1, 1]} : vector<64x256xf32> to vector<8x256xf32>
    %62 = arith.addf %61, %27 : vector<8x256xf32>
    %63 = arith.truncf %62 : vector<8x256xf32> to vector<8x256xbf16>
    %64 = vector.extract_strided_slice %54 {offsets = [24, 0], sizes = [8, 256], strides = [1, 1]} : vector<64x256xf32> to vector<8x256xf32>
    %65 = arith.addf %64, %32 : vector<8x256xf32>
    %66 = arith.truncf %65 : vector<8x256xf32> to vector<8x256xbf16>
    %67 = vector.extract_strided_slice %54 {offsets = [32, 0], sizes = [8, 256], strides = [1, 1]} : vector<64x256xf32> to vector<8x256xf32>
    %68 = arith.addf %67, %37 : vector<8x256xf32>
    %69 = arith.truncf %68 : vector<8x256xf32> to vector<8x256xbf16>
    %70 = vector.extract_strided_slice %54 {offsets = [40, 0], sizes = [8, 256], strides = [1, 1]} : vector<64x256xf32> to vector<8x256xf32>
    %71 = arith.addf %70, %42 : vector<8x256xf32>
    %72 = arith.truncf %71 : vector<8x256xf32> to vector<8x256xbf16>
    %73 = vector.extract_strided_slice %54 {offsets = [48, 0], sizes = [8, 256], strides = [1, 1]} : vector<64x256xf32> to vector<8x256xf32>
    %74 = arith.addf %73, %47 : vector<8x256xf32>
    %75 = arith.truncf %74 : vector<8x256xf32> to vector<8x256xbf16>
    %76 = vector.extract_strided_slice %54 {offsets = [56, 0], sizes = [8, 256], strides = [1, 1]} : vector<64x256xf32> to vector<8x256xf32>
    %77 = arith.addf %76, %17 : vector<8x256xf32>
    %78 = arith.truncf %77 : vector<8x256xf32> to vector<8x256xbf16>
    %cst_34 = arith.constant dense<0.000000e+00> : vector<16x256xf32>
    %79 = tpu.matmul %1, %57, %cst_34 {dimension_numbers = #tpu.dot_dimension_numbers<[1], [0], [0], [1], [0, 0, 1, 1], [], []>} : vector<16x8xbf16>, vector<8x256xbf16>, vector<16x256xf32> -> vector<16x256xf32>
    %cst_35 = arith.constant dense<0.000000e+00> : vector<16x256xf32>
    %80 = tpu.matmul %1, %60, %cst_35 {dimension_numbers = #tpu.dot_dimension_numbers<[1], [0], [0], [1], [0, 0, 1, 1], [], []>} : vector<16x8xbf16>, vector<8x256xbf16>, vector<16x256xf32> -> vector<16x256xf32>
    %cst_36 = arith.constant dense<0.000000e+00> : vector<16x256xf32>
    %81 = tpu.matmul %1, %63, %cst_36 {dimension_numbers = #tpu.dot_dimension_numbers<[1], [0], [0], [1], [0, 0, 1, 1], [], []>} : vector<16x8xbf16>, vector<8x256xbf16>, vector<16x256xf32> -> vector<16x256xf32>
    %cst_37 = arith.constant dense<0.000000e+00> : vector<16x256xf32>
    %82 = tpu.matmul %1, %66, %cst_37 {dimension_numbers = #tpu.dot_dimension_numbers<[1], [0], [0], [1], [0, 0, 1, 1], [], []>} : vector<16x8xbf16>, vector<8x256xbf16>, vector<16x256xf32> -> vector<16x256xf32>
    %cst_38 = arith.constant dense<0.000000e+00> : vector<16x256xf32>
    %83 = tpu.matmul %1, %69, %cst_38 {dimension_numbers = #tpu.dot_dimension_numbers<[1], [0], [0], [1], [0, 0, 1, 1], [], []>} : vector<16x8xbf16>, vector<8x256xbf16>, vector<16x256xf32> -> vector<16x256xf32>
    %cst_39 = arith.constant dense<0.000000e+00> : vector<16x256xf32>
    %84 = tpu.matmul %1, %72, %cst_39 {dimension_numbers = #tpu.dot_dimension_numbers<[1], [0], [0], [1], [0, 0, 1, 1], [], []>} : vector<16x8xbf16>, vector<8x256xbf16>, vector<16x256xf32> -> vector<16x256xf32>
    %cst_40 = arith.constant dense<0.000000e+00> : vector<16x256xf32>
    %85 = tpu.matmul %1, %75, %cst_40 {dimension_numbers = #tpu.dot_dimension_numbers<[1], [0], [0], [1], [0, 0, 1, 1], [], []>} : vector<16x8xbf16>, vector<8x256xbf16>, vector<16x256xf32> -> vector<16x256xf32>
    %cst_41 = arith.constant dense<0.000000e+00> : vector<16x256xf32>
    %86 = tpu.matmul %1, %78, %cst_41 {dimension_numbers = #tpu.dot_dimension_numbers<[1], [0], [0], [1], [0, 0, 1, 1], [], []>} : vector<16x8xbf16>, vector<8x256xbf16>, vector<16x256xf32> -> vector<16x256xf32>
    %cst_42 = arith.constant 0.533333361 : f32
    %87 = vector.broadcast %cst_42 : f32 to vector<16x256xf32>
    %88 = arith.mulf %87, %79 : vector<16x256xf32>
    %cst_43 = arith.constant 0.466666669 : f32
    %89 = vector.broadcast %cst_43 : f32 to vector<16x256xf32>
    %90 = arith.mulf %89, %80 : vector<16x256xf32>
    %91 = arith.addf %88, %90 : vector<16x256xf32>
    %cst_44 = arith.constant 0.0666666701 : f32
    %92 = vector.broadcast %cst_44 : f32 to vector<16x256xf32>
    %93 = arith.mulf %92, %79 : vector<16x256xf32>
    %cst_45 = arith.constant 0.933333337 : f32
    %94 = vector.broadcast %cst_45 : f32 to vector<16x256xf32>
    %95 = arith.mulf %94, %80 : vector<16x256xf32>
    %96 = arith.addf %93, %95 : vector<16x256xf32>
    %cst_46 = arith.constant 6.000000e-01 : f32
    %97 = vector.broadcast %cst_46 : f32 to vector<16x256xf32>
    %98 = arith.mulf %97, %80 : vector<16x256xf32>
    %cst_47 = arith.constant 4.000000e-01 : f32
    %99 = vector.broadcast %cst_47 : f32 to vector<16x256xf32>
    %100 = arith.mulf %99, %81 : vector<16x256xf32>
    %101 = arith.addf %98, %100 : vector<16x256xf32>
    %cst_48 = arith.constant 0.13333334 : f32
    %102 = vector.broadcast %cst_48 : f32 to vector<16x256xf32>
    %103 = arith.mulf %102, %80 : vector<16x256xf32>
    %cst_49 = arith.constant 0.866666674 : f32
    %104 = vector.broadcast %cst_49 : f32 to vector<16x256xf32>
    %105 = arith.mulf %104, %81 : vector<16x256xf32>
    %106 = arith.addf %103, %105 : vector<16x256xf32>
    %cst_50 = arith.constant 0.666666686 : f32
    %107 = vector.broadcast %cst_50 : f32 to vector<16x256xf32>
    %108 = arith.mulf %107, %81 : vector<16x256xf32>
    %cst_51 = arith.constant 0.333333343 : f32
    %109 = vector.broadcast %cst_51 : f32 to vector<16x256xf32>
    %110 = arith.mulf %109, %82 : vector<16x256xf32>
    %111 = arith.addf %108, %110 : vector<16x256xf32>
    %cst_52 = arith.constant 2.000000e-01 : f32
    %112 = vector.broadcast %cst_52 : f32 to vector<16x256xf32>
    %113 = arith.mulf %112, %81 : vector<16x256xf32>
    %cst_53 = arith.constant 8.000000e-01 : f32
    %114 = vector.broadcast %cst_53 : f32 to vector<16x256xf32>
    %115 = arith.mulf %114, %82 : vector<16x256xf32>
    %116 = arith.addf %113, %115 : vector<16x256xf32>
    %cst_54 = arith.constant 0.733333349 : f32
    %117 = vector.broadcast %cst_54 : f32 to vector<16x256xf32>
    %118 = arith.mulf %117, %82 : vector<16x256xf32>
    %cst_55 = arith.constant 0.266666681 : f32
    %119 = vector.broadcast %cst_55 : f32 to vector<16x256xf32>
    %120 = arith.mulf %119, %83 : vector<16x256xf32>
    %121 = arith.addf %118, %120 : vector<16x256xf32>
    %cst_56 = arith.constant 0.266666681 : f32
    %122 = vector.broadcast %cst_56 : f32 to vector<16x256xf32>
    %123 = arith.mulf %122, %82 : vector<16x256xf32>
    %cst_57 = arith.constant 0.733333349 : f32
    %124 = vector.broadcast %cst_57 : f32 to vector<16x256xf32>
    %125 = arith.mulf %124, %83 : vector<16x256xf32>
    %126 = arith.addf %123, %125 : vector<16x256xf32>
    %cst_58 = arith.constant 8.000000e-01 : f32
    %127 = vector.broadcast %cst_58 : f32 to vector<16x256xf32>
    %128 = arith.mulf %127, %83 : vector<16x256xf32>
    %cst_59 = arith.constant 2.000000e-01 : f32
    %129 = vector.broadcast %cst_59 : f32 to vector<16x256xf32>
    %130 = arith.mulf %129, %84 : vector<16x256xf32>
    %131 = arith.addf %128, %130 : vector<16x256xf32>
    %cst_60 = arith.constant 0.333333343 : f32
    %132 = vector.broadcast %cst_60 : f32 to vector<16x256xf32>
    %133 = arith.mulf %132, %83 : vector<16x256xf32>
    %cst_61 = arith.constant 0.666666686 : f32
    %134 = vector.broadcast %cst_61 : f32 to vector<16x256xf32>
    %135 = arith.mulf %134, %84 : vector<16x256xf32>
    %136 = arith.addf %133, %135 : vector<16x256xf32>
    %cst_62 = arith.constant 0.866666674 : f32
    %137 = vector.broadcast %cst_62 : f32 to vector<16x256xf32>
    %138 = arith.mulf %137, %84 : vector<16x256xf32>
    %cst_63 = arith.constant 0.13333334 : f32
    %139 = vector.broadcast %cst_63 : f32 to vector<16x256xf32>
    %140 = arith.mulf %139, %85 : vector<16x256xf32>
    %141 = arith.addf %138, %140 : vector<16x256xf32>
    %cst_64 = arith.constant 4.000000e-01 : f32
    %142 = vector.broadcast %cst_64 : f32 to vector<16x256xf32>
    %143 = arith.mulf %142, %84 : vector<16x256xf32>
    %cst_65 = arith.constant 6.000000e-01 : f32
    %144 = vector.broadcast %cst_65 : f32 to vector<16x256xf32>
    %145 = arith.mulf %144, %85 : vector<16x256xf32>
    %146 = arith.addf %143, %145 : vector<16x256xf32>
    %cst_66 = arith.constant 0.933333337 : f32
    %147 = vector.broadcast %cst_66 : f32 to vector<16x256xf32>
    %148 = arith.mulf %147, %85 : vector<16x256xf32>
    %cst_67 = arith.constant 0.0666666701 : f32
    %149 = vector.broadcast %cst_67 : f32 to vector<16x256xf32>
    %150 = arith.mulf %149, %86 : vector<16x256xf32>
    %151 = arith.addf %148, %150 : vector<16x256xf32>
    %cst_68 = arith.constant 0.466666669 : f32
    %152 = vector.broadcast %cst_68 : f32 to vector<16x256xf32>
    %153 = arith.mulf %152, %85 : vector<16x256xf32>
    %cst_69 = arith.constant 0.533333361 : f32
    %154 = vector.broadcast %cst_69 : f32 to vector<16x256xf32>
    %155 = arith.mulf %154, %86 : vector<16x256xf32>
    %156 = arith.addf %153, %155 : vector<16x256xf32>
    %c0_70 = arith.constant 0 : index
    %c0_71 = arith.constant 0 : index
    %c0_72 = arith.constant 0 : index
    %157 = vector.load %arg3[%c0_70, %c0_71, %c0_72] : memref<1x256x32xbf16, #tpu.memory_space<vmem>>, vector<1x256x32xbf16>
    %158 = vector.shape_cast %157 : vector<1x256x32xbf16> to vector<256x32xbf16>
    %c0_73 = arith.constant 0 : index
    %c0_74 = arith.constant 0 : index
    %159 = vector.load %arg8[%c0_73, %c0_74] : memref<32x256xbf16, #tpu.memory_space<vmem>>, vector<32x256xbf16>
    %cst_75 = arith.constant dense<0.000000e+00> : vector<256x256xf32>
    %160 = tpu.matmul %158, %159, %cst_75 {dimension_numbers = #tpu.dot_dimension_numbers<[1], [0], [0], [1], [0, 0, 1, 1], [], []>} : vector<256x32xbf16>, vector<32x256xbf16>, vector<256x256xf32> -> vector<256x256xf32>
    %c0_76 = arith.constant 0 : index
    %c0_77 = arith.constant 0 : index
    %161 = vector.load %arg9[%c0_76, %c0_77] : memref<1x256xf32, #tpu.memory_space<vmem>>, vector<1x256xf32>
    %162 = vector.broadcast %161 : vector<1x256xf32> to vector<256x256xf32>
    %163 = arith.addf %160, %162 : vector<256x256xf32>
    %164 = vector.extract_strided_slice %163 {offsets = [0, 0], sizes = [16, 256], strides = [1, 1]} : vector<256x256xf32> to vector<16x256xf32>
    %165 = arith.addf %164, %79 : vector<16x256xf32>
    %166 = arith.truncf %165 : vector<16x256xf32> to vector<16x256xbf16>
    %c0_78 = arith.constant 0 : index
    %c0_79 = arith.constant 0 : index
    %c0_80 = arith.constant 0 : index
    %167 = vector.load %arg12[%c0_78, %c0_79, %c0_80] : memref<1x256x256xbf16, #tpu.memory_space<vmem>>, vector<1x16x256xbf16>
    %168 = vector.shape_cast %167 : vector<1x16x256xbf16> to vector<16x256xbf16>
    %169 = vector.shape_cast %166 : vector<16x256xbf16> to vector<1x16x256xbf16>
    tpu.vector_store %arg12[%c0_78, %c0_79, %c0_80], %169 {strides = array<i32>} : memref<1x256x256xbf16, #tpu.memory_space<vmem>>, vector<1x16x256xbf16>,
    %170 = vector.extract_strided_slice %163 {offsets = [16, 0], sizes = [16, 256], strides = [1, 1]} : vector<256x256xf32> to vector<16x256xf32>
    %171 = arith.addf %170, %91 : vector<16x256xf32>
    %172 = arith.truncf %171 : vector<16x256xf32> to vector<16x256xbf16>
    %c0_81 = arith.constant 0 : index
    %c16 = arith.constant 16 : index
    %c0_82 = arith.constant 0 : index
    %173 = vector.load %arg12[%c0_81, %c16, %c0_82] : memref<1x256x256xbf16, #tpu.memory_space<vmem>>, vector<1x16x256xbf16>
    %174 = vector.shape_cast %173 : vector<1x16x256xbf16> to vector<16x256xbf16>
    %175 = vector.shape_cast %172 : vector<16x256xbf16> to vector<1x16x256xbf16>
    tpu.vector_store %arg12[%c0_81, %c16, %c0_82], %175 {strides = array<i32>} : memref<1x256x256xbf16, #tpu.memory_space<vmem>>, vector<1x16x256xbf16>,
    %176 = vector.extract_strided_slice %163 {offsets = [32, 0], sizes = [16, 256], strides = [1, 1]} : vector<256x256xf32> to vector<16x256xf32>
    %177 = arith.addf %176, %96 : vector<16x256xf32>
    %178 = arith.truncf %177 : vector<16x256xf32> to vector<16x256xbf16>
    %c0_83 = arith.constant 0 : index
    %c32 = arith.constant 32 : index
    %c0_84 = arith.constant 0 : index
    %179 = vector.load %arg12[%c0_83, %c32, %c0_84] : memref<1x256x256xbf16, #tpu.memory_space<vmem>>, vector<1x16x256xbf16>
    %180 = vector.shape_cast %179 : vector<1x16x256xbf16> to vector<16x256xbf16>
    %181 = vector.shape_cast %178 : vector<16x256xbf16> to vector<1x16x256xbf16>
    tpu.vector_store %arg12[%c0_83, %c32, %c0_84], %181 {strides = array<i32>} : memref<1x256x256xbf16, #tpu.memory_space<vmem>>, vector<1x16x256xbf16>,
    %182 = vector.extract_strided_slice %163 {offsets = [48, 0], sizes = [16, 256], strides = [1, 1]} : vector<256x256xf32> to vector<16x256xf32>
    %183 = arith.addf %182, %101 : vector<16x256xf32>
    %184 = arith.truncf %183 : vector<16x256xf32> to vector<16x256xbf16>
    %c0_85 = arith.constant 0 : index
    %c48 = arith.constant 48 : index
    %c0_86 = arith.constant 0 : index
    %185 = vector.load %arg12[%c0_85, %c48, %c0_86] : memref<1x256x256xbf16, #tpu.memory_space<vmem>>, vector<1x16x256xbf16>
    %186 = vector.shape_cast %185 : vector<1x16x256xbf16> to vector<16x256xbf16>
    %187 = vector.shape_cast %184 : vector<16x256xbf16> to vector<1x16x256xbf16>
    tpu.vector_store %arg12[%c0_85, %c48, %c0_86], %187 {strides = array<i32>} : memref<1x256x256xbf16, #tpu.memory_space<vmem>>, vector<1x16x256xbf16>,
    %188 = vector.extract_strided_slice %163 {offsets = [64, 0], sizes = [16, 256], strides = [1, 1]} : vector<256x256xf32> to vector<16x256xf32>
    %189 = arith.addf %188, %106 : vector<16x256xf32>
    %190 = arith.truncf %189 : vector<16x256xf32> to vector<16x256xbf16>
    %c0_87 = arith.constant 0 : index
    %c64 = arith.constant 64 : index
    %c0_88 = arith.constant 0 : index
    %191 = vector.load %arg12[%c0_87, %c64, %c0_88] : memref<1x256x256xbf16, #tpu.memory_space<vmem>>, vector<1x16x256xbf16>
    %192 = vector.shape_cast %191 : vector<1x16x256xbf16> to vector<16x256xbf16>
    %193 = vector.shape_cast %190 : vector<16x256xbf16> to vector<1x16x256xbf16>
    tpu.vector_store %arg12[%c0_87, %c64, %c0_88], %193 {strides = array<i32>} : memref<1x256x256xbf16, #tpu.memory_space<vmem>>, vector<1x16x256xbf16>,
    %194 = vector.extract_strided_slice %163 {offsets = [80, 0], sizes = [16, 256], strides = [1, 1]} : vector<256x256xf32> to vector<16x256xf32>
    %195 = arith.addf %194, %111 : vector<16x256xf32>
    %196 = arith.truncf %195 : vector<16x256xf32> to vector<16x256xbf16>
    %c0_89 = arith.constant 0 : index
    %c80 = arith.constant 80 : index
    %c0_90 = arith.constant 0 : index
    %197 = vector.load %arg12[%c0_89, %c80, %c0_90] : memref<1x256x256xbf16, #tpu.memory_space<vmem>>, vector<1x16x256xbf16>
    %198 = vector.shape_cast %197 : vector<1x16x256xbf16> to vector<16x256xbf16>
    %199 = vector.shape_cast %196 : vector<16x256xbf16> to vector<1x16x256xbf16>
    tpu.vector_store %arg12[%c0_89, %c80, %c0_90], %199 {strides = array<i32>} : memref<1x256x256xbf16, #tpu.memory_space<vmem>>, vector<1x16x256xbf16>,
    %200 = vector.extract_strided_slice %163 {offsets = [96, 0], sizes = [16, 256], strides = [1, 1]} : vector<256x256xf32> to vector<16x256xf32>
    %201 = arith.addf %200, %116 : vector<16x256xf32>
    %202 = arith.truncf %201 : vector<16x256xf32> to vector<16x256xbf16>
    %c0_91 = arith.constant 0 : index
    %c96 = arith.constant 96 : index
    %c0_92 = arith.constant 0 : index
    %203 = vector.load %arg12[%c0_91, %c96, %c0_92] : memref<1x256x256xbf16, #tpu.memory_space<vmem>>, vector<1x16x256xbf16>
    %204 = vector.shape_cast %203 : vector<1x16x256xbf16> to vector<16x256xbf16>
    %205 = vector.shape_cast %202 : vector<16x256xbf16> to vector<1x16x256xbf16>
    tpu.vector_store %arg12[%c0_91, %c96, %c0_92], %205 {strides = array<i32>} : memref<1x256x256xbf16, #tpu.memory_space<vmem>>, vector<1x16x256xbf16>,
    %206 = vector.extract_strided_slice %163 {offsets = [112, 0], sizes = [16, 256], strides = [1, 1]} : vector<256x256xf32> to vector<16x256xf32>
    %207 = arith.addf %206, %121 : vector<16x256xf32>
    %208 = arith.truncf %207 : vector<16x256xf32> to vector<16x256xbf16>
    %c0_93 = arith.constant 0 : index
    %c112 = arith.constant 112 : index
    %c0_94 = arith.constant 0 : index
    %209 = vector.load %arg12[%c0_93, %c112, %c0_94] : memref<1x256x256xbf16, #tpu.memory_space<vmem>>, vector<1x16x256xbf16>
    %210 = vector.shape_cast %209 : vector<1x16x256xbf16> to vector<16x256xbf16>
    %211 = vector.shape_cast %208 : vector<16x256xbf16> to vector<1x16x256xbf16>
    tpu.vector_store %arg12[%c0_93, %c112, %c0_94], %211 {strides = array<i32>} : memref<1x256x256xbf16, #tpu.memory_space<vmem>>, vector<1x16x256xbf16>,
    %212 = vector.extract_strided_slice %163 {offsets = [128, 0], sizes = [16, 256], strides = [1, 1]} : vector<256x256xf32> to vector<16x256xf32>
    %213 = arith.addf %212, %126 : vector<16x256xf32>
    %214 = arith.truncf %213 : vector<16x256xf32> to vector<16x256xbf16>
    %c0_95 = arith.constant 0 : index
    %c128 = arith.constant 128 : index
    %c0_96 = arith.constant 0 : index
    %215 = vector.load %arg12[%c0_95, %c128, %c0_96] : memref<1x256x256xbf16, #tpu.memory_space<vmem>>, vector<1x16x256xbf16>
    %216 = vector.shape_cast %215 : vector<1x16x256xbf16> to vector<16x256xbf16>
    %217 = vector.shape_cast %214 : vector<16x256xbf16> to vector<1x16x256xbf16>
    tpu.vector_store %arg12[%c0_95, %c128, %c0_96], %217 {strides = array<i32>} : memref<1x256x256xbf16, #tpu.memory_space<vmem>>, vector<1x16x256xbf16>,
    %218 = vector.extract_strided_slice %163 {offsets = [144, 0], sizes = [16, 256], strides = [1, 1]} : vector<256x256xf32> to vector<16x256xf32>
    %219 = arith.addf %218, %131 : vector<16x256xf32>
    %220 = arith.truncf %219 : vector<16x256xf32> to vector<16x256xbf16>
    %c0_97 = arith.constant 0 : index
    %c144 = arith.constant 144 : index
    %c0_98 = arith.constant 0 : index
    %221 = vector.load %arg12[%c0_97, %c144, %c0_98] : memref<1x256x256xbf16, #tpu.memory_space<vmem>>, vector<1x16x256xbf16>
    %222 = vector.shape_cast %221 : vector<1x16x256xbf16> to vector<16x256xbf16>
    %223 = vector.shape_cast %220 : vector<16x256xbf16> to vector<1x16x256xbf16>
    tpu.vector_store %arg12[%c0_97, %c144, %c0_98], %223 {strides = array<i32>} : memref<1x256x256xbf16, #tpu.memory_space<vmem>>, vector<1x16x256xbf16>,
    %224 = vector.extract_strided_slice %163 {offsets = [160, 0], sizes = [16, 256], strides = [1, 1]} : vector<256x256xf32> to vector<16x256xf32>
    %225 = arith.addf %224, %136 : vector<16x256xf32>
    %226 = arith.truncf %225 : vector<16x256xf32> to vector<16x256xbf16>
    %c0_99 = arith.constant 0 : index
    %c160 = arith.constant 160 : index
    %c0_100 = arith.constant 0 : index
    %227 = vector.load %arg12[%c0_99, %c160, %c0_100] : memref<1x256x256xbf16, #tpu.memory_space<vmem>>, vector<1x16x256xbf16>
    %228 = vector.shape_cast %227 : vector<1x16x256xbf16> to vector<16x256xbf16>
    %229 = vector.shape_cast %226 : vector<16x256xbf16> to vector<1x16x256xbf16>
    tpu.vector_store %arg12[%c0_99, %c160, %c0_100], %229 {strides = array<i32>} : memref<1x256x256xbf16, #tpu.memory_space<vmem>>, vector<1x16x256xbf16>,
    %230 = vector.extract_strided_slice %163 {offsets = [176, 0], sizes = [16, 256], strides = [1, 1]} : vector<256x256xf32> to vector<16x256xf32>
    %231 = arith.addf %230, %141 : vector<16x256xf32>
    %232 = arith.truncf %231 : vector<16x256xf32> to vector<16x256xbf16>
    %c0_101 = arith.constant 0 : index
    %c176 = arith.constant 176 : index
    %c0_102 = arith.constant 0 : index
    %233 = vector.load %arg12[%c0_101, %c176, %c0_102] : memref<1x256x256xbf16, #tpu.memory_space<vmem>>, vector<1x16x256xbf16>
    %234 = vector.shape_cast %233 : vector<1x16x256xbf16> to vector<16x256xbf16>
    %235 = vector.shape_cast %232 : vector<16x256xbf16> to vector<1x16x256xbf16>
    tpu.vector_store %arg12[%c0_101, %c176, %c0_102], %235 {strides = array<i32>} : memref<1x256x256xbf16, #tpu.memory_space<vmem>>, vector<1x16x256xbf16>,
    %236 = vector.extract_strided_slice %163 {offsets = [192, 0], sizes = [16, 256], strides = [1, 1]} : vector<256x256xf32> to vector<16x256xf32>
    %237 = arith.addf %236, %146 : vector<16x256xf32>
    %238 = arith.truncf %237 : vector<16x256xf32> to vector<16x256xbf16>
    %c0_103 = arith.constant 0 : index
    %c192 = arith.constant 192 : index
    %c0_104 = arith.constant 0 : index
    %239 = vector.load %arg12[%c0_103, %c192, %c0_104] : memref<1x256x256xbf16, #tpu.memory_space<vmem>>, vector<1x16x256xbf16>
    %240 = vector.shape_cast %239 : vector<1x16x256xbf16> to vector<16x256xbf16>
    %241 = vector.shape_cast %238 : vector<16x256xbf16> to vector<1x16x256xbf16>
    tpu.vector_store %arg12[%c0_103, %c192, %c0_104], %241 {strides = array<i32>} : memref<1x256x256xbf16, #tpu.memory_space<vmem>>, vector<1x16x256xbf16>,
    %242 = vector.extract_strided_slice %163 {offsets = [208, 0], sizes = [16, 256], strides = [1, 1]} : vector<256x256xf32> to vector<16x256xf32>
    %243 = arith.addf %242, %151 : vector<16x256xf32>
    %244 = arith.truncf %243 : vector<16x256xf32> to vector<16x256xbf16>
    %c0_105 = arith.constant 0 : index
    %c208 = arith.constant 208 : index
    %c0_106 = arith.constant 0 : index
    %245 = vector.load %arg12[%c0_105, %c208, %c0_106] : memref<1x256x256xbf16, #tpu.memory_space<vmem>>, vector<1x16x256xbf16>
    %246 = vector.shape_cast %245 : vector<1x16x256xbf16> to vector<16x256xbf16>
    %247 = vector.shape_cast %244 : vector<16x256xbf16> to vector<1x16x256xbf16>
    tpu.vector_store %arg12[%c0_105, %c208, %c0_106], %247 {strides = array<i32>} : memref<1x256x256xbf16, #tpu.memory_space<vmem>>, vector<1x16x256xbf16>,
    %248 = vector.extract_strided_slice %163 {offsets = [224, 0], sizes = [16, 256], strides = [1, 1]} : vector<256x256xf32> to vector<16x256xf32>
    %249 = arith.addf %248, %156 : vector<16x256xf32>
    %250 = arith.truncf %249 : vector<16x256xf32> to vector<16x256xbf16>
    %c0_107 = arith.constant 0 : index
    %c224 = arith.constant 224 : index
    %c0_108 = arith.constant 0 : index
    %251 = vector.load %arg12[%c0_107, %c224, %c0_108] : memref<1x256x256xbf16, #tpu.memory_space<vmem>>, vector<1x16x256xbf16>
    %252 = vector.shape_cast %251 : vector<1x16x256xbf16> to vector<16x256xbf16>
    %253 = vector.shape_cast %250 : vector<16x256xbf16> to vector<1x16x256xbf16>
    tpu.vector_store %arg12[%c0_107, %c224, %c0_108], %253 {strides = array<i32>} : memref<1x256x256xbf16, #tpu.memory_space<vmem>>, vector<1x16x256xbf16>,
    %254 = vector.extract_strided_slice %163 {offsets = [240, 0], sizes = [16, 256], strides = [1, 1]} : vector<256x256xf32> to vector<16x256xf32>
    %255 = arith.addf %254, %86 : vector<16x256xf32>
    %256 = arith.truncf %255 : vector<16x256xf32> to vector<16x256xbf16>
    %c0_109 = arith.constant 0 : index
    %c240 = arith.constant 240 : index
    %c0_110 = arith.constant 0 : index
    %257 = vector.load %arg12[%c0_109, %c240, %c0_110] : memref<1x256x256xbf16, #tpu.memory_space<vmem>>, vector<1x16x256xbf16>
    %258 = vector.shape_cast %257 : vector<1x16x256xbf16> to vector<16x256xbf16>
    %259 = vector.shape_cast %256 : vector<16x256xbf16> to vector<1x16x256xbf16>
    tpu.vector_store %arg12[%c0_109, %c240, %c0_110], %259 {strides = array<i32>} : memref<1x256x256xbf16, #tpu.memory_space<vmem>>, vector<1x16x256xbf16>,
    return
  }
  func.func @transform_0(%arg0: i32) -> (i32, i32, i32) {
    %c0_i32 = arith.constant 0 : i32
    %c0_i32_0 = arith.constant 0 : i32
    %c0_i32_1 = arith.constant 0 : i32
    return %arg0, %c0_i32, %c0_i32_0 : i32, i32, i32
  }
  func.func @transform_1(%arg0: i32) -> (i32, i32, i32) {
    %c0_i32 = arith.constant 0 : i32
    %c0_i32_0 = arith.constant 0 : i32
    %c0_i32_1 = arith.constant 0 : i32
    return %arg0, %c0_i32, %c0_i32_0 : i32, i32, i32
  }
  func.func @transform_2(%arg0: i32) -> (i32, i32, i32) {
    %c0_i32 = arith.constant 0 : i32
    %c0_i32_0 = arith.constant 0 : i32
    %c0_i32_1 = arith.constant 0 : i32
    return %arg0, %c0_i32, %c0_i32_0 : i32, i32, i32
  }
  func.func @transform_3(%arg0: i32) -> (i32, i32) {
    %c0_i32 = arith.constant 0 : i32
    %c0_i32_0 = arith.constant 0 : i32
    %c0_i32_1 = arith.constant 0 : i32
    return %c0_i32, %c0_i32_0 : i32, i32
  }
  func.func @transform_4(%arg0: i32) -> (i32, i32) {
    %c0_i32 = arith.constant 0 : i32
    %c0_i32_0 = arith.constant 0 : i32
    %c0_i32_1 = arith.constant 0 : i32
    return %c0_i32, %c0_i32_0 : i32, i32
  }
  func.func @transform_5(%arg0: i32) -> (i32, i32) {
    %c0_i32 = arith.constant 0 : i32
    %c0_i32_0 = arith.constant 0 : i32
    %c0_i32_1 = arith.constant 0 : i32
    return %c0_i32, %c0_i32_0 : i32, i32
  }
  func.func @transform_6(%arg0: i32) -> (i32, i32) {
    %c0_i32 = arith.constant 0 : i32
    %c0_i32_0 = arith.constant 0 : i32
    %c0_i32_1 = arith.constant 0 : i32
    return %c0_i32, %c0_i32_0 : i32, i32
  }
  func.func @transform_7(%arg0: i32) -> (i32, i32) {
    %c0_i32 = arith.constant 0 : i32
    %c0_i32_0 = arith.constant 0 : i32
    %c0_i32_1 = arith.constant 0 : i32
    return %c0_i32, %c0_i32_0 : i32, i32
  }
  func.func @transform_8(%arg0: i32) -> (i32, i32) {
    %c0_i32 = arith.constant 0 : i32
    %c0_i32_0 = arith.constant 0 : i32
    %c0_i32_1 = arith.constant 0 : i32
    return %c0_i32, %c0_i32_0 : i32, i32
  }
  func.func @transform_9(%arg0: i32) -> (i32, i32) {
    %c0_i32 = arith.constant 0 : i32
    %c0_i32_0 = arith.constant 0 : i32
    %c0_i32_1 = arith.constant 0 : i32
    return %c0_i32, %c0_i32_0 : i32, i32
  }
  func.func @transform_10(%arg0: i32) -> (i32, i32) {
    %c0_i32 = arith.constant 0 : i32
    %c0_i32_0 = arith.constant 0 : i32
    %c0_i32_1 = arith.constant 0 : i32
    return %c0_i32, %c0_i32_0 : i32, i32
  }
  func.func @transform_11(%arg0: i32) -> (i32, i32, i32) {
    %c0_i32 = arith.constant 0 : i32
    %c0_i32_0 = arith.constant 0 : i32
    %c0_i32_1 = arith.constant 0 : i32
    return %arg0, %c0_i32, %c0_i32_0 : i32, i32, i32
  }
}

</mosaic_0001>

<bundles_post_ra>
// kernel: tpu_custom_call.1
= control target key start
LH: loop header
LB: loop body
LE: loop exit
PB: predicated region body
PF: predicated region fallthrough
CT: control target
= control target key end

     0   :  { %16 = vsyncpa [#allocation3], 0  ;;  %s3282_s0 = inlined_call_operand.vmem [shape: bf16[2,16,128], index: 0, kind: input, shape index: {}]   ;;  %s3283_s1 = inlined_call_operand.vmem [shape: bf16[2,64,64], index: 1, kind: input, shape index: {}]   ;;  %s3284_s2 = inlined_call_operand.vmem [shape: bf16[2,256,32], index: 2, kind: input, shape index: {}]   ;;  %s3285_s3 = inlined_call_operand.vmem [shape: bf16[128,256], index: 3, kind: input, shape index: {}]   ;;  %s3286_s4 = inlined_call_operand.vmem [shape: f32[1,256], index: 4, kind: input, shape index: {}]   ;;  %s3287_s5 = inlined_call_operand.vmem [shape: bf16[64,256], index: 5, kind: input, shape index: {}]   ;;  %s3288_s6 = inlined_call_operand.vmem [shape: f32[1,256], index: 6, kind: input, shape index: {}]   ;;  %s3289_s7 = inlined_call_operand.vmem [shape: bf16[32,256], index: 7, kind: input, shape index: {}]   ;;  %s3290_s8 = inlined_call_operand.vmem [shape: f32[1,256], index: 8, kind: input, shape index: {}]   ;;  %s3291_s9 = inlined_call_operand.vmem [shape: bf16[8,4], index: 9, kind: input, shape index: {}]   ;;  %s3292_s10 = inlined_call_operand.vmem [shape: bf16[16,8], index: 10, kind: input, shape index: {}]   ;;  %s3293_s11 = inlined_call_operand.hbm [shape: bf16[2,256,256], index: 11, kind: output, shape index: {}]  }
   0x1   :  { %18 = vsyncpa [#allocation3 + $0x1], 0  ;;  %s2491_s17 = smov 0   ;;  %s2493_s18 = smov 0  }
   0x2   :  { %s2495_s19 = smov 0   ;;  %s2497_s20 = smov 0  }
   0x3 LB: > { %3295 = sst [smem:[#allocation5_spill]] %s2423_s19  ;;  %s2512_s21 = sadd.s32 4294967295, %s2427_s20   ;;  %s2427_s20 = sphi %s2497_s20, %s3319_s20   ;;  %s2423_s19 = sphi %s2495_s19, %s3316_s19   ;;  %s2419_s18 = sphi %s2493_s18, %s3318_s18   ;;  %s2415_s17 = sphi %s2491_s17, %s3317_s17  }
   0x4   : > { %s1986_s22 = sadd.s32 4294967294, %s2427_s20   ;;  %s2516_s23 = sadd.s32 1, %s2427_s20  }
   0x5   : > { %s277_s24 = sadd.s32 1, %s2423_s19  ;;  %s274_s25 = ssub.s32 %s2427_s20, %s2516_s23 }
   0x6   : > { %p287_p0 = scmp.ne.s32.totalorder %s2423_s19, %s2419_s18  ;;  %p275_p1 = scmp.eq.s32.totalorder %s274_s25, 0 }
   0x7   : > { %p288_p2 = scmp.eq.s32.totalorder %s2512_s21, 1  ;;  %p293_p3 = scmp.ne.s32.totalorder %s2419_s18, %s2415_s17 }
   0x8   : > { %p294_p4 = scmp.eq.s32.totalorder %s1986_s22, 1  ;;  %p1989_p7 = scmp.ge.s32.totalorder %s2427_s20, 1 }
   0x9   : > { %s2527_s26 = scalar_select %p275_p1, %s2423_s19, %s277_s24  }
   0xa   : > { %p2529_p5 = por %p288_p2, %p287_p0  ;;  %p2533_p6 = por %p294_p4, %p293_p3 }
   0xb   : > { %3296 = sst [smem:[#allocation6_spill]] %s2527_s26  ;;  %p360_p8 = scmp.lt.s32.totalorder %s2427_s20, 3 }
   0xd   : > { %p361_p9 = pnand %p1989_p7, %p360_p8 }
   0xf   : > { %364 = sbr.rel (%p361_p9) target bundleno = 714 (0x2ca), region = 64 }
  0x14   : > { %v2059_v0 = vld [vmem:[%s3285_s3 + $0x70] sm:$0xf]  ;;  %v2286_v1 = vld [vmem:[%s3285_s3 + $0x74] sm:$0xf0]  ;;  %v2285_v2 = vld [vmem:[%s3285_s3 + $0x74] sm:$0xf] }
  0x15   : > { %v2060_v3 = vor.u32 %v2286_v1, %v2059_v0  ;;  %v2061_v4 = vld [vmem:[%s3285_s3 + $0x78] sm:$0xf0]  ;;  %v2051_v5 = vld [vmem:[%s3285_s3 + $0x60] sm:$0xf]  ;;  %v2284_v6 = vld [vmem:[%s3285_s3 + $0x64] sm:$0xf0] }
  0x16   : > { %v2064_v7 = vor.u32 %v2285_v2, %v2061_v4  ;;  %v2283_v8 = vld [vmem:[%s3285_s3 + $0x64] sm:$0xf]  ;;  %v2053_v9 = vld [vmem:[%s3285_s3 + $0x68] sm:$0xf0]  ;;  %v2052_v10 = vor.u32 %v2284_v6, %v2051_v5  ;;  %v2043_v12 = vld [vmem:[%s3285_s3 + $0x50] sm:$0xf] }
  0x17   : > { %539 = vmatpush.bf16.msra.mxu0 %v2060_v3  ;;  %v2056_v11 = vor.u32 %v2283_v8, %v2053_v9  ;;  %v2282_v13 = vld [vmem:[%s3285_s3 + $0x54] sm:$0xf0]  ;;  %v2281_v14 = vld [vmem:[%s3285_s3 + $0x54] sm:$0xf]  ;;  %v2045_v15 = vld [vmem:[%s3285_s3 + $0x58] sm:$0xf0] }
  0x18   : > { %553 = vmatpush.bf16.msra.mxu1 %v2064_v7  ;;  %v2044_v16 = vor.u32 %v2282_v13, %v2043_v12  ;;  %v2048_v17 = vor.u32 %v2281_v14, %v2045_v15  ;;  %v2035_v18 = vld [vmem:[%s3285_s3 + $0x40] sm:$0xf]  ;;  %v2280_v19 = vld [vmem:[%s3285_s3 + $0x44] sm:$0xf0]  ;;  %v2279_v20 = vld [vmem:[%s3285_s3 + $0x44] sm:$0xf] }
  0x19   : > { %v2037_v21 = vld [vmem:[%s3285_s3 + $0x48] sm:$0xf0]  ;;  %v2036_v22 = vor.u32 %v2280_v19, %v2035_v18  ;;  %v2027_v24 = vld [vmem:[%s3285_s3 + $0x30] sm:$0xf]  ;;  %v2278_v25 = vld [vmem:[%s3285_s3 + $0x34] sm:$0xf0] }
  0x1a   : > { %v2040_v23 = vor.u32 %v2279_v20, %v2037_v21  ;;  %v2277_v26 = vld [vmem:[%s3285_s3 + $0x34] sm:$0xf]  ;;  %v2029_v27 = vld [vmem:[%s3285_s3 + $0x38] sm:$0xf0]  ;;  %v2028_v28 = vor.u32 %v2278_v25, %v2027_v24  ;;  %v2019_v30 = vld [vmem:[%s3285_s3 + $0x20] sm:$0xf] }
  0x1b   : > { %540 = vmatpush.bf16.msra.mxu0 %v2052_v10  ;;  %v2032_v29 = vor.u32 %v2277_v26, %v2029_v27  ;;  %v2276_v31 = vld [vmem:[%s3285_s3 + $0x24] sm:$0xf0]  ;;  %p410_p10 = scmp.lt.s32.totalorder %s2512_s21, 1  ;;  %v2275_v32 = vld [vmem:[%s3285_s3 + $0x24] sm:$0xf]  ;;  %vm578_vm0 = vcmask 1041408  }
  0x1c   : > { %554 = vmatpush.bf16.msra.mxu1 %v2056_v11  ;;  %v2021_v33 = vld [vmem:[%s3285_s3 + $0x28] sm:$0xf0]  ;;  %v2020_v34 = vor.u32 %v2276_v31, %v2019_v30  ;;  %v2011_v36 = vld [vmem:[%s3285_s3 + $0x10] sm:$0xf]  ;;  %v2274_v37 = vld [vmem:[%s3285_s3 + $0x14] sm:$0xf0] }
  0x1d   : > { %v2024_v35 = vor.u32 %v2275_v32, %v2021_v33  ;;  %s2619_s26 = scalar_select %p410_p10, %s2512_s21, 1  ;;  %v2273_v38 = vld [vmem:[%s3285_s3 + $0x14] sm:$0xf]  ;;  %v2013_v39 = vld [vmem:[%s3285_s3 + $0x18] sm:$0xf0]  ;;  %v2012_v40 = vor.u32 %v2274_v37, %v2011_v36  ;;  %vm574_vm1 = vcmask 31744  }
  0x1e   : > { %v2016_v41 = vor.u32 %v2273_v38, %v2013_v39  ;;  %v2003_v42 = vld [vmem:[%s3285_s3] sm:$0xf]  ;;  %v2272_v43 = vld [vmem:[%s3285_s3 + $0x4] sm:$0xf0]  ;;  %v2271_v44 = vld [vmem:[%s3285_s3 + $0x4] sm:$0xf] }
  0x1f   : > { %541 = vmatpush.bf16.msra.mxu0 %v2044_v16  ;;  %s2266_s16 = sshll.u32 %s2619_s26, 3  ;;  %v2005_v45 = vld [vmem:[%s3285_s3 + $0x8] sm:$0xf0]  ;;  %v2004_v46 = vor.u32 %v2272_v43, %v2003_v42  ;;  %v447_v49 = vld [vmem:[%s3286_s4] sm:$0x3]  ;;  %s2267_s15 = sshll.u32 %s2619_s26, 5 }
  0x20   : > { %555 = vmatpush.bf16.msra.mxu1 %v2048_v17  ;;  %s414_s12 = scalar_lea.vmem %s3282_s0, %s2266_s16  ;;  %v2008_v47 = vor.u32 %v2271_v44, %v2005_v45  ;;  %v449_v50 = vperm.slane %v447_v49, 0  ;;  %v450_v51 = vperm.slane %v447_v49, 1  ;;  %v426_v5 = vld [vmem:[%s3291_s9] sm:$0xf]  ;;  %v2115_v8 = vld [vmem:[%s3287_s5 + $0x30] sm:$0xf]  ;;  %s419_s24 = scalar_lea.vmem %s3283_s1, %s2267_s15 }
  0x21   : > { %v2270_v48 = vld [vmem:[%s414_s12] sm:$0xff]  ;;  %v2298_v9 = vld [vmem:[%s3287_s5 + $0x34] sm:$0xf0]  ;;  %v2297_v11 = vld [vmem:[%s3287_s5 + $0x34] sm:$0xf]  ;;  %vm834_vm2 = vcmask 523264  }
  0x22   : > { %v2117_v12 = vld [vmem:[%s3287_s5 + $0x38] sm:$0xf0]  ;;  %v2116_v17 = vor.u32 %v2298_v9, %v2115_v8  ;;  %v2107_v19 = vld [vmem:[%s3287_s5 + $0x20] sm:$0xf]  ;;  %v2296_v20 = vld [vmem:[%s3287_s5 + $0x24] sm:$0xf0] }
  0x23   : > { %542 = vmatpush.bf16.msra.mxu0 %v2036_v22  ;;  %v2120_v18 = vor.u32 %v2297_v11, %v2117_v12  ;;  %v2295_v21 = vld [vmem:[%s3287_s5 + $0x24] sm:$0xf]  ;;  %v2109_v22 = vld [vmem:[%s3287_s5 + $0x28] sm:$0xf0]  ;;  %v2099_v31 = vld [vmem:[%s3287_s5 + $0x10] sm:$0xf] }
  0x24   : > { %556 = vmatpush.bf16.msra.mxu1 %v2040_v23  ;;  %v2112_v30 = vor.u32 %v2295_v21, %v2109_v22  ;;  %v2294_v32 = vld [vmem:[%s3287_s5 + $0x14] sm:$0xf0]  ;;  %v2293_v33 = vld [vmem:[%s3287_s5 + $0x14] sm:$0xf]  ;;  %v2291_v37 = vld [vmem:[%s3287_s5 + $0x4] sm:$0xf] }
  0x25   : > { %v2093_v38 = vld [vmem:[%s3287_s5 + $0x8] sm:$0xf0]  ;;  %v2091_v39 = vld [vmem:[%s3287_s5] sm:$0xf]  ;;  %v2289_v45 = vld [vmem:[%s419_s24 + $0x10] sm:$0xff]  ;;  %vm946_vm3 = vcmask 1043456  }
  0x26   : > { %v2287_v43 = vld [vmem:[%s419_s24] sm:$0xff]  ;;  %v2288_v44 = vld [vmem:[%s419_s24 + $0x8] sm:$0xff]  ;;  %vm942_vm4 = vcmask 64512   ;;  %s2268_s22 = sshll.u32 %s2619_s26, 7  ;;  %vm1529_vm5 = vcmask 261120   ;;  %s407_s12 = sand.u32 1, %s2419_s18  }
  0x27   : > { %543 = vmatpush.bf16.msra.mxu0 %v2028_v28  ;;  %s2847_s29 = scalar_lea.vmem %s3284_s2, %s2268_s22  ;;  %s3022_s13 = sshll.u32 %s407_s12, 8 }
  0x28   : > { %557 = vmatpush.bf16.msra.mxu1 %v2032_v29  ;;  %v2108_v29 = vor.u32 %v2296_v20, %v2107_v19  ;;  %s3056_s14 = scalar_lea.vmem [#allocation2], %s3022_s13  ;;  %s2319_s19 = sshll.u32 %s2512_s21, 8 }
  0x29   : > { %s1896_s22 = scalar_lea.hbm %s3293_s11, %s2319_s19  ;;  %s1897_s21 = sshll.u32 %s3056_s14, 4  ;;  %s1898_s21 = int_to_ptr.vmem [resolvable:$true] %s1897_s21 }
  0x2a   : > { %s1885_s25 = scalar_lea.sflag [#allocation3], %s407_s12  ;;  %s2385_s19 = scalar_lea.hbm %s3293_s11, 512 }
  0x2b   : > { %544 = vmatpush.bf16.msra.mxu0 %v2020_v34  ;;  %v2101_v34 = vld [vmem:[%s3287_s5 + $0x18] sm:$0xf0] }
  0x2c   : > { %558 = vmatpush.bf16.msra.mxu1 %v2024_v35  ;;  %v2100_v35 = vor.u32 %v2294_v32, %v2099_v31  ;;  %v2104_v36 = vor.u32 %v2293_v33, %v2101_v34 }
  0x2f   : > { %545 = vmatpush.bf16.msra.mxu0 %v2012_v40  ;;  %v2292_v40 = vld [vmem:[%s3287_s5 + $0x4] sm:$0xf0] }
  0x30   : > { %559 = vmatpush.bf16.msra.mxu1 %v2016_v41  ;;  %v2096_v41 = vor.u32 %v2291_v37, %v2093_v38  ;;  %v2092_v42 = vor.u32 %v2292_v40, %v2091_v39 }
  0x33   : > { %546 = vmatpush.bf16.msra.mxu0 %v2004_v46  ;;  %v2290_v46 = vld [vmem:[%s419_s24 + $0x18] sm:$0xff]  ;;  %s1899_s24 = sshll.u32 %s1896_s22, 4  ;;  %s1900_s24 = int_to_ptr.hbm [resolvable:$true] %s1899_s24 }
  0x34   : > { %560 = vmatpush.bf16.msra.mxu1 %v2008_v47 }
  0x36   : > { %547 = vmatmul.bf16.vlgmr.msra.gmra.mxu0 %v2270_v48 }
  0x37   : > { %561 = vmatmul.bf16.vlgmr.msra.gmra.mxu1 %v2270_v48 }
  0xb3   : > { %v548_v52 = vpop.f32.mrf.mxu0 }
  0xb4   : > { %v549_v53 = vadd.f32 %v548_v52, %v449_v50  ;;  %v562_v54 = vpop.f32.mrf.mxu1 }
  0xb5   : > { %v563_v55 = vadd.f32 %v562_v54, %v450_v51 }
  0xb7   : > { %v567_v56 = vpack.c.bf16 %v563_v55, %v549_v53 }
  0xb9   : > { %v570_v57 = vunpack.c.l.b16 %v567_v56  ;;  %v571_v58 = vunpack.c.h.b16 %v567_v56 }
  0xbb   : > { %v550_v59 = vpop.f32.mrf.mxu0  ;;  %v572_v60 = vpack.c.b16 %v570_v57, %v570_v57  ;;  %v573_v61 = vpack.c.b16 %v571_v58, %v571_v58 }
  0xbc   : > { %v551_v62 = vadd.f32 %v550_v59, %v449_v50  ;;  %v564_v63 = vpop.f32.mrf.mxu1 }
  0xbd   : > { %v565_v0 = vadd.f32 %v564_v63, %v450_v51  ;;  %v580_v1 = vsel %vm578_vm0, %v572_v60, 0  ;;  %v583_v2 = vsel %vm578_vm0, %v573_v61, 0  ;;  %v611_v3 = vrot.slane %v572_v60, 2  ;;  %v768_v63 = vld [vmem:[%s3288_s6] sm:$0x3] }
  0xbe   : > { %592 = vmatpush.bf16.msrb.mxu0 %v580_v1  ;;  %605 = vmatpush.bf16.msrb.mxu1 %v583_v2  ;;  %v612_v4 = vrot.slane %v573_v61, 2  ;;  %v2734_v1 = vperm.slane %v768_v63, 1 }
  0xbf   : > { %v568_v6 = vpack.c.bf16 %v565_v0, %v551_v62  ;;  %v614_v7 = vsel %vm578_vm0, %v611_v3, 0  ;;  %v2732_v0 = vperm.slane %v768_v63, 0 }
  0xc0   : > { %626 = vmatpush.bf16.msra.mxu2 %v614_v7  ;;  %v617_v10 = vsel %vm578_vm0, %v612_v4, 0 }
  0xc1   : > { %639 = vmatpush.bf16.msra.mxu3 %v617_v10  ;;  %v646_v13 = vunpack.c.l.b16 %v568_v6  ;;  %v647_v14 = vunpack.c.h.b16 %v568_v6  ;;  %2065 = vmatmul.msk.bf16.vlgmr.msrb.gmra.mxu0 %vm574_vm1, %v426_v5 }
  0xc2   : > { %2066 = vmatmul.msk.bf16.vlgmr.msrb.gmra.mxu1 %vm574_vm1, %v426_v5 }
  0xc3   : > { %2067 = vmatmul.msk.bf16.vlgmr.msra.gmra.mxu2 %vm574_vm1, %v426_v5  ;;  %v648_v15 = vpack.c.b16 %v646_v13, %v646_v13  ;;  %v649_v16 = vpack.c.b16 %v647_v14, %v647_v14 }
  0xc4   : > { %2068 = vmatmul.msk.bf16.vlgmr.msra.gmra.mxu3 %vm574_vm1, %v426_v5 }
  0xc5   : > { %v651_v23 = vsel %vm578_vm0, %v648_v15, 0  ;;  %v682_v24 = vrot.slane %v648_v15, 2  ;;  %v654_v25 = vsel %vm578_vm0, %v649_v16, 0  ;;  %v683_v26 = vrot.slane %v649_v16, 2  ;;  %v2744_v15 = vld [vmem:[%s3292_s10] sm:$0xff] }
  0xc6   : > { %663 = vmatpush.bf16.msrb.mxu2 %v651_v23  ;;  %676 = vmatpush.bf16.msrb.mxu3 %v654_v25 }
  0xc7   : > { %v685_v27 = vsel %vm578_vm0, %v682_v24, 0  ;;  %v688_v28 = vsel %vm578_vm0, %v683_v26, 0 }
  0xc8   : > { %697 = vmatpush.bf16.msra.mxu0 %v685_v27  ;;  %710 = vmatpush.bf16.msra.mxu1 %v688_v28 }
  0xca   : > { %851 = vmatpush.bf16.msra.mxu2 %v2116_v17  ;;  %880 = vmatpush.bf16.msra.mxu3 %v2120_v18 }
  0xce   : > { %852 = vmatpush.bf16.msra.mxu2 %v2108_v29  ;;  %881 = vmatpush.bf16.msra.mxu3 %v2112_v30 }
  0xd1   : > { %2071 = vmatmul.msk.bf16.vlgmr.msra.gmra.mxu0 %vm574_vm1, %v426_v5 }
  0xd2   : > { %853 = vmatpush.bf16.msra.mxu2 %v2100_v35  ;;  %882 = vmatpush.bf16.msra.mxu3 %v2104_v36 }
  0xd3   : > { %2072 = vmatmul.msk.bf16.vlgmr.msra.gmra.mxu1 %vm574_vm1, %v426_v5  ;;  %2069 = vmatmul.msk.bf16.vlgmr.msrb.gmra.mxu2 %vm574_vm1, %v426_v5 }
  0xd4   : > { %2070 = vmatmul.msk.bf16.vlgmr.msrb.gmra.mxu3 %vm574_vm1, %v426_v5 }
  0xd6   : > { %883 = vmatpush.bf16.msra.mxu3 %v2096_v41  ;;  %854 = vmatpush.bf16.msra.mxu2 %v2092_v42 }
  0xe3   : > { %2121 = vmatmul.msk.bf16.vlgmr.msra.gmra.mxu2 %vm834_vm2, %v2287_v43 }
  0xe4   : > { %2125 = vmatmul.msk.bf16.vlgmr.msra.gmra.mxu3 %vm834_vm2, %v2287_v43 }
  0xf3   : > { %2122 = vmatmul.msk.bf16.gmra.mxu2 %vm834_vm2, %v2288_v44 }
  0xf4   : > { %2126 = vmatmul.msk.bf16.gmra.mxu3 %vm834_vm2, %v2288_v44 }
 0x103   : > { %2123 = vmatmul.msk.bf16.gmra.mxu2 %vm834_vm2, %v2289_v45 }
 0x104   : > { %2127 = vmatmul.msk.bf16.gmra.mxu3 %vm834_vm2, %v2289_v45 }
 0x113   : > { %2124 = vmatmul.msk.bf16.gmra.mxu2 %vm834_vm2, %v2290_v46 }
 0x114   : > { %2128 = vmatmul.msk.bf16.gmra.mxu3 %vm834_vm2, %v2290_v46 }
 0x13e   : > { %v594_v47 = vpop.f32.mrf.mxu0 }
 0x13f   : > { %v607_v48 = vpop.f32.mrf.mxu1  ;;  %v716_v8 = vmul.f32 0.5714286, %v594_v47  ;;  %v722_v25 = vmul.f32 0.14285715, %v594_v47 }
 0x140   : > { %v717_v11 = vmul.f32 0.5714286, %v607_v48  ;;  %v723_v28 = vmul.f32 0.14285715, %v607_v48 }
 0x146   : > { %v2717_v49 = vpop.f32.mrf.mxu2  ;;  %v596_v50 = vpop.f32.mrf.mxu0 }
 0x147   : > { %v2719_v51 = vpop.f32.mrf.mxu3  ;;  %v609_v52 = vpop.f32.mrf.mxu1  ;;  %v718_v9 = vmul.f32 0.42857143, %v2717_v49  ;;  %v724_v26 = vmul.f32 0.85714287, %v2717_v49  ;;  %v728_v45 = vmul.f32 0.71428573, %v2717_v49 }
 0x148   : > { %v719_v12 = vmul.f32 0.42857143, %v2719_v51  ;;  %v725_v29 = vmul.f32 0.85714287, %v2719_v51 }
 0x149   : > { %v720_v18 = vadd.f32 %v718_v9, %v716_v8  ;;  %v726_v34 = vadd.f32 %v724_v26, %v722_v25 }
 0x14a   : > { %v721_v21 = vadd.f32 %v719_v12, %v717_v11  ;;  %v727_v37 = vadd.f32 %v725_v29, %v723_v28 }
 0x14e   : > { %v630_v53 = vpop.f32.mrf.mxu2  ;;  %v2721_v54 = vpop.f32.mrf.mxu0 }
 0x14f   : > { %v643_v55 = vpop.f32.mrf.mxu3 }
 0x150   : > { %v2723_v56 = vpop.f32.mrf.mxu1 }
 0x156   : > { %v2725_v57 = vpop.f32.mrf.mxu2  ;;  %v701_v58 = vpop.f32.mrf.mxu0 }
 0x157   : > { %v2727_v59 = vpop.f32.mrf.mxu3  ;;  %v730_v41 = vmul.f32 0.2857143, %v2725_v57  ;;  %v736_v63 = vmul.f32 0.71428573, %v2725_v57 }
 0x158   : > { %v714_v60 = vpop.f32.mrf.mxu1  ;;  %v731_v43 = vmul.f32 0.2857143, %v2727_v59 }
 0x159   : > { %v732_v52 = vadd.f32 %v730_v41, %v728_v45  ;;  %v2318_v45 = vld [vmem:[%s3289_s7 + $0x14] sm:$0xf0] }
 0x15e   : > { %v667_v61 = vpop.f32.mrf.mxu2 }
 0x15f   : > { %v680_v62 = vpop.f32.mrf.mxu3 }
 0x166   : > { %v856_v2 = vpop.f32.mrf.mxu2 }
 0x167   : > { %v857_v3 = vadd.f32 %v856_v2, %v2732_v0  ;;  %v885_v4 = vpop.f32.mrf.mxu3 }
 0x168   : > { %v886_v5 = vadd.f32 %v885_v4, %v2734_v1 }
 0x169   : > { %v905_v6 = vadd.f32 %v857_v3, %v594_v47  ;;  %v729_v47 = vmul.f32 0.71428573, %v2719_v51  ;;  %v737_v3 = vmul.f32 0.71428573, %v2727_v59 }
 0x16a   : > { %v906_v7 = vadd.f32 %v886_v5, %v607_v48  ;;  %v734_v5 = vmul.f32 0.2857143, %v2717_v49  ;;  %v740_v49 = vmul.f32 0.85714287, %v2725_v57 }
 0x16b   : > { %v907_v10 = vpack.c.bf16 %v905_v6, %v905_v6  ;;  %v733_v58 = vadd.f32 %v731_v43, %v729_v47  ;;  %v2317_v47 = vld [vmem:[%s3289_s7 + $0x14] sm:$0xf] }
 0x16c   : > { %v908_v13 = vpack.c.bf16 %v906_v7, %v906_v7  ;;  %v735_v7 = vmul.f32 0.2857143, %v2719_v51  ;;  %v741_v51 = vmul.f32 0.85714287, %v2727_v59 }
 0x16d   : > { %v948_v14 = vsel %vm946_vm3, %v907_v10, 0  ;;  %v738_v10 = vadd.f32 %v736_v63, %v734_v5  ;;  %v2315_v63 = vld [vmem:[%s3289_s7 + $0x4] sm:$0xf] }
 0x16e   : > { %v858_v16 = vpop.f32.mrf.mxu2  ;;  %960 = vmatpush.bf16.msrb.mxu0 %v948_v14  ;;  %v951_v17 = vsel %vm946_vm3, %v908_v13, 0  ;;  %v739_v13 = vadd.f32 %v737_v3, %v735_v7 }
 0x16f   : > { %v859_v19 = vadd.f32 %v858_v16, %v2732_v0  ;;  %v887_v20 = vpop.f32.mrf.mxu3  ;;  %974 = vmatpush.bf16.msrb.mxu1 %v951_v17 }
 0x170   : > { %v888_v22 = vadd.f32 %v887_v20, %v2734_v1  ;;  %v743_v20 = vmul.f32 0.14285715, %v2723_v56 }
 0x171   : > { %v909_v23 = vadd.f32 %v859_v19, %v720_v18  ;;  %2133 = vmatmul.msk.bf16.vlgmr.msrb.gmra.mxu0 %vm942_vm4, %v2744_v15  ;;  %v742_v18 = vmul.f32 0.14285715, %v2721_v54 }
 0x172   : > { %v910_v24 = vadd.f32 %v888_v22, %v721_v21  ;;  %2134 = vmatmul.msk.bf16.vlgmr.msrb.gmra.mxu1 %vm942_vm4, %v2744_v15  ;;  %v745_v28 = vadd.f32 %v743_v20, %v741_v51 }
 0x173   : > { %v911_v27 = vpack.c.bf16 %v909_v23, %v909_v23  ;;  %v744_v25 = vadd.f32 %v742_v18, %v740_v49  ;;  %v2309_v49 = vld [vmem:[%s2847_s29 + $0x50] sm:$0xff]  ;;  %v2310_v18 = vld [vmem:[%s2847_s29 + $0x58] sm:$0xff] }
 0x174   : > { %v912_v30 = vpack.c.bf16 %v910_v24, %v910_v24 }
 0x175   : > { %v982_v31 = vsel %vm946_vm3, %v911_v27, 0 }
 0x176   : > { %v861_v32 = vpop.f32.mrf.mxu2  ;;  %994 = vmatpush.bf16.msra.mxu0 %v982_v31  ;;  %v985_v33 = vsel %vm946_vm3, %v912_v30, 0 }
 0x177   : > { %v862_v35 = vadd.f32 %v861_v32, %v2732_v0  ;;  %v890_v36 = vpop.f32.mrf.mxu3  ;;  %1008 = vmatpush.bf16.msra.mxu1 %v985_v33  ;;  %v746_v32 = vmul.f32 0.42857143, %v2725_v57  ;;  %v748_v33 = vmul.f32 0.5714286, %v2721_v54 }
 0x178   : > { %v891_v38 = vadd.f32 %v890_v36, %v2734_v1  ;;  %v749_v36 = vmul.f32 0.5714286, %v2723_v56 }
 0x179   : > { %v913_v39 = vadd.f32 %v862_v35, %v726_v34  ;;  %v747_v35 = vmul.f32 0.42857143, %v2727_v59  ;;  %v750_v41 = vadd.f32 %v748_v33, %v746_v32  ;;  %v2223_v59 = vld [vmem:[%s3289_s7 + $0x10] sm:$0xf] }
 0x17a   : > { %v914_v40 = vadd.f32 %v891_v38, %v727_v37 }
 0x17b   : > { %v915_v42 = vpack.c.bf16 %v913_v39, %v913_v39  ;;  %v751_v57 = vadd.f32 %v749_v36, %v747_v35 }
 0x17c   : > { %v916_v44 = vpack.c.bf16 %v914_v40, %v914_v40 }
 0x17d   : > { %v1016_v46 = vsel %vm946_vm3, %v915_v42, 0 }
 0x17e   : > { %v863_v48 = vpop.f32.mrf.mxu2  ;;  %1028 = vmatpush.bf16.msrb.mxu0 %v1016_v46  ;;  %v1019_v50 = vsel %vm946_vm3, %v916_v44, 0 }
 0x17f   : > { %v864_v53 = vadd.f32 %v863_v48, %v2732_v0  ;;  %v892_v55 = vpop.f32.mrf.mxu3  ;;  %1042 = vmatpush.bf16.msrb.mxu1 %v1019_v50  ;;  %v2225_v48 = vld [vmem:[%s3289_s7 + $0x18] sm:$0xf0] }
 0x180   : > { %v893_v60 = vadd.f32 %v892_v55, %v2734_v1 }
 0x181   : > { %v917_v61 = vadd.f32 %v864_v53, %v732_v52  ;;  %2135 = vmatmul.msk.bf16.vlgmr.msra.gmra.mxu0 %vm942_vm4, %v2744_v15  ;;  %v2224_v53 = vor.u32 %v2318_v45, %v2223_v59 }
 0x182   : > { %v918_v62 = vadd.f32 %v893_v60, %v733_v58  ;;  %2136 = vmatmul.msk.bf16.vlgmr.msra.gmra.mxu1 %vm942_vm4, %v2744_v15  ;;  %v2228_v58 = vor.u32 %v2317_v47, %v2225_v48  ;;  %v2215_v60 = vld [vmem:[%s3289_s7] sm:$0xf] }
 0x183   : > { %v919_v2 = vpack.c.bf16 %v917_v61, %v917_v61  ;;  %v2316_v61 = vld [vmem:[%s3289_s7 + $0x4] sm:$0xf0] }
 0x184   : > { %v920_v4 = vpack.c.bf16 %v918_v62, %v918_v62  ;;  %v2216_v5 = vor.u32 %v2316_v61, %v2215_v60 }
 0x185   : > { %v1050_v6 = vsel %vm946_vm3, %v919_v2, 0  ;;  %v2217_v2 = vld [vmem:[%s3289_s7 + $0x8] sm:$0xf0] }
 0x186   : > { %v866_v8 = vpop.f32.mrf.mxu2  ;;  %1062 = vmatpush.bf16.msra.mxu0 %v1050_v6  ;;  %v1053_v9 = vsel %vm946_vm3, %v920_v4, 0 }
 0x187   : > { %v867_v11 = vadd.f32 %v866_v8, %v2732_v0  ;;  %v895_v12 = vpop.f32.mrf.mxu3  ;;  %1076 = vmatpush.bf16.msra.mxu1 %v1053_v9  ;;  %v2220_v8 = vor.u32 %v2315_v63, %v2217_v2 }
 0x188   : > { %v896_v14 = vadd.f32 %v895_v12, %v2734_v1 }
 0x189   : > { %v921_v16 = vadd.f32 %v867_v11, %v738_v10 }
 0x18a   : > { %v922_v17 = vadd.f32 %v896_v14, %v739_v13  ;;  %v2299_v14 = vld [vmem:[%s2847_s29] sm:$0xff] }
 0x18b   : > { %v923_v19 = vpack.c.bf16 %v921_v16, %v921_v16  ;;  %v2308_v16 = vld [vmem:[%s2847_s29 + $0x48] sm:$0xff] }
 0x18c   : > { %v924_v21 = vpack.c.bf16 %v922_v17, %v922_v17  ;;  %v2300_v17 = vld [vmem:[%s2847_s29 + $0x8] sm:$0xff] }
 0x18d   : > { %v1084_v22 = vsel %vm946_vm3, %v923_v19, 0 }
 0x18e   : > { %v868_v23 = vpop.f32.mrf.mxu2  ;;  %1096 = vmatpush.bf16.msrb.mxu2 %v1084_v22  ;;  %v1087_v24 = vsel %vm946_vm3, %v924_v21, 0  ;;  %v2302_v22 = vld [vmem:[%s2847_s29 + $0x18] sm:$0xff] }
 0x18f   : > { %v869_v26 = vadd.f32 %v868_v23, %v2732_v0  ;;  %v897_v27 = vpop.f32.mrf.mxu3  ;;  %1110 = vmatpush.bf16.msrb.mxu3 %v1087_v24  ;;  %v2311_v23 = vld [vmem:[%s2847_s29 + $0x60] sm:$0xff] }
 0x190   : > { %v898_v29 = vadd.f32 %v897_v27, %v2734_v1 }
 0x191   : > { %v925_v30 = vadd.f32 %v869_v26, %v744_v25  ;;  %2137 = vmatmul.msk.bf16.vlgmr.msrb.gmra.mxu0 %vm942_vm4, %v2744_v15  ;;  %2141 = vmatmul.msk.bf16.vlgmr.msrb.gmra.mxu2 %vm942_vm4, %v2744_v15 }
 0x192   : > { %v926_v31 = vadd.f32 %v898_v29, %v745_v28  ;;  %2138 = vmatmul.msk.bf16.vlgmr.msrb.gmra.mxu1 %vm942_vm4, %v2744_v15  ;;  %2142 = vmatmul.msk.bf16.vlgmr.msrb.gmra.mxu3 %vm942_vm4, %v2744_v15  ;;  %v2303_v28 = vld [vmem:[%s2847_s29 + $0x20] sm:$0xff]  ;;  %v2312_v29 = vld [vmem:[%s2847_s29 + $0x68] sm:$0xff] }
 0x193   : > { %v927_v34 = vpack.c.bf16 %v925_v30, %v925_v30 }
 0x194   : > { %v928_v37 = vpack.c.bf16 %v926_v31, %v926_v31 }
 0x195   : > { %v1118_v38 = vsel %vm946_vm3, %v927_v34, 0 }
 0x196   : > { %v871_v39 = vpop.f32.mrf.mxu2  ;;  %1130 = vmatpush.bf16.msrb.mxu0 %v1118_v38  ;;  %v1121_v40 = vsel %vm946_vm3, %v928_v37, 0 }
 0x197   : > { %v872_v42 = vadd.f32 %v871_v39, %v2732_v0  ;;  %v900_v43 = vpop.f32.mrf.mxu3  ;;  %1144 = vmatpush.bf16.msrb.mxu1 %v1121_v40 }
 0x198   : > { %v901_v44 = vadd.f32 %v900_v43, %v2734_v1 }
 0x199   : > { %v929_v46 = vadd.f32 %v872_v42, %v750_v41 }
 0x19a   : > { %v930_v50 = vadd.f32 %v901_v44, %v751_v57 }
 0x19b   : > { %v931_v52 = vpack.c.bf16 %v929_v46, %v929_v46 }
 0x19c   : > { %v932_v55 = vpack.c.bf16 %v930_v50, %v930_v50 }
 0x19d   : > { %v1152_v62 = vsel %vm946_vm3, %v931_v52, 0 }
 0x19e   : > { %1164 = vmatpush.bf16.msra.mxu2 %v1152_v62  ;;  %v1155_v3 = vsel %vm946_vm3, %v932_v55, 0  ;;  %v873_v4 = vpop.f32.mrf.mxu2 }
 0x19f   : > { %1178 = vmatpush.bf16.msra.mxu3 %v1155_v3  ;;  %v874_v6 = vadd.f32 %v873_v4, %v2732_v0  ;;  %v902_v7 = vpop.f32.mrf.mxu3  ;;  %v2304_v4 = vld [vmem:[%s2847_s29 + $0x28] sm:$0xff] }
 0x1a0   : > { %v903_v9 = vadd.f32 %v902_v7, %v2734_v1 }
 0x1a1   : > { %2139 = vmatmul.msk.bf16.vlgmr.msra.gmra.mxu0 %vm942_vm4, %v2744_v15  ;;  %2145 = vmatmul.msk.bf16.vlgmr.msra.gmra.mxu2 %vm942_vm4, %v2744_v15  ;;  %v933_v10 = vadd.f32 %v874_v6, %v2721_v54  ;;  %v2306_v54 = vld [vmem:[%s2847_s29 + $0x38] sm:$0xff] }
 0x1a2   : > { %2320 = vmatpush.bf16.msrb.mxu2 %v2224_v53  ;;  %2140 = vmatmul.msk.bf16.vlgmr.msra.gmra.mxu1 %vm942_vm4, %v2744_v15  ;;  %v934_v0 = vadd.f32 %v903_v9, %v2723_v56  ;;  %v2307_v56 = vld [vmem:[%s2847_s29 + $0x40] sm:$0xff] }
 0x1a3   : > { %2322 = vmatpush.bf16.msrb.mxu3 %v2228_v58  ;;  %v935_v11 = vpack.c.bf16 %v933_v10, %v933_v10 }
 0x1a4   : > { %2146 = vmatmul.msk.bf16.vlgmr.msra.gmra.mxu3 %vm942_vm4, %v2744_v15  ;;  %v936_v1 = vpack.c.bf16 %v934_v0, %v934_v0 }
 0x1a5   : > { %v1186_v12 = vsel %vm946_vm3, %v935_v11, 0 }
 0x1a6   : > { %2321 = vmatpush.bf16.msrb.mxu2 %v2216_v5  ;;  %1198 = vmatpush.bf16.msra.mxu0 %v1186_v12  ;;  %v1189_v13 = vsel %vm946_vm3, %v936_v1, 0 }
 0x1a7   : > { %2323 = vmatpush.bf16.msrb.mxu3 %v2220_v8  ;;  %1212 = vmatpush.bf16.msra.mxu1 %v1189_v13 }
 0x1b1   : > { %2143 = vmatmul.msk.bf16.vlgmr.msrb.gmra.mxu0 %vm942_vm4, %v2744_v15  ;;  %2236 = vmatmul.msk.bf16.vlgmr.msrb.gmra.mxu2 %vm1529_vm5, %v2306_v54 }
 0x1b2   : > { %2144 = vmatmul.msk.bf16.vlgmr.msrb.gmra.mxu1 %vm942_vm4, %v2744_v15  ;;  %1584 = vmatpush.bf16.msrb.mxu0 %v2224_v53 }
 0x1b3   : > { %1673 = vmatpush.bf16.msrb.mxu1 %v2228_v58 }
 0x1b4   : > { %2252 = vmatmul.msk.bf16.vlgmr.msrb.gmra.mxu3 %vm1529_vm5, %v2306_v54 }
 0x1b6   : > { %1585 = vmatpush.bf16.msrb.mxu0 %v2216_v5  ;;  %v2313_v5 = vld [vmem:[%s2847_s29 + $0x70] sm:$0xff] }
 0x1b7   : > { %1674 = vmatpush.bf16.msrb.mxu1 %v2220_v8 }
 0x1c1   : > { %2147 = vmatmul.msk.bf16.vlgmr.msra.gmra.mxu0 %vm942_vm4, %v2744_v15  ;;  %2237 = vmatmul.msk.bf16.gmra.mxu2 %vm1529_vm5, %v2307_v56 }
 0x1c2   : > { %2148 = vmatmul.msk.bf16.vlgmr.msra.gmra.mxu1 %vm942_vm4, %v2744_v15  ;;  %v2301_v15 = vld [vmem:[%s2847_s29 + $0x10] sm:$0xff] }
 0x1c4   : > { %2253 = vmatmul.msk.bf16.gmra.mxu3 %vm1529_vm5, %v2307_v56 }
 0x1d1   : > { %2229 = vmatmul.msk.bf16.vlgmr.msrb.gmra.mxu0 %vm1529_vm5, %v2299_v14  ;;  %2238 = vmatmul.msk.bf16.gmra.mxu2 %vm1529_vm5, %v2308_v16 }
 0x1d2   : > { %2245 = vmatmul.msk.bf16.vlgmr.msrb.gmra.mxu1 %vm1529_vm5, %v2299_v14 }
 0x1d4   : > { %2254 = vmatmul.msk.bf16.gmra.mxu3 %vm1529_vm5, %v2308_v16 }
 0x1e1   : > { %2230 = vmatmul.msk.bf16.gmra.mxu0 %vm1529_vm5, %v2300_v17  ;;  %2239 = vmatmul.msk.bf16.gmra.mxu2 %vm1529_vm5, %v2309_v49 }
 0x1e2   : > { %2246 = vmatmul.msk.bf16.gmra.mxu1 %vm1529_vm5, %v2300_v17 }
 0x1e4   : > { %2255 = vmatmul.msk.bf16.gmra.mxu3 %vm1529_vm5, %v2309_v49 }
 0x1ee   : > { %v2877_v19 = vpop.f32.mrf.mxu0 }
 0x1ef   : > { %v2879_v51 = vpop.f32.mrf.mxu1 }
 0x1f1   : > { %2231 = vmatmul.msk.bf16.gmra.mxu0 %vm1529_vm5, %v2301_v15  ;;  %2240 = vmatmul.msk.bf16.gmra.mxu2 %vm1529_vm5, %v2310_v18 }
 0x1f2   : > { %2247 = vmatmul.msk.bf16.gmra.mxu1 %vm1529_vm5, %v2301_v15 }
 0x1f4   : > { %2256 = vmatmul.msk.bf16.gmra.mxu3 %vm1529_vm5, %v2310_v18 }
 0x1f6   : > { %v2885_v20 = vpop.f32.mrf.mxu0 }
 0x1f7   : > { %v2887_v21 = vpop.f32.mrf.mxu1 }
 0x1fe   : > { %v2891_v24 = vpop.f32.mrf.mxu0 }
 0x1ff   : > { %v2893_v25 = vpop.f32.mrf.mxu1  ;;  %v1243_v30 = vmul.f32 0.6, %v2891_v24  ;;  %v1255_v31 = vmul.f32 0.13333334, %v2891_v24 }
 0x200   : > { %v1244_v33 = vmul.f32 0.6, %v2893_v25  ;;  %v1256_v37 = vmul.f32 0.13333334, %v2893_v25 }
 0x201   : > { %2232 = vmatmul.msk.bf16.gmra.mxu0 %vm1529_vm5, %v2302_v22  ;;  %2241 = vmatmul.msk.bf16.gmra.mxu2 %vm1529_vm5, %v2311_v23 }
 0x202   : > { %2248 = vmatmul.msk.bf16.gmra.mxu1 %vm1529_vm5, %v2302_v22 }
 0x204   : > { %2257 = vmatmul.msk.bf16.gmra.mxu3 %vm1529_vm5, %v2311_v23 }
 0x206   : > { %v2899_v26 = vpop.f32.mrf.mxu0 }
 0x207   : > { %v2901_v27 = vpop.f32.mrf.mxu1  ;;  %v1245_v45 = vmul.f32 0.6, %v2899_v26  ;;  %v1257_v48 = vmul.f32 0.13333334, %v2899_v26 }
 0x208   : > { %v1246_v50 = vmul.f32 0.6, %v2901_v27  ;;  %v1258_v53 = vmul.f32 0.13333334, %v2901_v27 }
 0x20e   : > { %v1030_v32 = vpop.f32.mrf.mxu0 }
 0x20f   : > { %v1247_v34 = vmul.f32 0.4, %v1030_v32  ;;  %v1259_v35 = vmul.f32 0.8666667, %v1030_v32  ;;  %v1044_v36 = vpop.f32.mrf.mxu1  ;;  %v1267_v7 = vmul.f32 0.6666667, %v1030_v32 }
 0x210   : > { %v1248_v38 = vmul.f32 0.4, %v1044_v36  ;;  %v1260_v39 = vmul.f32 0.8666667, %v1044_v36  ;;  %v1279_v10 = vmul.f32 0.2, %v1030_v32 }
 0x211   : > { %2233 = vmatmul.msk.bf16.gmra.mxu0 %vm1529_vm5, %v2303_v28  ;;  %2242 = vmatmul.msk.bf16.gmra.mxu2 %vm1529_vm5, %v2312_v29  ;;  %v2911_v40 = vadd.f32 %v1247_v34, %v1243_v30  ;;  %v2913_v41 = vadd.f32 %v1259_v35, %v1255_v31  ;;  %v1268_v0 = vmul.f32 0.6666667, %v1044_v36  ;;  %v1280_v1 = vmul.f32 0.2, %v1044_v36 }
 0x212   : > { %2249 = vmatmul.msk.bf16.gmra.mxu1 %vm1529_vm5, %v2303_v28  ;;  %v2917_v42 = vadd.f32 %v1248_v38, %v1244_v33  ;;  %v2919_v43 = vadd.f32 %v1260_v39, %v1256_v37  ;;  %v1423_v39 = vld [vmem:[%s3290_s8] sm:$0x3] }
 0x214   : > { %2258 = vmatmul.msk.bf16.gmra.mxu3 %vm1529_vm5, %v2312_v29  ;;  %v2921_v57 = vpop.f32.mrf.mxu2 }
 0x215   : > { %v2923_v44 = vpop.f32.mrf.mxu3 }
 0x216   : > { %v1032_v59 = vpop.f32.mrf.mxu0 }
 0x217   : > { %v1249_v46 = vmul.f32 0.4, %v1032_v59  ;;  %v1046_v47 = vpop.f32.mrf.mxu1  ;;  %v1261_v52 = vmul.f32 0.8666667, %v1032_v59  ;;  %v1269_v18 = vmul.f32 0.6666667, %v1032_v59 }
 0x218   : > { %v1250_v55 = vmul.f32 0.4, %v1046_v47  ;;  %v1262_v58 = vmul.f32 0.8666667, %v1046_v47  ;;  %v1281_v28 = vmul.f32 0.2, %v1032_v59 }
 0x219   : > { %v2929_v60 = vadd.f32 %v1249_v46, %v1245_v45  ;;  %v2931_v61 = vadd.f32 %v1261_v52, %v1257_v48  ;;  %v1270_v29 = vmul.f32 0.6666667, %v1046_v47  ;;  %v1282_v31 = vmul.f32 0.2, %v1046_v47  ;;  %v2305_v45 = vld [vmem:[%s2847_s29 + $0x30] sm:$0xff]  ;;  %v2314_v46 = vld [vmem:[%s2847_s29 + $0x78] sm:$0xff] }
 0x21a   : > { %v2933_v62 = vadd.f32 %v1250_v55, %v1246_v50  ;;  %v2935_v63 = vadd.f32 %v1262_v58, %v1258_v53  ;;  %v2999_v53 = vperm.slane %v1423_v39, 0  ;;  %v3001_v55 = vperm.slane %v1423_v39, 1  ;;  %s2379_s29 = sshra.s32 %s1900_s24, 4  ;;  %s2380_s29 = int_to_ptr.hbm [resolvable:$true] %s2379_s29 }
 0x21b   : > { %s2381_s26 = scalar_lea.hbm %s2380_s29, 256  ;;  %p2386_p0 = scmp.lt.s32.totalorder %s2380_s29, %s3293_s11 }
 0x21c   : > { %v2937_v2 = vpop.f32.mrf.mxu2  ;;  %p2382_p11 = scmp.ne.s32.totalorder %s2380_s29, %s2381_s26  ;;  %p2387_p1 = scmp.lt.s32.totalorder %s2385_s19, %s2381_s26 }
 0x21d   : > { %v2939_v3 = vpop.f32.mrf.mxu3 }
 0x21e   : > { %v2943_v6 = vpop.f32.mrf.mxu0  ;;  %p2383_p12 = pnand %p2382_p11, %p2529_p5  ;;  %p2388_p2 = por %p2387_p1, %p2386_p0 }
 0x21f   : > { %v1271_v8 = vmul.f32 0.33333334, %v2943_v6  ;;  %v2946_v9 = vpop.f32.mrf.mxu1  ;;  %v1283_v11 = vmul.f32 0.8, %v2943_v6  ;;  %v1291_v48 = vmul.f32 0.73333335, %v2943_v6 }
 0x220   : > { %v1272_v12 = vmul.f32 0.33333334, %v2946_v9  ;;  %v1284_v13 = vmul.f32 0.8, %v2946_v9  ;;  %p2384_p13 = pneg %p2383_p12 }
 0x221   : > { %2234 = vmatmul.msk.bf16.gmra.mxu0 %vm1529_vm5, %v2304_v4  ;;  %2243 = vmatmul.msk.bf16.gmra.mxu2 %vm1529_vm5, %v2313_v5  ;;  %v2953_v54 = vadd.f32 %v1271_v8, %v1267_v7  ;;  %v2957_v56 = vadd.f32 %v1283_v11, %v1279_v10  ;;  %v1292_v7 = vmul.f32 0.73333335, %v2946_v9 }
 0x222   : > { %2250 = vmatmul.msk.bf16.gmra.mxu1 %vm1529_vm5, %v2304_v4  ;;  %v2959_v14 = vadd.f32 %v1272_v12, %v1268_v0  ;;  %v2961_v16 = vadd.f32 %v1284_v13, %v1280_v1  ;;  %v1295_v13 = vmul.f32 0.26666668, %v2921_v57  ;;  %p2389_p3 = pnand %p2388_p2, %p2384_p13 }
 0x223   : > { %3299 = vst [vmem:[#allocation7_spill] sm:$0xff] %v2953_v54 }
 0x224   : > { %2259 = vmatmul.msk.bf16.gmra.mxu3 %vm1529_vm5, %v2313_v5  ;;  %3300 = vst [vmem:[#allocation8_spill] sm:$0xff] %v2957_v56  ;;  %v2963_v17 = vpop.f32.mrf.mxu2  ;;  %v1307_v56 = vmul.f32 0.73333335, %v2921_v57 }
 0x225   : > { %3301 = vst [vmem:[#allocation9_spill] sm:$0xff] %v2959_v14  ;;  %v1343_v50 = vmul.f32 0.13333334, %v2963_v17  ;;  %v1355_v58 = vmul.f32 0.6, %v2963_v17 }
 0x226   : > { %3302 = vst [vmem:[#allocation10_spill] sm:$0xff] %v2961_v16  ;;  %v2967_v15 = vpop.f32.mrf.mxu0 }
 0x227   : > { %v2965_v49 = vpop.f32.mrf.mxu3  ;;  %v1273_v22 = vmul.f32 0.33333334, %v2967_v15  ;;  %v2970_v23 = vpop.f32.mrf.mxu1  ;;  %v1285_v30 = vmul.f32 0.8, %v2967_v15 }
 0x228   : > { %v1274_v32 = vmul.f32 0.33333334, %v2970_v23  ;;  %v1286_v33 = vmul.f32 0.8, %v2970_v23  ;;  %v1344_v8 = vmul.f32 0.13333334, %v2965_v49 }
 0x229   : > { %v2975_v34 = vadd.f32 %v1273_v22, %v1269_v18  ;;  %v2977_v35 = vadd.f32 %v1285_v30, %v1281_v28  ;;  %v1356_v0 = vmul.f32 0.6, %v2965_v49  ;;  %v1296_v22 = vmul.f32 0.26666668, %v2923_v44 }
 0x22a   : > { %v2979_v36 = vadd.f32 %v1274_v32, %v1270_v29  ;;  %v2981_v37 = vadd.f32 %v1286_v33, %v1282_v31  ;;  %v1299_v30 = vadd.f32 %v1295_v13, %v1291_v48 }
 0x22b   : > { %3303 = vst [vmem:[#allocation11_spill] sm:$0xff] %v2975_v34  ;;  %v1300_v33 = vadd.f32 %v1296_v22, %v1292_v7  ;;  %v1294_v22 = vmul.f32 0.73333335, %v2970_v23 }
 0x22c   : > { %3304 = vst [vmem:[#allocation12_spill] sm:$0xff] %v2977_v35  ;;  %v2983_v38 = vpop.f32.mrf.mxu2 }
 0x22d   : > { %3305 = vst [vmem:[#allocation13_spill] sm:$0xff] %v2979_v36  ;;  %v1357_v48 = vmul.f32 0.6, %v2983_v38 }
 0x22e   : > { %3306 = vst [vmem:[#allocation14_spill] sm:$0xff] %v2981_v37  ;;  %v2992_v47 = vpop.f32.mrf.mxu0 }
 0x22f   : > { %v2988_v59 = vpop.f32.mrf.mxu3  ;;  %v2997_v52 = vpop.f32.mrf.mxu1  ;;  %v1339_v4 = vmul.f32 0.8666667, %v2992_v47  ;;  %v1351_v5 = vmul.f32 0.4, %v2992_v47 }
 0x230   : > { %v1340_v10 = vmul.f32 0.8666667, %v2997_v52  ;;  %v1352_v11 = vmul.f32 0.4, %v2997_v52 }
 0x231   : > { %2235 = vmatmul.msk.bf16.gmra.mxu0 %vm1529_vm5, %v2305_v45  ;;  %2244 = vmatmul.msk.bf16.gmra.mxu2 %vm1529_vm5, %v2314_v46  ;;  %v3015_v1 = vadd.f32 %v1343_v50, %v1339_v4  ;;  %v3017_v12 = vadd.f32 %v1355_v58, %v1351_v5  ;;  %v1345_v50 = vmul.f32 0.13333334, %v2983_v38 }
 0x232   : > { %2251 = vmatmul.msk.bf16.gmra.mxu1 %vm1529_vm5, %v2305_v45  ;;  %v3024_v18 = vadd.f32 %v1344_v8, %v1340_v10  ;;  %v3027_v29 = vadd.f32 %v1356_v0, %v1352_v11  ;;  %v1346_v8 = vmul.f32 0.13333334, %v2988_v59  ;;  %v1358_v0 = vmul.f32 0.6, %v2988_v59 }
 0x234   : > { %2260 = vmatmul.msk.bf16.gmra.mxu3 %vm1529_vm5, %v2314_v46  ;;  %v1622_v28 = vpop.f32.mrf.mxu2  ;;  %v1293_v46 = vmul.f32 0.73333335, %v2967_v15 }
 0x235   : > { %v1623_v31 = vadd.f32 %v1622_v28, %v2999_v53 }
 0x236   : > { %v3031_v45 = vpop.f32.mrf.mxu0 }
 0x237   : > { %v1711_v32 = vpop.f32.mrf.mxu3  ;;  %v1812_v58 = vadd.f32 %v1623_v31, %v1299_v30  ;;  %v1341_v4 = vmul.f32 0.8666667, %v3031_v45  ;;  %v3036_v5 = vpop.f32.mrf.mxu1  ;;  %v1353_v7 = vmul.f32 0.4, %v3031_v45  ;;  %v1297_v31 = vmul.f32 0.26666668, %v2937_v2 }
 0x238   : > { %v1712_v39 = vadd.f32 %v1711_v32, %v3001_v55  ;;  %v1342_v11 = vmul.f32 0.8666667, %v3036_v5  ;;  %v1354_v13 = vmul.f32 0.4, %v3036_v5 }
 0x239   : > { %v3045_v30 = vadd.f32 %v1345_v50, %v1341_v4  ;;  %v3050_v37 = vadd.f32 %v1357_v48, %v1353_v7  ;;  %v1301_v16 = vadd.f32 %v1297_v31, %v1293_v46  ;;  %v1308_v46 = vmul.f32 0.73333335, %v2923_v44 }
 0x23a   : > { %v1813_v10 = vadd.f32 %v1712_v39, %v1300_v33  ;;  %v3048_v32 = vadd.f32 %v1346_v8, %v1342_v11  ;;  %v3052_v33 = vadd.f32 %v1358_v0, %v1354_v13  ;;  %v1298_v39 = vmul.f32 0.26666668, %v2939_v3 }
 0x23b   : > { %v1303_v11 = vmul.f32 0.26666668, %v2943_v6  ;;  %v1304_v13 = vmul.f32 0.26666668, %v2946_v9 }
 0x23c   : > { %v1816_v28 = vpack.c.bf16 %v1813_v10, %v1812_v58  ;;  %v1624_v35 = vpop.f32.mrf.mxu2  ;;  %v1302_v4 = vadd.f32 %v1298_v39, %v1294_v22 }
 0x23d   : > { %v1625_v50 = vadd.f32 %v1624_v35, %v2999_v53  ;;  %v1311_v22 = vadd.f32 %v1307_v56, %v1303_v11  ;;  %v1310_v56 = vmul.f32 0.73333335, %v2939_v3 }
 0x23e   : > { %1818 = vst [vmem:[%s3056_s14 + $0x70] sm:$0xff] %v1816_v28  ;;  %v3061_v10 = vpop.f32.mrf.mxu0 }
 0x23f   : > { %v1713_v58 = vpop.f32.mrf.mxu3  ;;  %v1814_v48 = vadd.f32 %v1625_v50, %v1301_v16  ;;  %v3063_v7 = vpop.f32.mrf.mxu1  ;;  %v1312_v16 = vadd.f32 %v1308_v46, %v1304_v13 }
 0x240   : > { %v1714_v8 = vadd.f32 %v1713_v58, %v3001_v55 }
 0x242   : > { %v1815_v0 = vadd.f32 %v1714_v8, %v1302_v4  ;;  %v1305_v8 = vmul.f32 0.26666668, %v2967_v15 }
 0x244   : > { %v1817_v28 = vpack.c.bf16 %v1815_v0, %v1814_v48  ;;  %v1627_v35 = vpop.f32.mrf.mxu2  ;;  %v1306_v48 = vmul.f32 0.26666668, %v2970_v23 }
 0x245   : > { %v1628_v31 = vadd.f32 %v1627_v35, %v2999_v53 }
 0x246   : > { %1819 = vst [vmem:[%s3056_s14 + $0x78] sm:$0xff] %v1817_v28  ;;  %v3072_v58 = vpop.f32.mrf.mxu0  ;;  %v1309_v28 = vmul.f32 0.73333335, %v2937_v2 }
 0x247   : > { %v1716_v39 = vpop.f32.mrf.mxu3  ;;  %v1820_v6 = vadd.f32 %v1628_v31, %v1311_v22  ;;  %v3074_v4 = vpop.f32.mrf.mxu1  ;;  %v1314_v22 = vadd.f32 %v1310_v56, %v1306_v48  ;;  %v1315_v56 = vmul.f32 0.8, %v2921_v57 }
 0x248   : > { %v1717_v50 = vadd.f32 %v1716_v39, %v3001_v55  ;;  %v1313_v13 = vadd.f32 %v1309_v28, %v1305_v8 }
 0x24a   : > { %v1821_v9 = vadd.f32 %v1717_v50, %v1312_v16 }
 0x24c   : > { %v1824_v0 = vpack.c.bf16 %v1821_v9, %v1820_v6  ;;  %v1629_v11 = vpop.f32.mrf.mxu2  ;;  %v1319_v9 = vmul.f32 0.2, %v2992_v47 }
 0x24d   : > { %v1630_v46 = vadd.f32 %v1629_v11, %v2999_v53  ;;  %v1316_v11 = vmul.f32 0.8, %v2923_v44 }
 0x24e   : > { %1826 = vst [vmem:[%s3056_s14 + $0x80] sm:$0xff] %v1824_v0  ;;  %v1587_v39 = vpop.f32.mrf.mxu0  ;;  %v1320_v0 = vmul.f32 0.2, %v2997_v52 }
 0x24f   : > { %v1718_v35 = vpop.f32.mrf.mxu3  ;;  %v1822_v16 = vadd.f32 %v1630_v46, %v1313_v13  ;;  %v1588_v15 = vadd.f32 %v1587_v39, %v2999_v53  ;;  %v1676_v23 = vpop.f32.mrf.mxu1 }
 0x250   : > { %v1719_v31 = vadd.f32 %v1718_v35, %v3001_v55  ;;  %v1677_v6 = vadd.f32 %v1676_v23, %v3001_v55  ;;  %v1323_v35 = vadd.f32 %v1319_v9, %v1315_v56  ;;  %v1324_v39 = vadd.f32 %v1320_v0, %v1316_v11 }
 0x251   : > { %v1756_v8 = vadd.f32 %v1588_v15, %v2877_v19  ;;  %v1223_v56 = vmul.f32 0.46666667, %v2891_v24  ;;  %v1317_v11 = vmul.f32 0.8, %v2937_v2 }
 0x252   : > { %v1823_v50 = vadd.f32 %v1719_v31, %v1314_v22  ;;  %v1757_v48 = vadd.f32 %v1677_v6, %v2879_v51 }
 0x254   : > { %v1825_v28 = vpack.c.bf16 %v1823_v50, %v1822_v16  ;;  %v1760_v13 = vpack.c.bf16 %v1757_v48, %v1756_v8  ;;  %v1632_v46 = vpop.f32.mrf.mxu2  ;;  %v1321_v8 = vmul.f32 0.2, %v3031_v45 }
 0x255   : > { %v1633_v22 = vadd.f32 %v1632_v46, %v2999_v53  ;;  %v1318_v46 = vmul.f32 0.8, %v2939_v3 }
 0x256   : > { %1827 = vst [vmem:[%s3056_s14 + $0x88] sm:$0xff] %v1825_v28  ;;  %v1589_v23 = vpop.f32.mrf.mxu0  ;;  %v1322_v28 = vmul.f32 0.2, %v3036_v5 }
 0x257   : > { %v1721_v31 = vpop.f32.mrf.mxu3  ;;  %1762 = vst [vmem:[%s3056_s14] sm:$0xff] %v1760_v13  ;;  %v1828_v16 = vadd.f32 %v1633_v22, %v1323_v35  ;;  %v1590_v50 = vadd.f32 %v1589_v23, %v2999_v53  ;;  %v1678_v6 = vpop.f32.mrf.mxu1  ;;  %v1224_v13 = vmul.f32 0.46666667, %v2893_v25 }
 0x258   : > { %v1722_v15 = vadd.f32 %v1721_v31, %v3001_v55  ;;  %v1679_v34 = vadd.f32 %v1678_v6, %v3001_v55  ;;  %v1219_v31 = vmul.f32 0.53333336, %v2877_v19 }
 0x259   : > { %v1758_v9 = vadd.f32 %v1590_v50, %v2885_v20 }
 0x25a   : > { %v1829_v36 = vadd.f32 %v1722_v15, %v1324_v39  ;;  %v1759_v0 = vadd.f32 %v1679_v34, %v2887_v21  ;;  %v1325_v39 = vadd.f32 %v1321_v8, %v1317_v11  ;;  %v1326_v34 = vadd.f32 %v1322_v28, %v1318_v46 }
 0x25b   : > { %v1227_v14 = vadd.f32 %v1223_v56, %v1219_v31  ;;  %v1331_v11 = vmul.f32 0.6666667, %v2992_v47  ;;  %v1226_v56 = vmul.f32 0.46666667, %v2901_v27  ;;  %v1328_v31 = vmul.f32 0.33333334, %v2923_v44 }
 0x25c   : > { %v1832_v48 = vpack.c.bf16 %v1829_v36, %v1828_v16  ;;  %v1761_v35 = vpack.c.bf16 %v1759_v0, %v1758_v9  ;;  %v1634_v22 = vpop.f32.mrf.mxu2  ;;  %v1220_v36 = vmul.f32 0.53333336, %v2879_v51 }
 0x25d   : > { %v1635_v15 = vadd.f32 %v1634_v22, %v2999_v53 }
 0x25e   : > { %1834 = vst [vmem:[%s3056_s14 + $0x90] sm:$0xff] %v1832_v48  ;;  %v1592_v50 = vpop.f32.mrf.mxu0  ;;  %v1228_v54 = vadd.f32 %v1224_v13, %v1220_v36  ;;  %v1221_v36 = vmul.f32 0.53333336, %v2885_v20 }
 0x25f   : > { %v1723_v23 = vpop.f32.mrf.mxu3  ;;  %1763 = vst [vmem:[%s3056_s14 + $0x8] sm:$0xff] %v1761_v35  ;;  %v1830_v6 = vadd.f32 %v1635_v15, %v1325_v39  ;;  %v1593_v48 = vadd.f32 %v1592_v50, %v2999_v53  ;;  %v1681_v9 = vpop.f32.mrf.mxu1  ;;  %v1332_v35 = vmul.f32 0.6666667, %v2997_v52  ;;  %v1327_v39 = vmul.f32 0.33333334, %v2921_v57 }
 0x260   : > { %v1724_v16 = vadd.f32 %v1723_v23, %v3001_v55  ;;  %v1682_v8 = vadd.f32 %v1681_v9, %v3001_v55  ;;  %v1225_v23 = vmul.f32 0.46666667, %v2899_v26  ;;  %v1222_v52 = vmul.f32 0.53333336, %v2887_v21 }
 0x261   : > { %v1764_v22 = vadd.f32 %v1593_v48, %v1227_v14  ;;  %v1335_v47 = vadd.f32 %v1331_v11, %v1327_v39  ;;  %v1333_v11 = vmul.f32 0.6666667, %v3031_v45  ;;  %v1235_v39 = vmul.f32 0.93333334, %v2891_v24 }
 0x262   : > { %v1831_v0 = vadd.f32 %v1724_v16, %v1326_v34  ;;  %v1765_v46 = vadd.f32 %v1682_v8, %v1228_v54  ;;  %v1336_v54 = vadd.f32 %v1332_v35, %v1328_v31  ;;  %v1329_v31 = vmul.f32 0.33333334, %v2937_v2 }
 0x264   : > { %v1833_v28 = vpack.c.bf16 %v1831_v0, %v1830_v6  ;;  %v1768_v13 = vpack.c.bf16 %v1765_v46, %v1764_v22  ;;  %v1637_v15 = vpop.f32.mrf.mxu2  ;;  %v1229_v6 = vadd.f32 %v1225_v23, %v1221_v36  ;;  %v1230_v0 = vadd.f32 %v1226_v56, %v1222_v52 }
 0x265   : > { %v1638_v14 = vadd.f32 %v1637_v15, %v2999_v53  ;;  %v1236_v23 = vmul.f32 0.93333334, %v2893_v25  ;;  %v1231_v36 = vmul.f32 0.06666667, %v2877_v19  ;;  %v1337_v45 = vadd.f32 %v1333_v11, %v1329_v31 }
 0x266   : > { %1835 = vst [vmem:[%s3056_s14 + $0x98] sm:$0xff] %v1833_v28  ;;  %v1594_v57 = vpop.f32.mrf.mxu0  ;;  %v1334_v28 = vmul.f32 0.6666667, %v3036_v5  ;;  %v1232_v5 = vmul.f32 0.06666667, %v2879_v51 }
 0x267   : > { %v1726_v34 = vpop.f32.mrf.mxu3  ;;  %1770 = vst [vmem:[%s3056_s14 + $0x10] sm:$0xff] %v1768_v13  ;;  %v1836_v50 = vadd.f32 %v1638_v14, %v1335_v47  ;;  %v1595_v44 = vadd.f32 %v1594_v57, %v2999_v53  ;;  %v1683_v48 = vpop.f32.mrf.mxu1  ;;  %v1330_v13 = vmul.f32 0.33333334, %v2939_v3  ;;  %v1239_v52 = vadd.f32 %v1235_v39, %v1231_v36 }
 0x268   : > { %v1727_v16 = vadd.f32 %v1726_v34, %v3001_v55  ;;  %v1684_v8 = vadd.f32 %v1683_v48, %v3001_v55  ;;  %v1240_v19 = vadd.f32 %v1236_v23, %v1232_v5  ;;  %v1237_v51 = vmul.f32 0.93333334, %v2899_v26 }
 0x269   : > { %v1766_v22 = vadd.f32 %v1595_v44, %v1229_v6  ;;  %v1338_v24 = vadd.f32 %v1334_v28, %v1330_v13  ;;  %v1238_v48 = vmul.f32 0.93333334, %v2901_v27  ;;  %v1234_v28 = vmul.f32 0.06666667, %v2887_v21 }
 0x26a   : > { %v1837_v9 = vadd.f32 %v1727_v16, %v1336_v54  ;;  %v1767_v46 = vadd.f32 %v1684_v8, %v1230_v0  ;;  %v1233_v8 = vmul.f32 0.06666667, %v2885_v20 }
 0x26b   : > { %v1242_v20 = vadd.f32 %v1238_v48, %v1234_v28 }
 0x26c   : > { %v1840_v35 = vpack.c.bf16 %v1837_v9, %v1836_v50  ;;  %v1769_v56 = vpack.c.bf16 %v1767_v46, %v1766_v22  ;;  %v1639_v15 = vpop.f32.mrf.mxu2  ;;  %v1241_v39 = vadd.f32 %v1237_v51, %v1233_v8 }
 0x26d   : > { %v1640_v47 = vadd.f32 %v1639_v15, %v2999_v53 }
 0x26e   : > { %1842 = vst [vmem:[%s3056_s14 + $0xa0] sm:$0xff] %v1840_v35  ;;  %v1597_v34 = vpop.f32.mrf.mxu0 }
 0x26f   : > { %v1728_v14 = vpop.f32.mrf.mxu3  ;;  %1771 = vst [vmem:[%s3056_s14 + $0x18] sm:$0xff] %v1769_v56  ;;  %v1838_v25 = vadd.f32 %v1640_v47, %v1337_v45  ;;  %v1598_v3 = vadd.f32 %v1597_v34, %v2999_v53  ;;  %v1686_v54 = vpop.f32.mrf.mxu1 }
 0x270   : > { %v1729_v2 = vadd.f32 %v1728_v14, %v3001_v55  ;;  %v1687_v57 = vadd.f32 %v1686_v54, %v3001_v55 }
 0x271   : > { %v1772_v50 = vadd.f32 %v1598_v3, %v1239_v52 }
 0x272   : > { %v1839_v16 = vadd.f32 %v1729_v2, %v1338_v24  ;;  %v1773_v44 = vadd.f32 %v1687_v57, %v1240_v19 }
 0x274   : > { %v1841_v6 = vpack.c.bf16 %v1839_v16, %v1838_v25  ;;  %v1776_v9 = vpack.c.bf16 %v1773_v44, %v1772_v50  ;;  %v1642_v0 = vpop.f32.mrf.mxu2 }
 0x275   : > { %v1643_v11 = vadd.f32 %v1642_v0, %v2999_v53 }
 0x276   : > { %1843 = vst [vmem:[%s3056_s14 + $0xa8] sm:$0xff] %v1841_v6  ;;  %v1599_v46 = vpop.f32.mrf.mxu0 }
 0x277   : > { %v1731_v22 = vpop.f32.mrf.mxu3  ;;  %1778 = vst [vmem:[%s3056_s14 + $0x20] sm:$0xff] %v1776_v9  ;;  %v1844_v26 = vadd.f32 %v1643_v11, %v3015_v1  ;;  %v1600_v27 = vadd.f32 %v1599_v46, %v2999_v53  ;;  %v1688_v31 = vpop.f32.mrf.mxu1 }
 0x278   : > { %v1732_v35 = vadd.f32 %v1731_v22, %v3001_v55  ;;  %v1689_v13 = vadd.f32 %v1688_v31, %v3001_v55  ;;  %v1368_v31 = vmul.f32 0.06666667, %v3063_v7 }
 0x279   : > { %v1774_v56 = vadd.f32 %v1600_v27, %v1241_v39  ;;  %v1367_v39 = vmul.f32 0.06666667, %v3061_v10 }
 0x27a   : > { %v1845_v23 = vadd.f32 %v1732_v35, %v3024_v18  ;;  %v1775_v36 = vadd.f32 %v1689_v13, %v1242_v20  ;;  %v1363_v13 = vmul.f32 0.93333334, %v2963_v17 }
 0x27c   : > { %v1848_v15 = vpack.c.bf16 %v1845_v23, %v1844_v26  ;;  %v1777_v21 = vpack.c.bf16 %v1775_v36, %v1774_v56  ;;  %v1644_v45 = vpop.f32.mrf.mxu2  ;;  %v1371_v36 = vadd.f32 %v1367_v39, %v1363_v13 }
 0x27d   : > { %v1645_v47 = vadd.f32 %v1644_v45, %v2999_v53 }
 0x27e   : > { %1850 = vst [vmem:[%s3056_s14 + $0xb0] sm:$0xff] %v1848_v15  ;;  %v1602_v5 = vpop.f32.mrf.mxu0 }
 0x27f   : > { %v1733_v14 = vpop.f32.mrf.mxu3  ;;  %1779 = vst [vmem:[%s3056_s14 + $0x28] sm:$0xff] %v1777_v21  ;;  %v1846_v18 = vadd.f32 %v1645_v47, %v3045_v30  ;;  %v1603_v24 = vadd.f32 %v1602_v5, %v2999_v53  ;;  %v1691_v2 = vpop.f32.mrf.mxu1 }
 0x280   : > { %v1734_v1 = vadd.f32 %v1733_v14, %v3001_v55  ;;  %v1692_v25 = vadd.f32 %v1691_v2, %v3001_v55 }
 0x281   : > { %v1780_v52 = vadd.f32 %v1603_v24, %v2911_v40  ;;  %v1369_v24 = vmul.f32 0.06666667, %v3072_v58 }
 0x282   : > { %v1847_v34 = vadd.f32 %v1734_v1, %v3048_v32  ;;  %v1781_v54 = vadd.f32 %v1692_v25, %v2917_v42 }
 0x284   : > { %v1849_v3 = vpack.c.bf16 %v1847_v34, %v1846_v18  ;;  %v1784_v16 = vpack.c.bf16 %v1781_v54, %v1780_v52  ;;  %v1647_v19 = vpop.f32.mrf.mxu2  ;;  %v1370_v34 = vmul.f32 0.06666667, %v3074_v4  ;;  %v1366_v54 = vmul.f32 0.93333334, %v2988_v59 }
 0x285   : > { %v1648_v57 = vadd.f32 %v1647_v19, %v2999_v53 }
 0x286   : > { %1851 = vst [vmem:[%s3056_s14 + $0xb8] sm:$0xff] %v1849_v3  ;;  %v1604_v6 = vpop.f32.mrf.mxu0  ;;  %v1365_v3 = vmul.f32 0.93333334, %v2983_v38 }
 0x287   : > { %v1736_v50 = vpop.f32.mrf.mxu3  ;;  %1786 = vst [vmem:[%s3056_s14 + $0x30] sm:$0xff] %v1784_v16  ;;  %v1852_v32 = vadd.f32 %v1648_v57, %v3017_v12  ;;  %v1605_v44 = vadd.f32 %v1604_v6, %v2999_v53  ;;  %v1693_v40 = vpop.f32.mrf.mxu1  ;;  %v1374_v6 = vadd.f32 %v1370_v34, %v1366_v54  ;;  %v3311_v54 = vld [vmem:[#allocation8_spill] sm:$0xff] }
 0x288   : > { %v1737_v30 = vadd.f32 %v1736_v50, %v3001_v55  ;;  %v1694_v42 = vadd.f32 %v1693_v40, %v3001_v55  ;;  %v1373_v57 = vadd.f32 %v1369_v24, %v1365_v3 }
 0x289   : > { %v1782_v48 = vadd.f32 %v1605_v44, %v2929_v60 }
 0x28a   : > { %v1853_v51 = vadd.f32 %v1737_v30, %v3027_v29  ;;  %v1783_v0 = vadd.f32 %v1694_v42, %v2933_v62 }
 0x28c   : > { %v1856_v9 = vpack.c.bf16 %v1853_v51, %v1852_v32  ;;  %v1785_v8 = vpack.c.bf16 %v1783_v0, %v1782_v48  ;;  %v1649_v11 = vpop.f32.mrf.mxu2  ;;  %v1379_v48 = vmul.f32 0.53333336, %v3061_v10 }
 0x28d   : > { %v1650_v22 = vadd.f32 %v1649_v11, %v2999_v53 }
 0x28e   : > { %1858 = vst [vmem:[%s3056_s14 + $0xc0] sm:$0xff] %v1856_v9  ;;  %v1607_v35 = vpop.f32.mrf.mxu0  ;;  %v3307_v9 = vld [vmem:[#allocation7_spill] sm:$0xff] }
 0x28f   : > { %v1738_v28 = vpop.f32.mrf.mxu3  ;;  %1787 = vst [vmem:[%s3056_s14 + $0x38] sm:$0xff] %v1785_v8  ;;  %v1854_v29 = vadd.f32 %v1650_v22, %v3050_v37  ;;  %v1608_v46 = vadd.f32 %v1607_v35, %v2999_v53  ;;  %v1696_v26 = vpop.f32.mrf.mxu1  ;;  %v1364_v37 = vmul.f32 0.93333334, %v2965_v49  ;;  %v1380_v8 = vmul.f32 0.53333336, %v3063_v7  ;;  %v3308_v22 = vld [vmem:[#allocation9_spill] sm:$0xff] }
 0x290   : > { %v1739_v12 = vadd.f32 %v1738_v28, %v3001_v55  ;;  %v1697_v62 = vadd.f32 %v1696_v26, %v3001_v55  ;;  %v1376_v35 = vmul.f32 0.46666667, %v2965_v49 }
 0x291   : > { %v1788_v27 = vadd.f32 %v1608_v46, %v2913_v41  ;;  %v1372_v45 = vadd.f32 %v1368_v31, %v1364_v37  ;;  %v1381_v37 = vmul.f32 0.53333336, %v3072_v58 }
 0x292   : > { %v1855_v60 = vadd.f32 %v1739_v12, %v3052_v33  ;;  %v1789_v20 = vadd.f32 %v1697_v62, %v2919_v43  ;;  %v1375_v12 = vmul.f32 0.46666667, %v2963_v17  ;;  %v1384_v39 = vadd.f32 %v1380_v8, %v1376_v35 }
 0x294   : > { %v1857_v23 = vpack.c.bf16 %v1855_v60, %v1854_v29  ;;  %v1792_v56 = vpack.c.bf16 %v1789_v20, %v1788_v27  ;;  %v1652_v15 = vpop.f32.mrf.mxu2  ;;  %v1383_v26 = vadd.f32 %v1379_v48, %v1375_v12 }
 0x295   : > { %v1653_v33 = vadd.f32 %v1652_v15, %v2999_v53 }
 0x296   : > { %1859 = vst [vmem:[%s3056_s14 + $0xc8] sm:$0xff] %v1857_v23  ;;  %v1609_v47 = vpop.f32.mrf.mxu0 }
 0x297   : > { %v1741_v21 = vpop.f32.mrf.mxu3  ;;  %1794 = vst [vmem:[%s3056_s14 + $0x40] sm:$0xff] %v1792_v56  ;;  %v1860_v14 = vadd.f32 %v1653_v33, %v1371_v36  ;;  %v1610_v43 = vadd.f32 %v1609_v47, %v2999_v53  ;;  %v1698_v1 = vpop.f32.mrf.mxu1  ;;  %v3309_v56 = vld [vmem:[#allocation11_spill] sm:$0xff]  ;;  %v1382_v36 = vmul.f32 0.53333336, %v3074_v4  ;;  %v1378_v47 = vmul.f32 0.46666667, %v2988_v59 }
 0x298   : > { %v1742_v41 = vadd.f32 %v1741_v21, %v3001_v55  ;;  %v1699_v18 = vadd.f32 %v1698_v1, %v3001_v55  ;;  %v3310_v21 = vld [vmem:[#allocation13_spill] sm:$0xff] }
 0x299   : > { %v1790_v2 = vadd.f32 %v1610_v43, %v2931_v61  ;;  %v1386_v24 = vadd.f32 %v1382_v36, %v1378_v47 }
 0x29a   : > { %v1861_v5 = vadd.f32 %v1742_v41, %v1372_v45  ;;  %v1791_v52 = vadd.f32 %v1699_v18, %v2935_v63  ;;  %v1377_v41 = vmul.f32 0.46666667, %v2983_v38 }
 0x29c   : > { %v1864_v25 = vpack.c.bf16 %v1861_v5, %v1860_v14  ;;  %v1793_v16 = vpack.c.bf16 %v1791_v52, %v1790_v2  ;;  %v1654_v19 = vpop.f32.mrf.mxu2  ;;  %v1385_v1 = vadd.f32 %v1381_v37, %v1377_v41 }
 0x29d   : > { %v1655_v50 = vadd.f32 %v1654_v19, %v2999_v53 }
 0x29e   : > { %1866 = vst [vmem:[%s3056_s14 + $0xd0] sm:$0xff] %v1864_v25  ;;  %v1612_v32 = vpop.f32.mrf.mxu0 }
 0x29f   : > { %v1743_v30 = vpop.f32.mrf.mxu3  ;;  %1795 = vst [vmem:[%s3056_s14 + $0x48] sm:$0xff] %v1793_v16  ;;  %v1862_v44 = vadd.f32 %v1655_v50, %v1373_v57  ;;  %v1613_v63 = vadd.f32 %v1612_v32, %v2999_v53  ;;  %v1701_v40 = vpop.f32.mrf.mxu1  ;;  %v3312_v57 = vld [vmem:[#allocation10_spill] sm:$0xff] }
 0x2a0   : > { %v1744_v61 = vadd.f32 %v1743_v30, %v3001_v55  ;;  %v1702_v42 = vadd.f32 %v1701_v40, %v3001_v55 }
 0x2a1   : > { %v1796_v0 = vadd.f32 %v1613_v63, %v3307_v9 }
 0x2a2   : > { %v1863_v51 = vadd.f32 %v1744_v61, %v1374_v6  ;;  %v1797_v28 = vadd.f32 %v1702_v42, %v3308_v22  ;;  %v3314_v22 = vld [vmem:[#allocation14_spill] sm:$0xff] }
 0x2a4   : > { %v1865_v11 = vpack.c.bf16 %v1863_v51, %v1862_v44  ;;  %v1800_v29 = vpack.c.bf16 %v1797_v28, %v1796_v0  ;;  %v1657_v46 = vpop.f32.mrf.mxu2  ;;  %v3313_v0 = vld [vmem:[#allocation12_spill] sm:$0xff] }
 0x2a5   : > { %v1658_v60 = vadd.f32 %v1657_v46, %v2999_v53 }
 0x2a6   : > { %1867 = vst [vmem:[%s3056_s14 + $0xd8] sm:$0xff] %v1865_v11  ;;  %v1614_v31 = vpop.f32.mrf.mxu0 }
 0x2a7   : > { %v1746_v62 = vpop.f32.mrf.mxu3  ;;  %1802 = vst [vmem:[%s3056_s14 + $0x50] sm:$0xff] %v1800_v29  ;;  %v1868_v23 = vadd.f32 %v1658_v60, %v1383_v26  ;;  %v1615_v20 = vadd.f32 %v1614_v31, %v2999_v53  ;;  %v1703_v13 = vpop.f32.mrf.mxu1 }
 0x2a8   : > { %v1747_v27 = vadd.f32 %v1746_v62, %v3001_v55  ;;  %v1704_v49 = vadd.f32 %v1703_v13, %v3001_v55 }
 0x2a9   : > { %v1798_v15 = vadd.f32 %v1615_v20, %v3309_v56 }
 0x2aa   : > { %v1869_v17 = vadd.f32 %v1747_v27, %v1384_v39  ;;  %v1799_v45 = vadd.f32 %v1704_v49, %v3310_v21 }
 0x2ac   : > { %v1872_v33 = vpack.c.bf16 %v1869_v17, %v1868_v23  ;;  %v1801_v14 = vpack.c.bf16 %v1799_v45, %v1798_v15  ;;  %v1659_v43 = vpop.f32.mrf.mxu2 }
 0x2ad   : > { %v1660_v5 = vadd.f32 %v1659_v43, %v2999_v53 }
 0x2ae   : > { %1874 = vst [vmem:[%s3056_s14 + $0xe0] sm:$0xff] %v1872_v33  ;;  %v1617_v34 = vpop.f32.mrf.mxu0 }
 0x2af   : > { %v1748_v18 = vpop.f32.mrf.mxu3  ;;  %1803 = vst [vmem:[%s3056_s14 + $0x58] sm:$0xff] %v1801_v14  ;;  %v1870_v25 = vadd.f32 %v1660_v5, %v1385_v1  ;;  %v1618_v52 = vadd.f32 %v1617_v34, %v2999_v53  ;;  %v1706_v38 = vpop.f32.mrf.mxu1 }
 0x2b0   : > { %v1749_v2 = vadd.f32 %v1748_v18, %v3001_v55  ;;  %v1707_v59 = vadd.f32 %v1706_v38, %v3001_v55 }
 0x2b1   : > { %v1804_v16 = vadd.f32 %v1618_v52, %v3311_v54 }
 0x2b2   : > { %v1871_v3 = vadd.f32 %v1749_v2, %v1386_v24  ;;  %v1805_v50 = vadd.f32 %v1707_v59, %v3312_v57 }
 0x2b4   : > { %v1873_v19 = vpack.c.bf16 %v1871_v3, %v1870_v25  ;;  %v1808_v30 = vpack.c.bf16 %v1805_v50, %v1804_v16  ;;  %v1662_v6 = vpop.f32.mrf.mxu2 }
 0x2b5   : > { %v1663_v61 = vadd.f32 %v1662_v6, %v2999_v53 }
 0x2b6   : > { %1875 = vst [vmem:[%s3056_s14 + $0xe8] sm:$0xff] %v1873_v19  ;;  %v1619_v63 = vpop.f32.mrf.mxu0 }
 0x2b7   : > { %v1751_v32 = vpop.f32.mrf.mxu3  ;;  %1810 = vst [vmem:[%s3056_s14 + $0x60] sm:$0xff] %v1808_v30  ;;  %v1876_v40 = vadd.f32 %v1663_v61, %v3061_v10  ;;  %v1620_v51 = vadd.f32 %v1619_v63, %v2999_v53  ;;  %v1708_v42 = vpop.f32.mrf.mxu1 }
 0x2b8   : > { %v1752_v44 = vadd.f32 %v1751_v32, %v3001_v55  ;;  %v1709_v9 = vadd.f32 %v1708_v42, %v3001_v55 }
 0x2b9   : > { %v1806_v8 = vadd.f32 %v1620_v51, %v3313_v0 }
 0x2ba   : > { %v1877_v48 = vadd.f32 %v1752_v44, %v3063_v7  ;;  %v1807_v28 = vadd.f32 %v1709_v9, %v3314_v22 }
 0x2bc   : > { %v1880_v11 = vpack.c.bf16 %v1877_v48, %v1876_v40  ;;  %v1809_v10 = vpack.c.bf16 %v1807_v28, %v1806_v8  ;;  %v1664_v12 = vpop.f32.mrf.mxu2 }
 0x2bd   : > { %v1665_v35 = vadd.f32 %v1664_v12, %v2999_v53 }
 0x2be   : > { %1882 = vst [vmem:[%s3056_s14 + $0xf0] sm:$0xff] %v1880_v11 }
 0x2bf   : > { %v1753_v7 = vpop.f32.mrf.mxu3  ;;  %1811 = vst [vmem:[%s3056_s14 + $0x68] sm:$0xff] %v1809_v10  ;;  %v1878_v46 = vadd.f32 %v1665_v35, %v3072_v58 }
 0x2c0   : > { %v1754_v29 = vadd.f32 %v1753_v7, %v3001_v55 }
 0x2c2   : > { %v1879_v26 = vadd.f32 %v1754_v29, %v3074_v4 }
 0x2c4   : > { %v1881_v60 = vpack.c.bf16 %v1879_v26, %v1878_v46 }
 0x2c6   : > { %1883 = vst [vmem:[%s3056_s14 + $0xf8] sm:$0xff] %v1881_v60 }
 0x2c7   : > { %2392 = shalt.err (!%p2389_p3)
}
 0x2c8   : > { %s2429_s12 = smov 128   ;;  %s2430_s14 = smov 8  }
 0x2c9   : > { %2324 = dma.vmem_to_hbm [thread:$0]  (%p2529_p5), %s1898_s21, 4096, %s1900_s24, %s1885_s25, %s2429_s12, %s2429_s12, %s2430_s14  }
 0x2ca PF: > { %p2330_p4 = scmp.ge.s32.totalorder %s2427_s20, 2  ;;  %s1914_s22 = sand.u32 1, %s2415_s17  }
 0x2cb   : > { %s1915_s30 = scalar_lea.sflag [#allocation3], %s1914_s22 }
 0x2cc   : > { %p2327_p7 = pnand %p2330_p4, %p2533_p6 }
 0x2ce   : > { %p2328_p8 = pneg %p2327_p7 }
 0x2d0   : > { %2410 = dma.done.wait (%p2328_p8), %s1915_s30, 4096  }
 0x2d1   : > { %2412 = vsyncadd (%p2328_p8), %s1915_s30, 4294963200  ;;  %s3315_s29 = sld [smem:[#allocation5_spill]]  ;;  %p21_p9 = scmp.ge.s32.totalorder %s2516_s23, 4  }
 0x2d2   : > { %s3316_s19 = sld [smem:[#allocation6_spill]]  ;;  %s3317_s17 = smov %s2419_s18 }
 0x2d3   : > { %s3319_s20 = smov %s2516_s23  ;;  %23 = sbr.rel (!%p21_p9) target bundleno = 3 (0x3), region = 105 }
 0x2d7   : > { %s3318_s18 = smov %s3315_s29 }
 0x2d8   :  { %1921 = vsyncpa [#allocation3], 1 }
 0x2d9   :  { %1923 = vsyncpa [#allocation3 + $0x1], 1 }

// kernel: tpu_custom_call.1
= control target key start
LH: loop header
LB: loop body
LE: loop exit
PB: predicated region body
PF: predicated region fallthrough
CT: control target
= control target key end

     0   :  { %16 = vsyncpa [#allocation3], 0  ;;  %s3282_s0 = inlined_call_operand.vmem [shape: bf16[2,16,128], index: 0, kind: input, shape index: {}]   ;;  %s3283_s1 = inlined_call_operand.vmem [shape: bf16[2,64,64], index: 1, kind: input, shape index: {}]   ;;  %s3284_s2 = inlined_call_operand.vmem [shape: bf16[2,256,32], index: 2, kind: input, shape index: {}]   ;;  %s3285_s3 = inlined_call_operand.vmem [shape: bf16[128,256], index: 3, kind: input, shape index: {}]   ;;  %s3286_s4 = inlined_call_operand.vmem [shape: f32[1,256], index: 4, kind: input, shape index: {}]   ;;  %s3287_s5 = inlined_call_operand.vmem [shape: bf16[64,256], index: 5, kind: input, shape index: {}]   ;;  %s3288_s6 = inlined_call_operand.vmem [shape: f32[1,256], index: 6, kind: input, shape index: {}]   ;;  %s3289_s7 = inlined_call_operand.vmem [shape: bf16[32,256], index: 7, kind: input, shape index: {}]   ;;  %s3290_s8 = inlined_call_operand.vmem [shape: f32[1,256], index: 8, kind: input, shape index: {}]   ;;  %s3291_s9 = inlined_call_operand.vmem [shape: bf16[8,4], index: 9, kind: input, shape index: {}]   ;;  %s3292_s10 = inlined_call_operand.vmem [shape: bf16[16,8], index: 10, kind: input, shape index: {}]   ;;  %s3293_s11 = inlined_call_operand.hbm [shape: bf16[2,256,256], index: 11, kind: output, shape index: {}]  }
   0x1   :  { %18 = vsyncpa [#allocation3 + $0x1], 0  ;;  %s2491_s17 = smov 0   ;;  %s2493_s18 = smov 0  }
   0x2   :  { %s2495_s19 = smov 0   ;;  %s2497_s20 = smov 0  }
   0x3 LB: > { %3295 = sst [smem:[#allocation5_spill]] %s2423_s19  ;;  %s2512_s21 = sadd.s32 4294967295, %s2427_s20   ;;  %s2427_s20 = sphi %s2497_s20, %s3319_s20   ;;  %s2423_s19 = sphi %s2495_s19, %s3316_s19   ;;  %s2419_s18 = sphi %s2493_s18, %s3318_s18   ;;  %s2415_s17 = sphi %s2491_s17, %s3317_s17  }
   0x4   : > { %s1986_s22 = sadd.s32 4294967294, %s2427_s20   ;;  %s2516_s23 = sadd.s32 1, %s2427_s20  }
   0x5   : > { %s277_s24 = sadd.s32 1, %s2423_s19  ;;  %s274_s25 = ssub.s32 %s2427_s20, %s2516_s23 }
   0x6   : > { %p287_p0 = scmp.ne.s32.totalorder %s2423_s19, %s2419_s18  ;;  %p275_p1 = scmp.eq.s32.totalorder %s274_s25, 0 }
   0x7   : > { %p288_p2 = scmp.eq.s32.totalorder %s2512_s21, 1  ;;  %p293_p3 = scmp.ne.s32.totalorder %s2419_s18, %s2415_s17 }
   0x8   : > { %p294_p4 = scmp.eq.s32.totalorder %s1986_s22, 1  ;;  %p1989_p7 = scmp.ge.s32.totalorder %s2427_s20, 1 }
   0x9   : > { %s2527_s26 = scalar_select %p275_p1, %s2423_s19, %s277_s24  }
   0xa   : > { %p2529_p5 = por %p288_p2, %p287_p0  ;;  %p2533_p6 = por %p294_p4, %p293_p3 }
   0xb   : > { %3296 = sst [smem:[#allocation6_spill]] %s2527_s26  ;;  %p360_p8 = scmp.lt.s32.totalorder %s2427_s20, 3 }
   0xd   : > { %p361_p9 = pnand %p1989_p7, %p360_p8 }
   0xf   : > { %364 = sbr.rel (%p361_p9) target bundleno = 714 (0x2ca), region = 64 }
  0x14   : > { %v2059_v0 = vld [vmem:[%s3285_s3 + $0x70] sm:$0xf]  ;;  %v2286_v1 = vld [vmem:[%s3285_s3 + $0x74] sm:$0xf0]  ;;  %v2285_v2 = vld [vmem:[%s3285_s3 + $0x74] sm:$0xf] }
  0x15   : > { %v2060_v3 = vor.u32 %v2286_v1, %v2059_v0  ;;  %v2061_v4 = vld [vmem:[%s3285_s3 + $0x78] sm:$0xf0]  ;;  %v2051_v5 = vld [vmem:[%s3285_s3 + $0x60] sm:$0xf]  ;;  %v2284_v6 = vld [vmem:[%s3285_s3 + $0x64] sm:$0xf0] }
  0x16   : > { %v2064_v7 = vor.u32 %v2285_v2, %v2061_v4  ;;  %v2283_v8 = vld [vmem:[%s3285_s3 + $0x64] sm:$0xf]  ;;  %v2053_v9 = vld [vmem:[%s3285_s3 + $0x68] sm:$0xf0]  ;;  %v2052_v10 = vor.u32 %v2284_v6, %v2051_v5  ;;  %v2043_v12 = vld [vmem:[%s3285_s3 + $0x50] sm:$0xf] }
  0x17   : > { %539 = vmatpush.bf16.msra.mxu0 %v2060_v3  ;;  %v2056_v11 = vor.u32 %v2283_v8, %v2053_v9  ;;  %v2282_v13 = vld [vmem:[%s3285_s3 + $0x54] sm:$0xf0]  ;;  %v2281_v14 = vld [vmem:[%s3285_s3 + $0x54] sm:$0xf]  ;;  %v2045_v15 = vld [vmem:[%s3285_s3 + $0x58] sm:$0xf0] }
  0x18   : > { %553 = vmatpush.bf16.msra.mxu1 %v2064_v7  ;;  %v2044_v16 = vor.u32 %v2282_v13, %v2043_v12  ;;  %v2048_v17 = vor.u32 %v2281_v14, %v2045_v15  ;;  %v2035_v18 = vld [vmem:[%s3285_s3 + $0x40] sm:$0xf]  ;;  %v2280_v19 = vld [vmem:[%s3285_s3 + $0x44] sm:$0xf0]  ;;  %v2279_v20 = vld [vmem:[%s3285_s3 + $0x44] sm:$0xf] }
  0x19   : > { %v2037_v21 = vld [vmem:[%s3285_s3 + $0x48] sm:$0xf0]  ;;  %v2036_v22 = vor.u32 %v2280_v19, %v2035_v18  ;;  %v2027_v24 = vld [vmem:[%s3285_s3 + $0x30] sm:$0xf]  ;;  %v2278_v25 = vld [vmem:[%s3285_s3 + $0x34] sm:$0xf0] }
  0x1a   : > { %v2040_v23 = vor.u32 %v2279_v20, %v2037_v21  ;;  %v2277_v26 = vld [vmem:[%s3285_s3 + $0x34] sm:$0xf]  ;;  %v2029_v27 = vld [vmem:[%s3285_s3 + $0x38] sm:$0xf0]  ;;  %v2028_v28 = vor.u32 %v2278_v25, %v2027_v24  ;;  %v2019_v30 = vld [vmem:[%s3285_s3 + $0x20] sm:$0xf] }
  0x1b   : > { %540 = vmatpush.bf16.msra.mxu0 %v2052_v10  ;;  %v2032_v29 = vor.u32 %v2277_v26, %v2029_v27  ;;  %v2276_v31 = vld [vmem:[%s3285_s3 + $0x24] sm:$0xf0]  ;;  %p410_p10 = scmp.lt.s32.totalorder %s2512_s21, 1  ;;  %v2275_v32 = vld [vmem:[%s3285_s3 + $0x24] sm:$0xf]  ;;  %vm578_vm0 = vcmask 1041408  }
  0x1c   : > { %554 = vmatpush.bf16.msra.mxu1 %v2056_v11  ;;  %v2021_v33 = vld [vmem:[%s3285_s3 + $0x28] sm:$0xf0]  ;;  %v2020_v34 = vor.u32 %v2276_v31, %v2019_v30  ;;  %v2011_v36 = vld [vmem:[%s3285_s3 + $0x10] sm:$0xf]  ;;  %v2274_v37 = vld [vmem:[%s3285_s3 + $0x14] sm:$0xf0] }
  0x1d   : > { %v2024_v35 = vor.u32 %v2275_v32, %v2021_v33  ;;  %s2619_s26 = scalar_select %p410_p10, %s2512_s21, 1  ;;  %v2273_v38 = vld [vmem:[%s3285_s3 + $0x14] sm:$0xf]  ;;  %v2013_v39 = vld [vmem:[%s3285_s3 + $0x18] sm:$0xf0]  ;;  %v2012_v40 = vor.u32 %v2274_v37, %v2011_v36  ;;  %vm574_vm1 = vcmask 31744  }
  0x1e   : > { %v2016_v41 = vor.u32 %v2273_v38, %v2013_v39  ;;  %v2003_v42 = vld [vmem:[%s3285_s3] sm:$0xf]  ;;  %v2272_v43 = vld [vmem:[%s3285_s3 + $0x4] sm:$0xf0]  ;;  %v2271_v44 = vld [vmem:[%s3285_s3 + $0x4] sm:$0xf] }
  0x1f   : > { %541 = vmatpush.bf16.msra.mxu0 %v2044_v16  ;;  %s2266_s16 = sshll.u32 %s2619_s26, 3  ;;  %v2005_v45 = vld [vmem:[%s3285_s3 + $0x8] sm:$0xf0]  ;;  %v2004_v46 = vor.u32 %v2272_v43, %v2003_v42  ;;  %v447_v49 = vld [vmem:[%s3286_s4] sm:$0x3]  ;;  %s2267_s15 = sshll.u32 %s2619_s26, 5 }
  0x20   : > { %555 = vmatpush.bf16.msra.mxu1 %v2048_v17  ;;  %s414_s12 = scalar_lea.vmem %s3282_s0, %s2266_s16  ;;  %v2008_v47 = vor.u32 %v2271_v44, %v2005_v45  ;;  %v449_v50 = vperm.slane %v447_v49, 0  ;;  %v450_v51 = vperm.slane %v447_v49, 1  ;;  %v426_v5 = vld [vmem:[%s3291_s9] sm:$0xf]  ;;  %v2115_v8 = vld [vmem:[%s3287_s5 + $0x30] sm:$0xf]  ;;  %s419_s24 = scalar_lea.vmem %s3283_s1, %s2267_s15 }
  0x21   : > { %v2270_v48 = vld [vmem:[%s414_s12] sm:$0xff]  ;;  %v2298_v9 = vld [vmem:[%s3287_s5 + $0x34] sm:$0xf0]  ;;  %v2297_v11 = vld [vmem:[%s3287_s5 + $0x34] sm:$0xf]  ;;  %vm834_vm2 = vcmask 523264  }
  0x22   : > { %v2117_v12 = vld [vmem:[%s3287_s5 + $0x38] sm:$0xf0]  ;;  %v2116_v17 = vor.u32 %v2298_v9, %v2115_v8  ;;  %v2107_v19 = vld [vmem:[%s3287_s5 + $0x20] sm:$0xf]  ;;  %v2296_v20 = vld [vmem:[%s3287_s5 + $0x24] sm:$0xf0] }
  0x23   : > { %542 = vmatpush.bf16.msra.mxu0 %v2036_v22  ;;  %v2120_v18 = vor.u32 %v2297_v11, %v2117_v12  ;;  %v2295_v21 = vld [vmem:[%s3287_s5 + $0x24] sm:$0xf]  ;;  %v2109_v22 = vld [vmem:[%s3287_s5 + $0x28] sm:$0xf0]  ;;  %v2099_v31 = vld [vmem:[%s3287_s5 + $0x10] sm:$0xf] }
  0x24   : > { %556 = vmatpush.bf16.msra.mxu1 %v2040_v23  ;;  %v2112_v30 = vor.u32 %v2295_v21, %v2109_v22  ;;  %v2294_v32 = vld [vmem:[%s3287_s5 + $0x14] sm:$0xf0]  ;;  %v2293_v33 = vld [vmem:[%s3287_s5 + $0x14] sm:$0xf]  ;;  %v2291_v37 = vld [vmem:[%s3287_s5 + $0x4] sm:$0xf] }
  0x25   : > { %v2093_v38 = vld [vmem:[%s3287_s5 + $0x8] sm:$0xf0]  ;;  %v2091_v39 = vld [vmem:[%s3287_s5] sm:$0xf]  ;;  %v2289_v45 = vld [vmem:[%s419_s24 + $0x10] sm:$0xff]  ;;  %vm946_vm3 = vcmask 1043456  }
  0x26   : > { %v2287_v43 = vld [vmem:[%s419_s24] sm:$0xff]  ;;  %v2288_v44 = vld [vmem:[%s419_s24 + $0x8] sm:$0xff]  ;;  %vm942_vm4 = vcmask 64512   ;;  %s2268_s22 = sshll.u32 %s2619_s26, 7  ;;  %vm1529_vm5 = vcmask 261120   ;;  %s407_s12 = sand.u32 1, %s2419_s18  }
  0x27   : > { %543 = vmatpush.bf16.msra.mxu0 %v2028_v28  ;;  %s2847_s29 = scalar_lea.vmem %s3284_s2, %s2268_s22  ;;  %s3022_s13 = sshll.u32 %s407_s12, 8 }
  0x28   : > { %557 = vmatpush.bf16.msra.mxu1 %v2032_v29  ;;  %v2108_v29 = vor.u32 %v2296_v20, %v2107_v19  ;;  %s3056_s14 = scalar_lea.vmem [#allocation2], %s3022_s13  ;;  %s2319_s19 = sshll.u32 %s2512_s21, 8 }
  0x29   : > { %s1896_s22 = scalar_lea.hbm %s3293_s11, %s2319_s19  ;;  %s1897_s21 = sshll.u32 %s3056_s14, 4  ;;  %s1898_s21 = int_to_ptr.vmem [resolvable:$true] %s1897_s21 }
  0x2a   : > { %s1885_s25 = scalar_lea.sflag [#allocation3], %s407_s12  ;;  %s2385_s19 = scalar_lea.hbm %s3293_s11, 512 }
  0x2b   : > { %544 = vmatpush.bf16.msra.mxu0 %v2020_v34  ;;  %v2101_v34 = vld [vmem:[%s3287_s5 + $0x18] sm:$0xf0] }
  0x2c   : > { %558 = vmatpush.bf16.msra.mxu1 %v2024_v35  ;;  %v2100_v35 = vor.u32 %v2294_v32, %v2099_v31  ;;  %v2104_v36 = vor.u32 %v2293_v33, %v2101_v34 }
  0x2f   : > { %545 = vmatpush.bf16.msra.mxu0 %v2012_v40  ;;  %v2292_v40 = vld [vmem:[%s3287_s5 + $0x4] sm:$0xf0] }
  0x30   : > { %559 = vmatpush.bf16.msra.mxu1 %v2016_v41  ;;  %v2096_v41 = vor.u32 %v2291_v37, %v2093_v38  ;;  %v2092_v42 = vor.u32 %v2292_v40, %v2091_v39 }
  0x33   : > { %546 = vmatpush.bf16.msra.mxu0 %v2004_v46  ;;  %v2290_v46 = vld [vmem:[%s419_s24 + $0x18] sm:$0xff]  ;;  %s1899_s24 = sshll.u32 %s1896_s22, 4  ;;  %s1900_s24 = int_to_ptr.hbm [resolvable:$true] %s1899_s24 }
  0x34   : > { %560 = vmatpush.bf16.msra.mxu1 %v2008_v47 }
  0x36   : > { %547 = vmatmul.bf16.vlgmr.msra.gmra.mxu0 %v2270_v48 }
  0x37   : > { %561 = vmatmul.bf16.vlgmr.msra.gmra.mxu1 %v2270_v48 }
  0xb3   : > { %v548_v52 = vpop.f32.mrf.mxu0 }
  0xb4   : > { %v549_v53 = vadd.f32 %v548_v52, %v449_v50  ;;  %v562_v54 = vpop.f32.mrf.mxu1 }
  0xb5   : > { %v563_v55 = vadd.f32 %v562_v54, %v450_v51 }
  0xb7   : > { %v567_v56 = vpack.c.bf16 %v563_v55, %v549_v53 }
  0xb9   : > { %v570_v57 = vunpack.c.l.b16 %v567_v56  ;;  %v571_v58 = vunpack.c.h.b16 %v567_v56 }
  0xbb   : > { %v550_v59 = vpop.f32.mrf.mxu0  ;;  %v572_v60 = vpack.c.b16 %v570_v57, %v570_v57  ;;  %v573_v61 = vpack.c.b16 %v571_v58, %v571_v58 }
  0xbc   : > { %v551_v62 = vadd.f32 %v550_v59, %v449_v50  ;;  %v564_v63 = vpop.f32.mrf.mxu1 }
  0xbd   : > { %v565_v0 = vadd.f32 %v564_v63, %v450_v51  ;;  %v580_v1 = vsel %vm578_vm0, %v572_v60, 0  ;;  %v583_v2 = vsel %vm578_vm0, %v573_v61, 0  ;;  %v611_v3 = vrot.slane %v572_v60, 2  ;;  %v768_v63 = vld [vmem:[%s3288_s6] sm:$0x3] }
  0xbe   : > { %592 = vmatpush.bf16.msrb.mxu0 %v580_v1  ;;  %605 = vmatpush.bf16.msrb.mxu1 %v583_v2  ;;  %v612_v4 = vrot.slane %v573_v61, 2  ;;  %v2734_v1 = vperm.slane %v768_v63, 1 }
  0xbf   : > { %v568_v6 = vpack.c.bf16 %v565_v0, %v551_v62  ;;  %v614_v7 = vsel %vm578_vm0, %v611_v3, 0  ;;  %v2732_v0 = vperm.slane %v768_v63, 0 }
  0xc0   : > { %626 = vmatpush.bf16.msra.mxu2 %v614_v7  ;;  %v617_v10 = vsel %vm578_vm0, %v612_v4, 0 }
  0xc1   : > { %639 = vmatpush.bf16.msra.mxu3 %v617_v10  ;;  %v646_v13 = vunpack.c.l.b16 %v568_v6  ;;  %v647_v14 = vunpack.c.h.b16 %v568_v6  ;;  %2065 = vmatmul.msk.bf16.vlgmr.msrb.gmra.mxu0 %vm574_vm1, %v426_v5 }
  0xc2   : > { %2066 = vmatmul.msk.bf16.vlgmr.msrb.gmra.mxu1 %vm574_vm1, %v426_v5 }
  0xc3   : > { %2067 = vmatmul.msk.bf16.vlgmr.msra.gmra.mxu2 %vm574_vm1, %v426_v5  ;;  %v648_v15 = vpack.c.b16 %v646_v13, %v646_v13  ;;  %v649_v16 = vpack.c.b16 %v647_v14, %v647_v14 }
  0xc4   : > { %2068 = vmatmul.msk.bf16.vlgmr.msra.gmra.mxu3 %vm574_vm1, %v426_v5 }
  0xc5   : > { %v651_v23 = vsel %vm578_vm0, %v648_v15, 0  ;;  %v682_v24 = vrot.slane %v648_v15, 2  ;;  %v654_v25 = vsel %vm578_vm0, %v649_v16, 0  ;;  %v683_v26 = vrot.slane %v649_v16, 2  ;;  %v2744_v15 = vld [vmem:[%s3292_s10] sm:$0xff] }
  0xc6   : > { %663 = vmatpush.bf16.msrb.mxu2 %v651_v23  ;;  %676 = vmatpush.bf16.msrb.mxu3 %v654_v25 }
  0xc7   : > { %v685_v27 = vsel %vm578_vm0, %v682_v24, 0  ;;  %v688_v28 = vsel %vm578_vm0, %v683_v26, 0 }
  0xc8   : > { %697 = vmatpush.bf16.msra.mxu0 %v685_v27  ;;  %710 = vmatpush.bf16.msra.mxu1 %v688_v28 }
  0xca   : > { %851 = vmatpush.bf16.msra.mxu2 %v2116_v17  ;;  %880 = vmatpush.bf16.msra.mxu3 %v2120_v18 }
  0xce   : > { %852 = vmatpush.bf16.msra.mxu2 %v2108_v29  ;;  %881 = vmatpush.bf16.msra.mxu3 %v2112_v30 }
  0xd1   : > { %2071 = vmatmul.msk.bf16.vlgmr.msra.gmra.mxu0 %vm574_vm1, %v426_v5 }
  0xd2   : > { %853 = vmatpush.bf16.msra.mxu2 %v2100_v35  ;;  %882 = vmatpush.bf16.msra.mxu3 %v2104_v36 }
  0xd3   : > { %2072 = vmatmul.msk.bf16.vlgmr.msra.gmra.mxu1 %vm574_vm1, %v426_v5  ;;  %2069 = vmatmul.msk.bf16.vlgmr.msrb.gmra.mxu2 %vm574_vm1, %v426_v5 }
  0xd4   : > { %2070 = vmatmul.msk.bf16.vlgmr.msrb.gmra.mxu3 %vm574_vm1, %v426_v5 }
  0xd6   : > { %883 = vmatpush.bf16.msra.mxu3 %v2096_v41  ;;  %854 = vmatpush.bf16.msra.mxu2 %v2092_v42 }
  0xe3   : > { %2121 = vmatmul.msk.bf16.vlgmr.msra.gmra.mxu2 %vm834_vm2, %v2287_v43 }
  0xe4   : > { %2125 = vmatmul.msk.bf16.vlgmr.msra.gmra.mxu3 %vm834_vm2, %v2287_v43 }
  0xf3   : > { %2122 = vmatmul.msk.bf16.gmra.mxu2 %vm834_vm2, %v2288_v44 }
  0xf4   : > { %2126 = vmatmul.msk.bf16.gmra.mxu3 %vm834_vm2, %v2288_v44 }
 0x103   : > { %2123 = vmatmul.msk.bf16.gmra.mxu2 %vm834_vm2, %v2289_v45 }
 0x104   : > { %2127 = vmatmul.msk.bf16.gmra.mxu3 %vm834_vm2, %v2289_v45 }
 0x113   : > { %2124 = vmatmul.msk.bf16.gmra.mxu2 %vm834_vm2, %v2290_v46 }
 0x114   : > { %2128 = vmatmul.msk.bf16.gmra.mxu3 %vm834_vm2, %v2290_v46 }
 0x13e   : > { %v594_v47 = vpop.f32.mrf.mxu0 }
 0x13f   : > { %v607_v48 = vpop.f32.mrf.mxu1  ;;  %v716_v8 = vmul.f32 0.5714286, %v594_v47  ;;  %v722_v25 = vmul.f32 0.14285715, %v594_v47 }
 0x140   : > { %v717_v11 = vmul.f32 0.5714286, %v607_v48  ;;  %v723_v28 = vmul.f32 0.14285715, %v607_v48 }
 0x146   : > { %v2717_v49 = vpop.f32.mrf.mxu2  ;;  %v596_v50 = vpop.f32.mrf.mxu0 }
 0x147   : > { %v2719_v51 = vpop.f32.mrf.mxu3  ;;  %v609_v52 = vpop.f32.mrf.mxu1  ;;  %v718_v9 = vmul.f32 0.42857143, %v2717_v49  ;;  %v724_v26 = vmul.f32 0.85714287, %v2717_v49  ;;  %v728_v45 = vmul.f32 0.71428573, %v2717_v49 }
 0x148   : > { %v719_v12 = vmul.f32 0.42857143, %v2719_v51  ;;  %v725_v29 = vmul.f32 0.85714287, %v2719_v51 }
 0x149   : > { %v720_v18 = vadd.f32 %v718_v9, %v716_v8  ;;  %v726_v34 = vadd.f32 %v724_v26, %v722_v25 }
 0x14a   : > { %v721_v21 = vadd.f32 %v719_v12, %v717_v11  ;;  %v727_v37 = vadd.f32 %v725_v29, %v723_v28 }
 0x14e   : > { %v630_v53 = vpop.f32.mrf.mxu2  ;;  %v2721_v54 = vpop.f32.mrf.mxu0 }
 0x14f   : > { %v643_v55 = vpop.f32.mrf.mxu3 }
 0x150   : > { %v2723_v56 = vpop.f32.mrf.mxu1 }
 0x156   : > { %v2725_v57 = vpop.f32.mrf.mxu2  ;;  %v701_v58 = vpop.f32.mrf.mxu0 }
 0x157   : > { %v2727_v59 = vpop.f32.mrf.mxu3  ;;  %v730_v41 = vmul.f32 0.2857143, %v2725_v57  ;;  %v736_v63 = vmul.f32 0.71428573, %v2725_v57 }
 0x158   : > { %v714_v60 = vpop.f32.mrf.mxu1  ;;  %v731_v43 = vmul.f32 0.2857143, %v2727_v59 }
 0x159   : > { %v732_v52 = vadd.f32 %v730_v41, %v728_v45  ;;  %v2318_v45 = vld [vmem:[%s3289_s7 + $0x14] sm:$0xf0] }
 0x15e   : > { %v667_v61 = vpop.f32.mrf.mxu2 }
 0x15f   : > { %v680_v62 = vpop.f32.mrf.mxu3 }
 0x166   : > { %v856_v2 = vpop.f32.mrf.mxu2 }
 0x167   : > { %v857_v3 = vadd.f32 %v856_v2, %v2732_v0  ;;  %v885_v4 = vpop.f32.mrf.mxu3 }
 0x168   : > { %v886_v5 = vadd.f32 %v885_v4, %v2734_v1 }
 0x169   : > { %v905_v6 = vadd.f32 %v857_v3, %v594_v47  ;;  %v729_v47 = vmul.f32 0.71428573, %v2719_v51  ;;  %v737_v3 = vmul.f32 0.71428573, %v2727_v59 }
 0x16a   : > { %v906_v7 = vadd.f32 %v886_v5, %v607_v48  ;;  %v734_v5 = vmul.f32 0.2857143, %v2717_v49  ;;  %v740_v49 = vmul.f32 0.85714287, %v2725_v57 }
 0x16b   : > { %v907_v10 = vpack.c.bf16 %v905_v6, %v905_v6  ;;  %v733_v58 = vadd.f32 %v731_v43, %v729_v47  ;;  %v2317_v47 = vld [vmem:[%s3289_s7 + $0x14] sm:$0xf] }
 0x16c   : > { %v908_v13 = vpack.c.bf16 %v906_v7, %v906_v7  ;;  %v735_v7 = vmul.f32 0.2857143, %v2719_v51  ;;  %v741_v51 = vmul.f32 0.85714287, %v2727_v59 }
 0x16d   : > { %v948_v14 = vsel %vm946_vm3, %v907_v10, 0  ;;  %v738_v10 = vadd.f32 %v736_v63, %v734_v5  ;;  %v2315_v63 = vld [vmem:[%s3289_s7 + $0x4] sm:$0xf] }
 0x16e   : > { %v858_v16 = vpop.f32.mrf.mxu2  ;;  %960 = vmatpush.bf16.msrb.mxu0 %v948_v14  ;;  %v951_v17 = vsel %vm946_vm3, %v908_v13, 0  ;;  %v739_v13 = vadd.f32 %v737_v3, %v735_v7 }
 0x16f   : > { %v859_v19 = vadd.f32 %v858_v16, %v2732_v0  ;;  %v887_v20 = vpop.f32.mrf.mxu3  ;;  %974 = vmatpush.bf16.msrb.mxu1 %v951_v17 }
 0x170   : > { %v888_v22 = vadd.f32 %v887_v20, %v2734_v1  ;;  %v743_v20 = vmul.f32 0.14285715, %v2723_v56 }
 0x171   : > { %v909_v23 = vadd.f32 %v859_v19, %v720_v18  ;;  %2133 = vmatmul.msk.bf16.vlgmr.msrb.gmra.mxu0 %vm942_vm4, %v2744_v15  ;;  %v742_v18 = vmul.f32 0.14285715, %v2721_v54 }
 0x172   : > { %v910_v24 = vadd.f32 %v888_v22, %v721_v21  ;;  %2134 = vmatmul.msk.bf16.vlgmr.msrb.gmra.mxu1 %vm942_vm4, %v2744_v15  ;;  %v745_v28 = vadd.f32 %v743_v20, %v741_v51 }
 0x173   : > { %v911_v27 = vpack.c.bf16 %v909_v23, %v909_v23  ;;  %v744_v25 = vadd.f32 %v742_v18, %v740_v49  ;;  %v2309_v49 = vld [vmem:[%s2847_s29 + $0x50] sm:$0xff]  ;;  %v2310_v18 = vld [vmem:[%s2847_s29 + $0x58] sm:$0xff] }
 0x174   : > { %v912_v30 = vpack.c.bf16 %v910_v24, %v910_v24 }
 0x175   : > { %v982_v31 = vsel %vm946_vm3, %v911_v27, 0 }
 0x176   : > { %v861_v32 = vpop.f32.mrf.mxu2  ;;  %994 = vmatpush.bf16.msra.mxu0 %v982_v31  ;;  %v985_v33 = vsel %vm946_vm3, %v912_v30, 0 }
 0x177   : > { %v862_v35 = vadd.f32 %v861_v32, %v2732_v0  ;;  %v890_v36 = vpop.f32.mrf.mxu3  ;;  %1008 = vmatpush.bf16.msra.mxu1 %v985_v33  ;;  %v746_v32 = vmul.f32 0.42857143, %v2725_v57  ;;  %v748_v33 = vmul.f32 0.5714286, %v2721_v54 }
 0x178   : > { %v891_v38 = vadd.f32 %v890_v36, %v2734_v1  ;;  %v749_v36 = vmul.f32 0.5714286, %v2723_v56 }
 0x179   : > { %v913_v39 = vadd.f32 %v862_v35, %v726_v34  ;;  %v747_v35 = vmul.f32 0.42857143, %v2727_v59  ;;  %v750_v41 = vadd.f32 %v748_v33, %v746_v32  ;;  %v2223_v59 = vld [vmem:[%s3289_s7 + $0x10] sm:$0xf] }
 0x17a   : > { %v914_v40 = vadd.f32 %v891_v38, %v727_v37 }
 0x17b   : > { %v915_v42 = vpack.c.bf16 %v913_v39, %v913_v39  ;;  %v751_v57 = vadd.f32 %v749_v36, %v747_v35 }
 0x17c   : > { %v916_v44 = vpack.c.bf16 %v914_v40, %v914_v40 }
 0x17d   : > { %v1016_v46 = vsel %vm946_vm3, %v915_v42, 0 }
 0x17e   : > { %v863_v48 = vpop.f32.mrf.mxu2  ;;  %1028 = vmatpush.bf16.msrb.mxu0 %v1016_v46  ;;  %v1019_v50 = vsel %vm946_vm3, %v916_v44, 0 }
 0x17f   : > { %v864_v53 = vadd.f32 %v863_v48, %v2732_v0  ;;  %v892_v55 = vpop.f32.mrf.mxu3  ;;  %1042 = vmatpush.bf16.msrb.mxu1 %v1019_v50  ;;  %v2225_v48 = vld [vmem:[%s3289_s7 + $0x18] sm:$0xf0] }
 0x180   : > { %v893_v60 = vadd.f32 %v892_v55, %v2734_v1 }
 0x181   : > { %v917_v61 = vadd.f32 %v864_v53, %v732_v52  ;;  %2135 = vmatmul.msk.bf16.vlgmr.msra.gmra.mxu0 %vm942_vm4, %v2744_v15  ;;  %v2224_v53 = vor.u32 %v2318_v45, %v2223_v59 }
 0x182   : > { %v918_v62 = vadd.f32 %v893_v60, %v733_v58  ;;  %2136 = vmatmul.msk.bf16.vlgmr.msra.gmra.mxu1 %vm942_vm4, %v2744_v15  ;;  %v2228_v58 = vor.u32 %v2317_v47, %v2225_v48  ;;  %v2215_v60 = vld [vmem:[%s3289_s7] sm:$0xf] }
 0x183   : > { %v919_v2 = vpack.c.bf16 %v917_v61, %v917_v61  ;;  %v2316_v61 = vld [vmem:[%s3289_s7 + $0x4] sm:$0xf0] }
 0x184   : > { %v920_v4 = vpack.c.bf16 %v918_v62, %v918_v62  ;;  %v2216_v5 = vor.u32 %v2316_v61, %v2215_v60 }
 0x185   : > { %v1050_v6 = vsel %vm946_vm3, %v919_v2, 0  ;;  %v2217_v2 = vld [vmem:[%s3289_s7 + $0x8] sm:$0xf0] }
 0x186   : > { %v866_v8 = vpop.f32.mrf.mxu2  ;;  %1062 = vmatpush.bf16.msra.mxu0 %v1050_v6  ;;  %v1053_v9 = vsel %vm946_vm3, %v920_v4, 0 }
 0x187   : > { %v867_v11 = vadd.f32 %v866_v8, %v2732_v0  ;;  %v895_v12 = vpop.f32.mrf.mxu3  ;;  %1076 = vmatpush.bf16.msra.mxu1 %v1053_v9  ;;  %v2220_v8 = vor.u32 %v2315_v63, %v2217_v2 }
 0x188   : > { %v896_v14 = vadd.f32 %v895_v12, %v2734_v1 }
 0x189   : > { %v921_v16 = vadd.f32 %v867_v11, %v738_v10 }
 0x18a   : > { %v922_v17 = vadd.f32 %v896_v14, %v739_v13  ;;  %v2299_v14 = vld [vmem:[%s2847_s29] sm:$0xff] }
 0x18b   : > { %v923_v19 = vpack.c.bf16 %v921_v16, %v921_v16  ;;  %v2308_v16 = vld [vmem:[%s2847_s29 + $0x48] sm:$0xff] }
 0x18c   : > { %v924_v21 = vpack.c.bf16 %v922_v17, %v922_v17  ;;  %v2300_v17 = vld [vmem:[%s2847_s29 + $0x8] sm:$0xff] }
 0x18d   : > { %v1084_v22 = vsel %vm946_vm3, %v923_v19, 0 }
 0x18e   : > { %v868_v23 = vpop.f32.mrf.mxu2  ;;  %1096 = vmatpush.bf16.msrb.mxu2 %v1084_v22  ;;  %v1087_v24 = vsel %vm946_vm3, %v924_v21, 0  ;;  %v2302_v22 = vld [vmem:[%s2847_s29 + $0x18] sm:$0xff] }
 0x18f   : > { %v869_v26 = vadd.f32 %v868_v23, %v2732_v0  ;;  %v897_v27 = vpop.f32.mrf.mxu3  ;;  %1110 = vmatpush.bf16.msrb.mxu3 %v1087_v24  ;;  %v2311_v23 = vld [vmem:[%s2847_s29 + $0x60] sm:$0xff] }
 0x190   : > { %v898_v29 = vadd.f32 %v897_v27, %v2734_v1 }
 0x191   : > { %v925_v30 = vadd.f32 %v869_v26, %v744_v25  ;;  %2137 = vmatmul.msk.bf16.vlgmr.msrb.gmra.mxu0 %vm942_vm4, %v2744_v15  ;;  %2141 = vmatmul.msk.bf16.vlgmr.msrb.gmra.mxu2 %vm942_vm4, %v2744_v15 }
 0x192   : > { %v926_v31 = vadd.f32 %v898_v29, %v745_v28  ;;  %2138 = vmatmul.msk.bf16.vlgmr.msrb.gmra.mxu1 %vm942_vm4, %v2744_v15  ;;  %2142 = vmatmul.msk.bf16.vlgmr.msrb.gmra.mxu3 %vm942_vm4, %v2744_v15  ;;  %v2303_v28 = vld [vmem:[%s2847_s29 + $0x20] sm:$0xff]  ;;  %v2312_v29 = vld [vmem:[%s2847_s29 + $0x68] sm:$0xff] }
 0x193   : > { %v927_v34 = vpack.c.bf16 %v925_v30, %v925_v30 }
 0x194   : > { %v928_v37 = vpack.c.bf16 %v926_v31, %v926_v31 }
 0x195   : > { %v1118_v38 = vsel %vm946_vm3, %v927_v34, 0 }
 0x196   : > { %v871_v39 = vpop.f32.mrf.mxu2  ;;  %1130 = vmatpush.bf16.msrb.mxu0 %v1118_v38  ;;  %v1121_v40 = vsel %vm946_vm3, %v928_v37, 0 }
 0x197   : > { %v872_v42 = vadd.f32 %v871_v39, %v2732_v0  ;;  %v900_v43 = vpop.f32.mrf.mxu3  ;;  %1144 = vmatpush.bf16.msrb.mxu1 %v1121_v40 }
 0x198   : > { %v901_v44 = vadd.f32 %v900_v43, %v2734_v1 }
 0x199   : > { %v929_v46 = vadd.f32 %v872_v42, %v750_v41 }
 0x19a   : > { %v930_v50 = vadd.f32 %v901_v44, %v751_v57 }
 0x19b   : > { %v931_v52 = vpack.c.bf16 %v929_v46, %v929_v46 }
 0x19c   : > { %v932_v55 = vpack.c.bf16 %v930_v50, %v930_v50 }
 0x19d   : > { %v1152_v62 = vsel %vm946_vm3, %v931_v52, 0 }
 0x19e   : > { %1164 = vmatpush.bf16.msra.mxu2 %v1152_v62  ;;  %v1155_v3 = vsel %vm946_vm3, %v932_v55, 0  ;;  %v873_v4 = vpop.f32.mrf.mxu2 }
 0x19f   : > { %1178 = vmatpush.bf16.msra.mxu3 %v1155_v3  ;;  %v874_v6 = vadd.f32 %v873_v4, %v2732_v0  ;;  %v902_v7 = vpop.f32.mrf.mxu3  ;;  %v2304_v4 = vld [vmem:[%s2847_s29 + $0x28] sm:$0xff] }
 0x1a0   : > { %v903_v9 = vadd.f32 %v902_v7, %v2734_v1 }
 0x1a1   : > { %2139 = vmatmul.msk.bf16.vlgmr.msra.gmra.mxu0 %vm942_vm4, %v2744_v15  ;;  %2145 = vmatmul.msk.bf16.vlgmr.msra.gmra.mxu2 %vm942_vm4, %v2744_v15  ;;  %v933_v10 = vadd.f32 %v874_v6, %v2721_v54  ;;  %v2306_v54 = vld [vmem:[%s2847_s29 + $0x38] sm:$0xff] }
 0x1a2   : > { %2320 = vmatpush.bf16.msrb.mxu2 %v2224_v53  ;;  %2140 = vmatmul.msk.bf16.vlgmr.msra.gmra.mxu1 %vm942_vm4, %v2744_v15  ;;  %v934_v0 = vadd.f32 %v903_v9, %v2723_v56  ;;  %v2307_v56 = vld [vmem:[%s2847_s29 + $0x40] sm:$0xff] }
 0x1a3   : > { %2322 = vmatpush.bf16.msrb.mxu3 %v2228_v58  ;;  %v935_v11 = vpack.c.bf16 %v933_v10, %v933_v10 }
 0x1a4   : > { %2146 = vmatmul.msk.bf16.vlgmr.msra.gmra.mxu3 %vm942_vm4, %v2744_v15  ;;  %v936_v1 = vpack.c.bf16 %v934_v0, %v934_v0 }
 0x1a5   : > { %v1186_v12 = vsel %vm946_vm3, %v935_v11, 0 }
 0x1a6   : > { %2321 = vmatpush.bf16.msrb.mxu2 %v2216_v5  ;;  %1198 = vmatpush.bf16.msra.mxu0 %v1186_v12  ;;  %v1189_v13 = vsel %vm946_vm3, %v936_v1, 0 }
 0x1a7   : > { %2323 = vmatpush.bf16.msrb.mxu3 %v2220_v8  ;;  %1212 = vmatpush.bf16.msra.mxu1 %v1189_v13 }
 0x1b1   : > { %2143 = vmatmul.msk.bf16.vlgmr.msrb.gmra.mxu0 %vm942_vm4, %v2744_v15  ;;  %2236 = vmatmul.msk.bf16.vlgmr.msrb.gmra.mxu2 %vm1529_vm5, %v2306_v54 }
 0x1b2   : > { %2144 = vmatmul.msk.bf16.vlgmr.msrb.gmra.mxu1 %vm942_vm4, %v2744_v15  ;;  %1584 = vmatpush.bf16.msrb.mxu0 %v2224_v53 }
 0x1b3   : > { %1673 = vmatpush.bf16.msrb.mxu1 %v2228_v58 }
 0x1b4   : > { %2252 = vmatmul.msk.bf16.vlgmr.msrb.gmra.mxu3 %vm1529_vm5, %v2306_v54 }
 0x1b6   : > { %1585 = vmatpush.bf16.msrb.mxu0 %v2216_v5  ;;  %v2313_v5 = vld [vmem:[%s2847_s29 + $0x70] sm:$0xff] }
 0x1b7   : > { %1674 = vmatpush.bf16.msrb.mxu1 %v2220_v8 }
 0x1c1   : > { %2147 = vmatmul.msk.bf16.vlgmr.msra.gmra.mxu0 %vm942_vm4, %v2744_v15  ;;  %2237 = vmatmul.msk.bf16.gmra.mxu2 %vm1529_vm5, %v2307_v56 }
 0x1c2   : > { %2148 = vmatmul.msk.bf16.vlgmr.msra.gmra.mxu1 %vm942_vm4, %v2744_v15  ;;  %v2301_v15 = vld [vmem:[%s2847_s29 + $0x10] sm:$0xff] }
 0x1c4   : > { %2253 = vmatmul.msk.bf16.gmra.mxu3 %vm1529_vm5, %v2307_v56 }
 0x1d1   : > { %2229 = vmatmul.msk.bf16.vlgmr.msrb.gmra.mxu0 %vm1529_vm5, %v2299_v14  ;;  %2238 = vmatmul.msk.bf16.gmra.mxu2 %vm1529_vm5, %v2308_v16 }
 0x1d2   : > { %2245 = vmatmul.msk.bf16.vlgmr.msrb.gmra.mxu1 %vm1529_vm5, %v2299_v14 }
 0x1d4   : > { %2254 = vmatmul.msk.bf16.gmra.mxu3 %vm1529_vm5, %v2308_v16 }
 0x1e1   : > { %2230 = vmatmul.msk.bf16.gmra.mxu0 %vm1529_vm5, %v2300_v17  ;;  %2239 = vmatmul.msk.bf16.gmra.mxu2 %vm1529_vm5, %v2309_v49 }
 0x1e2   : > { %2246 = vmatmul.msk.bf16.gmra.mxu1 %vm1529_vm5, %v2300_v17 }
 0x1e4   : > { %2255 = vmatmul.msk.bf16.gmra.mxu3 %vm1529_vm5, %v2309_v49 }
 0x1ee   : > { %v2877_v19 = vpop.f32.mrf.mxu0 }
 0x1ef   : > { %v2879_v51 = vpop.f32.mrf.mxu1 }
 0x1f1   : > { %2231 = vmatmul.msk.bf16.gmra.mxu0 %vm1529_vm5, %v2301_v15  ;;  %2240 = vmatmul.msk.bf16.gmra.mxu2 %vm1529_vm5, %v2310_v18 }
 0x1f2   : > { %2247 = vmatmul.msk.bf16.gmra.mxu1 %vm1529_vm5, %v2301_v15 }
 0x1f4   : > { %2256 = vmatmul.msk.bf16.gmra.mxu3 %vm1529_vm5, %v2310_v18 }
 0x1f6   : > { %v2885_v20 = vpop.f32.mrf.mxu0 }
 0x1f7   : > { %v2887_v21 = vpop.f32.mrf.mxu1 }
 0x1fe   : > { %v2891_v24 = vpop.f32.mrf.mxu0 }
 0x1ff   : > { %v2893_v25 = vpop.f32.mrf.mxu1  ;;  %v1243_v30 = vmul.f32 0.6, %v2891_v24  ;;  %v1255_v31 = vmul.f32 0.13333334, %v2891_v24 }
 0x200   : > { %v1244_v33 = vmul.f32 0.6, %v2893_v25  ;;  %v1256_v37 = vmul.f32 0.13333334, %v2893_v25 }
 0x201   : > { %2232 = vmatmul.msk.bf16.gmra.mxu0 %vm1529_vm5, %v2302_v22  ;;  %2241 = vmatmul.msk.bf16.gmra.mxu2 %vm1529_vm5, %v2311_v23 }
 0x202   : > { %2248 = vmatmul.msk.bf16.gmra.mxu1 %vm1529_vm5, %v2302_v22 }
 0x204   : > { %2257 = vmatmul.msk.bf16.gmra.mxu3 %vm1529_vm5, %v2311_v23 }
 0x206   : > { %v2899_v26 = vpop.f32.mrf.mxu0 }
 0x207   : > { %v2901_v27 = vpop.f32.mrf.mxu1  ;;  %v1245_v45 = vmul.f32 0.6, %v2899_v26  ;;  %v1257_v48 = vmul.f32 0.13333334, %v2899_v26 }
 0x208   : > { %v1246_v50 = vmul.f32 0.6, %v2901_v27  ;;  %v1258_v53 = vmul.f32 0.13333334, %v2901_v27 }
 0x20e   : > { %v1030_v32 = vpop.f32.mrf.mxu0 }
 0x20f   : > { %v1247_v34 = vmul.f32 0.4, %v1030_v32  ;;  %v1259_v35 = vmul.f32 0.8666667, %v1030_v32  ;;  %v1044_v36 = vpop.f32.mrf.mxu1  ;;  %v1267_v7 = vmul.f32 0.6666667, %v1030_v32 }
 0x210   : > { %v1248_v38 = vmul.f32 0.4, %v1044_v36  ;;  %v1260_v39 = vmul.f32 0.8666667, %v1044_v36  ;;  %v1279_v10 = vmul.f32 0.2, %v1030_v32 }
 0x211   : > { %2233 = vmatmul.msk.bf16.gmra.mxu0 %vm1529_vm5, %v2303_v28  ;;  %2242 = vmatmul.msk.bf16.gmra.mxu2 %vm1529_vm5, %v2312_v29  ;;  %v2911_v40 = vadd.f32 %v1247_v34, %v1243_v30  ;;  %v2913_v41 = vadd.f32 %v1259_v35, %v1255_v31  ;;  %v1268_v0 = vmul.f32 0.6666667, %v1044_v36  ;;  %v1280_v1 = vmul.f32 0.2, %v1044_v36 }
 0x212   : > { %2249 = vmatmul.msk.bf16.gmra.mxu1 %vm1529_vm5, %v2303_v28  ;;  %v2917_v42 = vadd.f32 %v1248_v38, %v1244_v33  ;;  %v2919_v43 = vadd.f32 %v1260_v39, %v1256_v37  ;;  %v1423_v39 = vld [vmem:[%s3290_s8] sm:$0x3] }
 0x214   : > { %2258 = vmatmul.msk.bf16.gmra.mxu3 %vm1529_vm5, %v2312_v29  ;;  %v2921_v57 = vpop.f32.mrf.mxu2 }
 0x215   : > { %v2923_v44 = vpop.f32.mrf.mxu3 }
 0x216   : > { %v1032_v59 = vpop.f32.mrf.mxu0 }
 0x217   : > { %v1249_v46 = vmul.f32 0.4, %v1032_v59  ;;  %v1046_v47 = vpop.f32.mrf.mxu1  ;;  %v1261_v52 = vmul.f32 0.8666667, %v1032_v59  ;;  %v1269_v18 = vmul.f32 0.6666667, %v1032_v59 }
 0x218   : > { %v1250_v55 = vmul.f32 0.4, %v1046_v47  ;;  %v1262_v58 = vmul.f32 0.8666667, %v1046_v47  ;;  %v1281_v28 = vmul.f32 0.2, %v1032_v59 }
 0x219   : > { %v2929_v60 = vadd.f32 %v1249_v46, %v1245_v45  ;;  %v2931_v61 = vadd.f32 %v1261_v52, %v1257_v48  ;;  %v1270_v29 = vmul.f32 0.6666667, %v1046_v47  ;;  %v1282_v31 = vmul.f32 0.2, %v1046_v47  ;;  %v2305_v45 = vld [vmem:[%s2847_s29 + $0x30] sm:$0xff]  ;;  %v2314_v46 = vld [vmem:[%s2847_s29 + $0x78] sm:$0xff] }
 0x21a   : > { %v2933_v62 = vadd.f32 %v1250_v55, %v1246_v50  ;;  %v2935_v63 = vadd.f32 %v1262_v58, %v1258_v53  ;;  %v2999_v53 = vperm.slane %v1423_v39, 0  ;;  %v3001_v55 = vperm.slane %v1423_v39, 1  ;;  %s2379_s29 = sshra.s32 %s1900_s24, 4  ;;  %s2380_s29 = int_to_ptr.hbm [resolvable:$true] %s2379_s29 }
 0x21b   : > { %s2381_s26 = scalar_lea.hbm %s2380_s29, 256  ;;  %p2386_p0 = scmp.lt.s32.totalorder %s2380_s29, %s3293_s11 }
 0x21c   : > { %v2937_v2 = vpop.f32.mrf.mxu2  ;;  %p2382_p11 = scmp.ne.s32.totalorder %s2380_s29, %s2381_s26  ;;  %p2387_p1 = scmp.lt.s32.totalorder %s2385_s19, %s2381_s26 }
 0x21d   : > { %v2939_v3 = vpop.f32.mrf.mxu3 }
 0x21e   : > { %v2943_v6 = vpop.f32.mrf.mxu0  ;;  %p2383_p12 = pnand %p2382_p11, %p2529_p5  ;;  %p2388_p2 = por %p2387_p1, %p2386_p0 }
 0x21f   : > { %v1271_v8 = vmul.f32 0.33333334, %v2943_v6  ;;  %v2946_v9 = vpop.f32.mrf.mxu1  ;;  %v1283_v11 = vmul.f32 0.8, %v2943_v6  ;;  %v1291_v48 = vmul.f32 0.73333335, %v2943_v6 }
 0x220   : > { %v1272_v12 = vmul.f32 0.33333334, %v2946_v9  ;;  %v1284_v13 = vmul.f32 0.8, %v2946_v9  ;;  %p2384_p13 = pneg %p2383_p12 }
 0x221   : > { %2234 = vmatmul.msk.bf16.gmra.mxu0 %vm1529_vm5, %v2304_v4  ;;  %2243 = vmatmul.msk.bf16.gmra.mxu2 %vm1529_vm5, %v2313_v5  ;;  %v2953_v54 = vadd.f32 %v1271_v8, %v1267_v7  ;;  %v2957_v56 = vadd.f32 %v1283_v11, %v1279_v10  ;;  %v1292_v7 = vmul.f32 0.73333335, %v2946_v9 }
 0x222   : > { %2250 = vmatmul.msk.bf16.gmra.mxu1 %vm1529_vm5, %v2304_v4  ;;  %v2959_v14 = vadd.f32 %v1272_v12, %v1268_v0  ;;  %v2961_v16 = vadd.f32 %v1284_v13, %v1280_v1  ;;  %v1295_v13 = vmul.f32 0.26666668, %v2921_v57  ;;  %p2389_p3 = pnand %p2388_p2, %p2384_p13 }
 0x223   : > { %3299 = vst [vmem:[#allocation7_spill] sm:$0xff] %v2953_v54 }
 0x224   : > { %2259 = vmatmul.msk.bf16.gmra.mxu3 %vm1529_vm5, %v2313_v5  ;;  %3300 = vst [vmem:[#allocation8_spill] sm:$0xff] %v2957_v56  ;;  %v2963_v17 = vpop.f32.mrf.mxu2  ;;  %v1307_v56 = vmul.f32 0.73333335, %v2921_v57 }
 0x225   : > { %3301 = vst [vmem:[#allocation9_spill] sm:$0xff] %v2959_v14  ;;  %v1343_v50 = vmul.f32 0.13333334, %v2963_v17  ;;  %v1355_v58 = vmul.f32 0.6, %v2963_v17 }
 0x226   : > { %3302 = vst [vmem:[#allocation10_spill] sm:$0xff] %v2961_v16  ;;  %v2967_v15 = vpop.f32.mrf.mxu0 }
 0x227   : > { %v2965_v49 = vpop.f32.mrf.mxu3  ;;  %v1273_v22 = vmul.f32 0.33333334, %v2967_v15  ;;  %v2970_v23 = vpop.f32.mrf.mxu1  ;;  %v1285_v30 = vmul.f32 0.8, %v2967_v15 }
 0x228   : > { %v1274_v32 = vmul.f32 0.33333334, %v2970_v23  ;;  %v1286_v33 = vmul.f32 0.8, %v2970_v23  ;;  %v1344_v8 = vmul.f32 0.13333334, %v2965_v49 }
 0x229   : > { %v2975_v34 = vadd.f32 %v1273_v22, %v1269_v18  ;;  %v2977_v35 = vadd.f32 %v1285_v30, %v1281_v28  ;;  %v1356_v0 = vmul.f32 0.6, %v2965_v49  ;;  %v1296_v22 = vmul.f32 0.26666668, %v2923_v44 }
 0x22a   : > { %v2979_v36 = vadd.f32 %v1274_v32, %v1270_v29  ;;  %v2981_v37 = vadd.f32 %v1286_v33, %v1282_v31  ;;  %v1299_v30 = vadd.f32 %v1295_v13, %v1291_v48 }
 0x22b   : > { %3303 = vst [vmem:[#allocation11_spill] sm:$0xff] %v2975_v34  ;;  %v1300_v33 = vadd.f32 %v1296_v22, %v1292_v7  ;;  %v1294_v22 = vmul.f32 0.73333335, %v2970_v23 }
 0x22c   : > { %3304 = vst [vmem:[#allocation12_spill] sm:$0xff] %v2977_v35  ;;  %v2983_v38 = vpop.f32.mrf.mxu2 }
 0x22d   : > { %3305 = vst [vmem:[#allocation13_spill] sm:$0xff] %v2979_v36  ;;  %v1357_v48 = vmul.f32 0.6, %v2983_v38 }
 0x22e   : > { %3306 = vst [vmem:[#allocation14_spill] sm:$0xff] %v2981_v37  ;;  %v2992_v47 = vpop.f32.mrf.mxu0 }
 0x22f   : > { %v2988_v59 = vpop.f32.mrf.mxu3  ;;  %v2997_v52 = vpop.f32.mrf.mxu1  ;;  %v1339_v4 = vmul.f32 0.8666667, %v2992_v47  ;;  %v1351_v5 = vmul.f32 0.4, %v2992_v47 }
 0x230   : > { %v1340_v10 = vmul.f32 0.8666667, %v2997_v52  ;;  %v1352_v11 = vmul.f32 0.4, %v2997_v52 }
 0x231   : > { %2235 = vmatmul.msk.bf16.gmra.mxu0 %vm1529_vm5, %v2305_v45  ;;  %2244 = vmatmul.msk.bf16.gmra.mxu2 %vm1529_vm5, %v2314_v46  ;;  %v3015_v1 = vadd.f32 %v1343_v50, %v1339_v4  ;;  %v3017_v12 = vadd.f32 %v1355_v58, %v1351_v5  ;;  %v1345_v50 = vmul.f32 0.13333334, %v2983_v38 }
 0x232   : > { %2251 = vmatmul.msk.bf16.gmra.mxu1 %vm1529_vm5, %v2305_v45  ;;  %v3024_v18 = vadd.f32 %v1344_v8, %v1340_v10  ;;  %v3027_v29 = vadd.f32 %v1356_v0, %v1352_v11  ;;  %v1346_v8 = vmul.f32 0.13333334, %v2988_v59  ;;  %v1358_v0 = vmul.f32 0.6, %v2988_v59 }
 0x234   : > { %2260 = vmatmul.msk.bf16.gmra.mxu3 %vm1529_vm5, %v2314_v46  ;;  %v1622_v28 = vpop.f32.mrf.mxu2  ;;  %v1293_v46 = vmul.f32 0.73333335, %v2967_v15 }
 0x235   : > { %v1623_v31 = vadd.f32 %v1622_v28, %v2999_v53 }
 0x236   : > { %v3031_v45 = vpop.f32.mrf.mxu0 }
 0x237   : > { %v1711_v32 = vpop.f32.mrf.mxu3  ;;  %v1812_v58 = vadd.f32 %v1623_v31, %v1299_v30  ;;  %v1341_v4 = vmul.f32 0.8666667, %v3031_v45  ;;  %v3036_v5 = vpop.f32.mrf.mxu1  ;;  %v1353_v7 = vmul.f32 0.4, %v3031_v45  ;;  %v1297_v31 = vmul.f32 0.26666668, %v2937_v2 }
 0x238   : > { %v1712_v39 = vadd.f32 %v1711_v32, %v3001_v55  ;;  %v1342_v11 = vmul.f32 0.8666667, %v3036_v5  ;;  %v1354_v13 = vmul.f32 0.4, %v3036_v5 }
 0x239   : > { %v3045_v30 = vadd.f32 %v1345_v50, %v1341_v4  ;;  %v3050_v37 = vadd.f32 %v1357_v48, %v1353_v7  ;;  %v1301_v16 = vadd.f32 %v1297_v31, %v1293_v46  ;;  %v1308_v46 = vmul.f32 0.73333335, %v2923_v44 }
 0x23a   : > { %v1813_v10 = vadd.f32 %v1712_v39, %v1300_v33  ;;  %v3048_v32 = vadd.f32 %v1346_v8, %v1342_v11  ;;  %v3052_v33 = vadd.f32 %v1358_v0, %v1354_v13  ;;  %v1298_v39 = vmul.f32 0.26666668, %v2939_v3 }
 0x23b   : > { %v1303_v11 = vmul.f32 0.26666668, %v2943_v6  ;;  %v1304_v13 = vmul.f32 0.26666668, %v2946_v9 }
 0x23c   : > { %v1816_v28 = vpack.c.bf16 %v1813_v10, %v1812_v58  ;;  %v1624_v35 = vpop.f32.mrf.mxu2  ;;  %v1302_v4 = vadd.f32 %v1298_v39, %v1294_v22 }
 0x23d   : > { %v1625_v50 = vadd.f32 %v1624_v35, %v2999_v53  ;;  %v1311_v22 = vadd.f32 %v1307_v56, %v1303_v11  ;;  %v1310_v56 = vmul.f32 0.73333335, %v2939_v3 }
 0x23e   : > { %1818 = vst [vmem:[%s3056_s14 + $0x70] sm:$0xff] %v1816_v28  ;;  %v3061_v10 = vpop.f32.mrf.mxu0 }
 0x23f   : > { %v1713_v58 = vpop.f32.mrf.mxu3  ;;  %v1814_v48 = vadd.f32 %v1625_v50, %v1301_v16  ;;  %v3063_v7 = vpop.f32.mrf.mxu1  ;;  %v1312_v16 = vadd.f32 %v1308_v46, %v1304_v13 }
 0x240   : > { %v1714_v8 = vadd.f32 %v1713_v58, %v3001_v55 }
 0x242   : > { %v1815_v0 = vadd.f32 %v1714_v8, %v1302_v4  ;;  %v1305_v8 = vmul.f32 0.26666668, %v2967_v15 }
 0x244   : > { %v1817_v28 = vpack.c.bf16 %v1815_v0, %v1814_v48  ;;  %v1627_v35 = vpop.f32.mrf.mxu2  ;;  %v1306_v48 = vmul.f32 0.26666668, %v2970_v23 }
 0x245   : > { %v1628_v31 = vadd.f32 %v1627_v35, %v2999_v53 }
 0x246   : > { %1819 = vst [vmem:[%s3056_s14 + $0x78] sm:$0xff] %v1817_v28  ;;  %v3072_v58 = vpop.f32.mrf.mxu0  ;;  %v1309_v28 = vmul.f32 0.73333335, %v2937_v2 }
 0x247   : > { %v1716_v39 = vpop.f32.mrf.mxu3  ;;  %v1820_v6 = vadd.f32 %v1628_v31, %v1311_v22  ;;  %v3074_v4 = vpop.f32.mrf.mxu1  ;;  %v1314_v22 = vadd.f32 %v1310_v56, %v1306_v48  ;;  %v1315_v56 = vmul.f32 0.8, %v2921_v57 }
 0x248   : > { %v1717_v50 = vadd.f32 %v1716_v39, %v3001_v55  ;;  %v1313_v13 = vadd.f32 %v1309_v28, %v1305_v8 }
 0x24a   : > { %v1821_v9 = vadd.f32 %v1717_v50, %v1312_v16 }
 0x24c   : > { %v1824_v0 = vpack.c.bf16 %v1821_v9, %v1820_v6  ;;  %v1629_v11 = vpop.f32.mrf.mxu2  ;;  %v1319_v9 = vmul.f32 0.2, %v2992_v47 }
 0x24d   : > { %v1630_v46 = vadd.f32 %v1629_v11, %v2999_v53  ;;  %v1316_v11 = vmul.f32 0.8, %v2923_v44 }
 0x24e   : > { %1826 = vst [vmem:[%s3056_s14 + $0x80] sm:$0xff] %v1824_v0  ;;  %v1587_v39 = vpop.f32.mrf.mxu0  ;;  %v1320_v0 = vmul.f32 0.2, %v2997_v52 }
 0x24f   : > { %v1718_v35 = vpop.f32.mrf.mxu3  ;;  %v1822_v16 = vadd.f32 %v1630_v46, %v1313_v13  ;;  %v1588_v15 = vadd.f32 %v1587_v39, %v2999_v53  ;;  %v1676_v23 = vpop.f32.mrf.mxu1 }
 0x250   : > { %v1719_v31 = vadd.f32 %v1718_v35, %v3001_v55  ;;  %v1677_v6 = vadd.f32 %v1676_v23, %v3001_v55  ;;  %v1323_v35 = vadd.f32 %v1319_v9, %v1315_v56  ;;  %v1324_v39 = vadd.f32 %v1320_v0, %v1316_v11 }
 0x251   : > { %v1756_v8 = vadd.f32 %v1588_v15, %v2877_v19  ;;  %v1223_v56 = vmul.f32 0.46666667, %v2891_v24  ;;  %v1317_v11 = vmul.f32 0.8, %v2937_v2 }
 0x252   : > { %v1823_v50 = vadd.f32 %v1719_v31, %v1314_v22  ;;  %v1757_v48 = vadd.f32 %v1677_v6, %v2879_v51 }
 0x254   : > { %v1825_v28 = vpack.c.bf16 %v1823_v50, %v1822_v16  ;;  %v1760_v13 = vpack.c.bf16 %v1757_v48, %v1756_v8  ;;  %v1632_v46 = vpop.f32.mrf.mxu2  ;;  %v1321_v8 = vmul.f32 0.2, %v3031_v45 }
 0x255   : > { %v1633_v22 = vadd.f32 %v1632_v46, %v2999_v53  ;;  %v1318_v46 = vmul.f32 0.8, %v2939_v3 }
 0x256   : > { %1827 = vst [vmem:[%s3056_s14 + $0x88] sm:$0xff] %v1825_v28  ;;  %v1589_v23 = vpop.f32.mrf.mxu0  ;;  %v1322_v28 = vmul.f32 0.2, %v3036_v5 }
 0x257   : > { %v1721_v31 = vpop.f32.mrf.mxu3  ;;  %1762 = vst [vmem:[%s3056_s14] sm:$0xff] %v1760_v13  ;;  %v1828_v16 = vadd.f32 %v1633_v22, %v1323_v35  ;;  %v1590_v50 = vadd.f32 %v1589_v23, %v2999_v53  ;;  %v1678_v6 = vpop.f32.mrf.mxu1  ;;  %v1224_v13 = vmul.f32 0.46666667, %v2893_v25 }
 0x258   : > { %v1722_v15 = vadd.f32 %v1721_v31, %v3001_v55  ;;  %v1679_v34 = vadd.f32 %v1678_v6, %v3001_v55  ;;  %v1219_v31 = vmul.f32 0.53333336, %v2877_v19 }
 0x259   : > { %v1758_v9 = vadd.f32 %v1590_v50, %v2885_v20 }
 0x25a   : > { %v1829_v36 = vadd.f32 %v1722_v15, %v1324_v39  ;;  %v1759_v0 = vadd.f32 %v1679_v34, %v2887_v21  ;;  %v1325_v39 = vadd.f32 %v1321_v8, %v1317_v11  ;;  %v1326_v34 = vadd.f32 %v1322_v28, %v1318_v46 }
 0x25b   : > { %v1227_v14 = vadd.f32 %v1223_v56, %v1219_v31  ;;  %v1331_v11 = vmul.f32 0.6666667, %v2992_v47  ;;  %v1226_v56 = vmul.f32 0.46666667, %v2901_v27  ;;  %v1328_v31 = vmul.f32 0.33333334, %v2923_v44 }
 0x25c   : > { %v1832_v48 = vpack.c.bf16 %v1829_v36, %v1828_v16  ;;  %v1761_v35 = vpack.c.bf16 %v1759_v0, %v1758_v9  ;;  %v1634_v22 = vpop.f32.mrf.mxu2  ;;  %v1220_v36 = vmul.f32 0.53333336, %v2879_v51 }
 0x25d   : > { %v1635_v15 = vadd.f32 %v1634_v22, %v2999_v53 }
 0x25e   : > { %1834 = vst [vmem:[%s3056_s14 + $0x90] sm:$0xff] %v1832_v48  ;;  %v1592_v50 = vpop.f32.mrf.mxu0  ;;  %v1228_v54 = vadd.f32 %v1224_v13, %v1220_v36  ;;  %v1221_v36 = vmul.f32 0.53333336, %v2885_v20 }
 0x25f   : > { %v1723_v23 = vpop.f32.mrf.mxu3  ;;  %1763 = vst [vmem:[%s3056_s14 + $0x8] sm:$0xff] %v1761_v35  ;;  %v1830_v6 = vadd.f32 %v1635_v15, %v1325_v39  ;;  %v1593_v48 = vadd.f32 %v1592_v50, %v2999_v53  ;;  %v1681_v9 = vpop.f32.mrf.mxu1  ;;  %v1332_v35 = vmul.f32 0.6666667, %v2997_v52  ;;  %v1327_v39 = vmul.f32 0.33333334, %v2921_v57 }
 0x260   : > { %v1724_v16 = vadd.f32 %v1723_v23, %v3001_v55  ;;  %v1682_v8 = vadd.f32 %v1681_v9, %v3001_v55  ;;  %v1225_v23 = vmul.f32 0.46666667, %v2899_v26  ;;  %v1222_v52 = vmul.f32 0.53333336, %v2887_v21 }
 0x261   : > { %v1764_v22 = vadd.f32 %v1593_v48, %v1227_v14  ;;  %v1335_v47 = vadd.f32 %v1331_v11, %v1327_v39  ;;  %v1333_v11 = vmul.f32 0.6666667, %v3031_v45  ;;  %v1235_v39 = vmul.f32 0.93333334, %v2891_v24 }
 0x262   : > { %v1831_v0 = vadd.f32 %v1724_v16, %v1326_v34  ;;  %v1765_v46 = vadd.f32 %v1682_v8, %v1228_v54  ;;  %v1336_v54 = vadd.f32 %v1332_v35, %v1328_v31  ;;  %v1329_v31 = vmul.f32 0.33333334, %v2937_v2 }
 0x264   : > { %v1833_v28 = vpack.c.bf16 %v1831_v0, %v1830_v6  ;;  %v1768_v13 = vpack.c.bf16 %v1765_v46, %v1764_v22  ;;  %v1637_v15 = vpop.f32.mrf.mxu2  ;;  %v1229_v6 = vadd.f32 %v1225_v23, %v1221_v36  ;;  %v1230_v0 = vadd.f32 %v1226_v56, %v1222_v52 }
 0x265   : > { %v1638_v14 = vadd.f32 %v1637_v15, %v2999_v53  ;;  %v1236_v23 = vmul.f32 0.93333334, %v2893_v25  ;;  %v1231_v36 = vmul.f32 0.06666667, %v2877_v19  ;;  %v1337_v45 = vadd.f32 %v1333_v11, %v1329_v31 }
 0x266   : > { %1835 = vst [vmem:[%s3056_s14 + $0x98] sm:$0xff] %v1833_v28  ;;  %v1594_v57 = vpop.f32.mrf.mxu0  ;;  %v1334_v28 = vmul.f32 0.6666667, %v3036_v5  ;;  %v1232_v5 = vmul.f32 0.06666667, %v2879_v51 }
 0x267   : > { %v1726_v34 = vpop.f32.mrf.mxu3  ;;  %1770 = vst [vmem:[%s3056_s14 + $0x10] sm:$0xff] %v1768_v13  ;;  %v1836_v50 = vadd.f32 %v1638_v14, %v1335_v47  ;;  %v1595_v44 = vadd.f32 %v1594_v57, %v2999_v53  ;;  %v1683_v48 = vpop.f32.mrf.mxu1  ;;  %v1330_v13 = vmul.f32 0.33333334, %v2939_v3  ;;  %v1239_v52 = vadd.f32 %v1235_v39, %v1231_v36 }
 0x268   : > { %v1727_v16 = vadd.f32 %v1726_v34, %v3001_v55  ;;  %v1684_v8 = vadd.f32 %v1683_v48, %v3001_v55  ;;  %v1240_v19 = vadd.f32 %v1236_v23, %v1232_v5  ;;  %v1237_v51 = vmul.f32 0.93333334, %v2899_v26 }
 0x269   : > { %v1766_v22 = vadd.f32 %v1595_v44, %v1229_v6  ;;  %v1338_v24 = vadd.f32 %v1334_v28, %v1330_v13  ;;  %v1238_v48 = vmul.f32 0.93333334, %v2901_v27  ;;  %v1234_v28 = vmul.f32 0.06666667, %v2887_v21 }
 0x26a   : > { %v1837_v9 = vadd.f32 %v1727_v16, %v1336_v54  ;;  %v1767_v46 = vadd.f32 %v1684_v8, %v1230_v0  ;;  %v1233_v8 = vmul.f32 0.06666667, %v2885_v20 }
 0x26b   : > { %v1242_v20 = vadd.f32 %v1238_v48, %v1234_v28 }
 0x26c   : > { %v1840_v35 = vpack.c.bf16 %v1837_v9, %v1836_v50  ;;  %v1769_v56 = vpack.c.bf16 %v1767_v46, %v1766_v22  ;;  %v1639_v15 = vpop.f32.mrf.mxu2  ;;  %v1241_v39 = vadd.f32 %v1237_v51, %v1233_v8 }
 0x26d   : > { %v1640_v47 = vadd.f32 %v1639_v15, %v2999_v53 }
 0x26e   : > { %1842 = vst [vmem:[%s3056_s14 + $0xa0] sm:$0xff] %v1840_v35  ;;  %v1597_v34 = vpop.f32.mrf.mxu0 }
 0x26f   : > { %v1728_v14 = vpop.f32.mrf.mxu3  ;;  %1771 = vst [vmem:[%s3056_s14 + $0x18] sm:$0xff] %v1769_v56  ;;  %v1838_v25 = vadd.f32 %v1640_v47, %v1337_v45  ;;  %v1598_v3 = vadd.f32 %v1597_v34, %v2999_v53  ;;  %v1686_v54 = vpop.f32.mrf.mxu1 }
 0x270   : > { %v1729_v2 = vadd.f32 %v1728_v14, %v3001_v55  ;;  %v1687_v57 = vadd.f32 %v1686_v54, %v3001_v55 }
 0x271   : > { %v1772_v50 = vadd.f32 %v1598_v3, %v1239_v52 }
 0x272   : > { %v1839_v16 = vadd.f32 %v1729_v2, %v1338_v24  ;;  %v1773_v44 = vadd.f32 %v1687_v57, %v1240_v19 }
 0x274   : > { %v1841_v6 = vpack.c.bf16 %v1839_v16, %v1838_v25  ;;  %v1776_v9 = vpack.c.bf16 %v1773_v44, %v1772_v50  ;;  %v1642_v0 = vpop.f32.mrf.mxu2 }
 0x275   : > { %v1643_v11 = vadd.f32 %v1642_v0, %v2999_v53 }
 0x276   : > { %1843 = vst [vmem:[%s3056_s14 + $0xa8] sm:$0xff] %v1841_v6  ;;  %v1599_v46 = vpop.f32.mrf.mxu0 }
 0x277   : > { %v1731_v22 = vpop.f32.mrf.mxu3  ;;  %1778 = vst [vmem:[%s3056_s14 + $0x20] sm:$0xff] %v1776_v9  ;;  %v1844_v26 = vadd.f32 %v1643_v11, %v3015_v1  ;;  %v1600_v27 = vadd.f32 %v1599_v46, %v2999_v53  ;;  %v1688_v31 = vpop.f32.mrf.mxu1 }
 0x278   : > { %v1732_v35 = vadd.f32 %v1731_v22, %v3001_v55  ;;  %v1689_v13 = vadd.f32 %v1688_v31, %v3001_v55  ;;  %v1368_v31 = vmul.f32 0.06666667, %v3063_v7 }
 0x279   : > { %v1774_v56 = vadd.f32 %v1600_v27, %v1241_v39  ;;  %v1367_v39 = vmul.f32 0.06666667, %v3061_v10 }
 0x27a   : > { %v1845_v23 = vadd.f32 %v1732_v35, %v3024_v18  ;;  %v1775_v36 = vadd.f32 %v1689_v13, %v1242_v20  ;;  %v1363_v13 = vmul.f32 0.93333334, %v2963_v17 }
 0x27c   : > { %v1848_v15 = vpack.c.bf16 %v1845_v23, %v1844_v26  ;;  %v1777_v21 = vpack.c.bf16 %v1775_v36, %v1774_v56  ;;  %v1644_v45 = vpop.f32.mrf.mxu2  ;;  %v1371_v36 = vadd.f32 %v1367_v39, %v1363_v13 }
 0x27d   : > { %v1645_v47 = vadd.f32 %v1644_v45, %v2999_v53 }
 0x27e   : > { %1850 = vst [vmem:[%s3056_s14 + $0xb0] sm:$0xff] %v1848_v15  ;;  %v1602_v5 = vpop.f32.mrf.mxu0 }
 0x27f   : > { %v1733_v14 = vpop.f32.mrf.mxu3  ;;  %1779 = vst [vmem:[%s3056_s14 + $0x28] sm:$0xff] %v1777_v21  ;;  %v1846_v18 = vadd.f32 %v1645_v47, %v3045_v30  ;;  %v1603_v24 = vadd.f32 %v1602_v5, %v2999_v53  ;;  %v1691_v2 = vpop.f32.mrf.mxu1 }
 0x280   : > { %v1734_v1 = vadd.f32 %v1733_v14, %v3001_v55  ;;  %v1692_v25 = vadd.f32 %v1691_v2, %v3001_v55 }
 0x281   : > { %v1780_v52 = vadd.f32 %v1603_v24, %v2911_v40  ;;  %v1369_v24 = vmul.f32 0.06666667, %v3072_v58 }
 0x282   : > { %v1847_v34 = vadd.f32 %v1734_v1, %v3048_v32  ;;  %v1781_v54 = vadd.f32 %v1692_v25, %v2917_v42 }
 0x284   : > { %v1849_v3 = vpack.c.bf16 %v1847_v34, %v1846_v18  ;;  %v1784_v16 = vpack.c.bf16 %v1781_v54, %v1780_v52  ;;  %v1647_v19 = vpop.f32.mrf.mxu2  ;;  %v1370_v34 = vmul.f32 0.06666667, %v3074_v4  ;;  %v1366_v54 = vmul.f32 0.93333334, %v2988_v59 }
 0x285   : > { %v1648_v57 = vadd.f32 %v1647_v19, %v2999_v53 }
 0x286   : > { %1851 = vst [vmem:[%s3056_s14 + $0xb8] sm:$0xff] %v1849_v3  ;;  %v1604_v6 = vpop.f32.mrf.mxu0  ;;  %v1365_v3 = vmul.f32 0.93333334, %v2983_v38 }
 0x287   : > { %v1736_v50 = vpop.f32.mrf.mxu3  ;;  %1786 = vst [vmem:[%s3056_s14 + $0x30] sm:$0xff] %v1784_v16  ;;  %v1852_v32 = vadd.f32 %v1648_v57, %v3017_v12  ;;  %v1605_v44 = vadd.f32 %v1604_v6, %v2999_v53  ;;  %v1693_v40 = vpop.f32.mrf.mxu1  ;;  %v1374_v6 = vadd.f32 %v1370_v34, %v1366_v54  ;;  %v3311_v54 = vld [vmem:[#allocation8_spill] sm:$0xff] }
 0x288   : > { %v1737_v30 = vadd.f32 %v1736_v50, %v3001_v55  ;;  %v1694_v42 = vadd.f32 %v1693_v40, %v3001_v55  ;;  %v1373_v57 = vadd.f32 %v1369_v24, %v1365_v3 }
 0x289   : > { %v1782_v48 = vadd.f32 %v1605_v44, %v2929_v60 }
 0x28a   : > { %v1853_v51 = vadd.f32 %v1737_v30, %v3027_v29  ;;  %v1783_v0 = vadd.f32 %v1694_v42, %v2933_v62 }
 0x28c   : > { %v1856_v9 = vpack.c.bf16 %v1853_v51, %v1852_v32  ;;  %v1785_v8 = vpack.c.bf16 %v1783_v0, %v1782_v48  ;;  %v1649_v11 = vpop.f32.mrf.mxu2  ;;  %v1379_v48 = vmul.f32 0.53333336, %v3061_v10 }
 0x28d   : > { %v1650_v22 = vadd.f32 %v1649_v11, %v2999_v53 }
 0x28e   : > { %1858 = vst [vmem:[%s3056_s14 + $0xc0] sm:$0xff] %v1856_v9  ;;  %v1607_v35 = vpop.f32.mrf.mxu0  ;;  %v3307_v9 = vld [vmem:[#allocation7_spill] sm:$0xff] }
 0x28f   : > { %v1738_v28 = vpop.f32.mrf.mxu3  ;;  %1787 = vst [vmem:[%s3056_s14 + $0x38] sm:$0xff] %v1785_v8  ;;  %v1854_v29 = vadd.f32 %v1650_v22, %v3050_v37  ;;  %v1608_v46 = vadd.f32 %v1607_v35, %v2999_v53  ;;  %v1696_v26 = vpop.f32.mrf.mxu1  ;;  %v1364_v37 = vmul.f32 0.93333334, %v2965_v49  ;;  %v1380_v8 = vmul.f32 0.53333336, %v3063_v7  ;;  %v3308_v22 = vld [vmem:[#allocation9_spill] sm:$0xff] }
 0x290   : > { %v1739_v12 = vadd.f32 %v1738_v28, %v3001_v55  ;;  %v1697_v62 = vadd.f32 %v1696_v26, %v3001_v55  ;;  %v1376_v35 = vmul.f32 0.46666667, %v2965_v49 }
 0x291   : > { %v1788_v27 = vadd.f32 %v1608_v46, %v2913_v41  ;;  %v1372_v45 = vadd.f32 %v1368_v31, %v1364_v37  ;;  %v1381_v37 = vmul.f32 0.53333336, %v3072_v58 }
 0x292   : > { %v1855_v60 = vadd.f32 %v1739_v12, %v3052_v33  ;;  %v1789_v20 = vadd.f32 %v1697_v62, %v2919_v43  ;;  %v1375_v12 = vmul.f32 0.46666667, %v2963_v17  ;;  %v1384_v39 = vadd.f32 %v1380_v8, %v1376_v35 }
 0x294   : > { %v1857_v23 = vpack.c.bf16 %v1855_v60, %v1854_v29  ;;  %v1792_v56 = vpack.c.bf16 %v1789_v20, %v1788_v27  ;;  %v1652_v15 = vpop.f32.mrf.mxu2  ;;  %v1383_v26 = vadd.f32 %v1379_v48, %v1375_v12 }
 0x295   : > { %v1653_v33 = vadd.f32 %v1652_v15, %v2999_v53 }
 0x296   : > { %1859 = vst [vmem:[%s3056_s14 + $0xc8] sm:$0xff] %v1857_v23  ;;  %v1609_v47 = vpop.f32.mrf.mxu0 }
 0x297   : > { %v1741_v21 = vpop.f32.mrf.mxu3  ;;  %1794 = vst [vmem:[%s3056_s14 + $0x40] sm:$0xff] %v1792_v56  ;;  %v1860_v14 = vadd.f32 %v1653_v33, %v1371_v36  ;;  %v1610_v43 = vadd.f32 %v1609_v47, %v2999_v53  ;;  %v1698_v1 = vpop.f32.mrf.mxu1  ;;  %v3309_v56 = vld [vmem:[#allocation11_spill] sm:$0xff]  ;;  %v1382_v36 = vmul.f32 0.53333336, %v3074_v4  ;;  %v1378_v47 = vmul.f32 0.46666667, %v2988_v59 }
 0x298   : > { %v1742_v41 = vadd.f32 %v1741_v21, %v3001_v55  ;;  %v1699_v18 = vadd.f32 %v1698_v1, %v3001_v55  ;;  %v3310_v21 = vld [vmem:[#allocation13_spill] sm:$0xff] }
 0x299   : > { %v1790_v2 = vadd.f32 %v1610_v43, %v2931_v61  ;;  %v1386_v24 = vadd.f32 %v1382_v36, %v1378_v47 }
 0x29a   : > { %v1861_v5 = vadd.f32 %v1742_v41, %v1372_v45  ;;  %v1791_v52 = vadd.f32 %v1699_v18, %v2935_v63  ;;  %v1377_v41 = vmul.f32 0.46666667, %v2983_v38 }
 0x29c   : > { %v1864_v25 = vpack.c.bf16 %v1861_v5, %v1860_v14  ;;  %v1793_v16 = vpack.c.bf16 %v1791_v52, %v1790_v2  ;;  %v1654_v19 = vpop.f32.mrf.mxu2  ;;  %v1385_v1 = vadd.f32 %v1381_v37, %v1377_v41 }
 0x29d   : > { %v1655_v50 = vadd.f32 %v1654_v19, %v2999_v53 }
 0x29e   : > { %1866 = vst [vmem:[%s3056_s14 + $0xd0] sm:$0xff] %v1864_v25  ;;  %v1612_v32 = vpop.f32.mrf.mxu0 }
 0x29f   : > { %v1743_v30 = vpop.f32.mrf.mxu3  ;;  %1795 = vst [vmem:[%s3056_s14 + $0x48] sm:$0xff] %v1793_v16  ;;  %v1862_v44 = vadd.f32 %v1655_v50, %v1373_v57  ;;  %v1613_v63 = vadd.f32 %v1612_v32, %v2999_v53  ;;  %v1701_v40 = vpop.f32.mrf.mxu1  ;;  %v3312_v57 = vld [vmem:[#allocation10_spill] sm:$0xff] }
 0x2a0   : > { %v1744_v61 = vadd.f32 %v1743_v30, %v3001_v55  ;;  %v1702_v42 = vadd.f32 %v1701_v40, %v3001_v55 }
 0x2a1   : > { %v1796_v0 = vadd.f32 %v1613_v63, %v3307_v9 }
 0x2a2   : > { %v1863_v51 = vadd.f32 %v1744_v61, %v1374_v6  ;;  %v1797_v28 = vadd.f32 %v1702_v42, %v3308_v22  ;;  %v3314_v22 = vld [vmem:[#allocation14_spill] sm:$0xff] }
 0x2a4   : > { %v1865_v11 = vpack.c.bf16 %v1863_v51, %v1862_v44  ;;  %v1800_v29 = vpack.c.bf16 %v1797_v28, %v1796_v0  ;;  %v1657_v46 = vpop.f32.mrf.mxu2  ;;  %v3313_v0 = vld [vmem:[#allocation12_spill] sm:$0xff] }
 0x2a5   : > { %v1658_v60 = vadd.f32 %v1657_v46, %v2999_v53 }
 0x2a6   : > { %1867 = vst [vmem:[%s3056_s14 + $0xd8] sm:$0xff] %v1865_v11  ;;  %v1614_v31 = vpop.f32.mrf.mxu0 }
 0x2a7   : > { %v1746_v62 = vpop.f32.mrf.mxu3  ;;  %1802 = vst [vmem:[%s3056_s14 + $0x50] sm:$0xff] %v1800_v29  ;;  %v1868_v23 = vadd.f32 %v1658_v60, %v1383_v26  ;;  %v1615_v20 = vadd.f32 %v1614_v31, %v2999_v53  ;;  %v1703_v13 = vpop.f32.mrf.mxu1 }
 0x2a8   : > { %v1747_v27 = vadd.f32 %v1746_v62, %v3001_v55  ;;  %v1704_v49 = vadd.f32 %v1703_v13, %v3001_v55 }
 0x2a9   : > { %v1798_v15 = vadd.f32 %v1615_v20, %v3309_v56 }
 0x2aa   : > { %v1869_v17 = vadd.f32 %v1747_v27, %v1384_v39  ;;  %v1799_v45 = vadd.f32 %v1704_v49, %v3310_v21 }
 0x2ac   : > { %v1872_v33 = vpack.c.bf16 %v1869_v17, %v1868_v23  ;;  %v1801_v14 = vpack.c.bf16 %v1799_v45, %v1798_v15  ;;  %v1659_v43 = vpop.f32.mrf.mxu2 }
 0x2ad   : > { %v1660_v5 = vadd.f32 %v1659_v43, %v2999_v53 }
 0x2ae   : > { %1874 = vst [vmem:[%s3056_s14 + $0xe0] sm:$0xff] %v1872_v33  ;;  %v1617_v34 = vpop.f32.mrf.mxu0 }
 0x2af   : > { %v1748_v18 = vpop.f32.mrf.mxu3  ;;  %1803 = vst [vmem:[%s3056_s14 + $0x58] sm:$0xff] %v1801_v14  ;;  %v1870_v25 = vadd.f32 %v1660_v5, %v1385_v1  ;;  %v1618_v52 = vadd.f32 %v1617_v34, %v2999_v53  ;;  %v1706_v38 = vpop.f32.mrf.mxu1 }
 0x2b0   : > { %v1749_v2 = vadd.f32 %v1748_v18, %v3001_v55  ;;  %v1707_v59 = vadd.f32 %v1706_v38, %v3001_v55 }
 0x2b1   : > { %v1804_v16 = vadd.f32 %v1618_v52, %v3311_v54 }
 0x2b2   : > { %v1871_v3 = vadd.f32 %v1749_v2, %v1386_v24  ;;  %v1805_v50 = vadd.f32 %v1707_v59, %v3312_v57 }
 0x2b4   : > { %v1873_v19 = vpack.c.bf16 %v1871_v3, %v1870_v25  ;;  %v1808_v30 = vpack.c.bf16 %v1805_v50, %v1804_v16  ;;  %v1662_v6 = vpop.f32.mrf.mxu2 }
 0x2b5   : > { %v1663_v61 = vadd.f32 %v1662_v6, %v2999_v53 }
 0x2b6   : > { %1875 = vst [vmem:[%s3056_s14 + $0xe8] sm:$0xff] %v1873_v19  ;;  %v1619_v63 = vpop.f32.mrf.mxu0 }
 0x2b7   : > { %v1751_v32 = vpop.f32.mrf.mxu3  ;;  %1810 = vst [vmem:[%s3056_s14 + $0x60] sm:$0xff] %v1808_v30  ;;  %v1876_v40 = vadd.f32 %v1663_v61, %v3061_v10  ;;  %v1620_v51 = vadd.f32 %v1619_v63, %v2999_v53  ;;  %v1708_v42 = vpop.f32.mrf.mxu1 }
 0x2b8   : > { %v1752_v44 = vadd.f32 %v1751_v32, %v3001_v55  ;;  %v1709_v9 = vadd.f32 %v1708_v42, %v3001_v55 }
 0x2b9   : > { %v1806_v8 = vadd.f32 %v1620_v51, %v3313_v0 }
 0x2ba   : > { %v1877_v48 = vadd.f32 %v1752_v44, %v3063_v7  ;;  %v1807_v28 = vadd.f32 %v1709_v9, %v3314_v22 }
 0x2bc   : > { %v1880_v11 = vpack.c.bf16 %v1877_v48, %v1876_v40  ;;  %v1809_v10 = vpack.c.bf16 %v1807_v28, %v1806_v8  ;;  %v1664_v12 = vpop.f32.mrf.mxu2 }
 0x2bd   : > { %v1665_v35 = vadd.f32 %v1664_v12, %v2999_v53 }
 0x2be   : > { %1882 = vst [vmem:[%s3056_s14 + $0xf0] sm:$0xff] %v1880_v11 }
 0x2bf   : > { %v1753_v7 = vpop.f32.mrf.mxu3  ;;  %1811 = vst [vmem:[%s3056_s14 + $0x68] sm:$0xff] %v1809_v10  ;;  %v1878_v46 = vadd.f32 %v1665_v35, %v3072_v58 }
 0x2c0   : > { %v1754_v29 = vadd.f32 %v1753_v7, %v3001_v55 }
 0x2c2   : > { %v1879_v26 = vadd.f32 %v1754_v29, %v3074_v4 }
 0x2c4   : > { %v1881_v60 = vpack.c.bf16 %v1879_v26, %v1878_v46 }
 0x2c6   : > { %1883 = vst [vmem:[%s3056_s14 + $0xf8] sm:$0xff] %v1881_v60 }
 0x2c7   : > { %2392 = shalt.err (!%p2389_p3)
}
 0x2c8   : > { %s2429_s12 = smov 128   ;;  %s2430_s14 = smov 8  }
 0x2c9   : > { %2324 = dma.vmem_to_hbm [thread:$0]  (%p2529_p5), %s1898_s21, 4096, %s1900_s24, %s1885_s25, %s2429_s12, %s2429_s12, %s2430_s14  }
 0x2ca PF: > { %p2330_p4 = scmp.ge.s32.totalorder %s2427_s20, 2  ;;  %s1914_s22 = sand.u32 1, %s2415_s17  }
 0x2cb   : > { %s1915_s30 = scalar_lea.sflag [#allocation3], %s1914_s22 }
 0x2cc   : > { %p2327_p7 = pnand %p2330_p4, %p2533_p6 }
 0x2ce   : > { %p2328_p8 = pneg %p2327_p7 }
 0x2d0   : > { %2410 = dma.done.wait (%p2328_p8), %s1915_s30, 4096  }
 0x2d1   : > { %2412 = vsyncadd (%p2328_p8), %s1915_s30, 4294963200  ;;  %s3315_s29 = sld [smem:[#allocation5_spill]]  ;;  %p21_p9 = scmp.ge.s32.totalorder %s2516_s23, 4  }
 0x2d2   : > { %s3316_s19 = sld [smem:[#allocation6_spill]]  ;;  %s3317_s17 = smov %s2419_s18 }
 0x2d3   : > { %s3319_s20 = smov %s2516_s23  ;;  %23 = sbr.rel (!%p21_p9) target bundleno = 3 (0x3), region = 105 }
 0x2d7   : > { %s3318_s18 = smov %s3315_s29 }
 0x2d8   :  { %1921 = vsyncpa [#allocation3], 1 }
 0x2d9   :  { %1923 = vsyncpa [#allocation3 + $0x1], 1 }

</bundles_post_ra>
